<compile_context>
chip_gen: v5e
topology: v5e:2x2
jax: 0.10.0
libtpu: 0.0.40
codegen_flags: <defaults>
</compile_context>

<pallas_src>
import functools

import jax
import jax.numpy as jnp
from jax.experimental import pallas as pl
from jax.experimental.pallas import tpu as pltpu

HIDDEN = 768
FC1 = 512
NCLS = 2
NPAD = 128  # lane-dense padded class dimension


def _round_up(x, m):
    return ((x + m - 1) // m) * m


# ----------------------------- Pallas kernel --------------------------------
def bert_head_kernel(x_ref, wp_ref, w1_ref, b1_ref, w2_ref, b2_ref, o_ref):
    # x:  [TB, 768] f32  masked-mean pooled embeddings (cast to bf16 in-kernel)
    # wp: [768, 768] bf16 stand-in BERT pooler dense
    # w1: [768, 512] bf16, b1: [1, 512] f32
    # w2: [512, 128] bf16 (cols 2..127 zero), b2: [1, 128] f32 (cols 2..127 = -1e30)
    x = x_ref[...].astype(jnp.bfloat16)

    # fused BERT-style pooler: cls_hs = tanh(pooled @ Wp)   (tanh goes to the EUP)
    cls = jnp.tanh(jnp.dot(x, wp_ref[...], preferred_element_type=jnp.float32))
    cls = cls.astype(jnp.bfloat16)

    # fc1 + ReLU (f32 accumulate on MXU, bf16 intermediate to cut live range)
    h = jnp.dot(cls, w1_ref[...], preferred_element_type=jnp.float32) + b1_ref[...]
    h = jnp.maximum(h, 0.0).astype(jnp.bfloat16)

    # dropout(p=0.1): inference-mode identity
    # TODO(synk): training-mode dropout (pltpu.prng_random_bits mask + 1/(1-p)) omitted.

    # fc2 -> lane-dense [TB, 128] logits; padded lanes carry -1e30 bias so they
    # vanish in the softmax normalizer.
    logits = jnp.dot(h, w2_ref[...], preferred_element_type=jnp.float32) + b2_ref[...]

    # LogSoftmax over the class axis (padded lanes contribute exp ~= 0)
    m = jnp.max(logits, axis=1, keepdims=True)
    z = logits - m
    lse = jnp.log(jnp.sum(jnp.exp(z), axis=1, keepdims=True))
    o_ref[...] = (z - lse).astype(o_ref.dtype)


# ------------------------- one-time weight preparation -----------------------
def prepare_head_params(params):
    """bf16 casts + lane padding, done ONCE (not per forward call)."""
    w2_pad = jnp.zeros((FC1, NPAD), jnp.bfloat16).at[:, :NCLS].set(
        params["w2"].astype(jnp.bfloat16))
    b2_pad = jnp.full((1, NPAD), -1e30, jnp.float32).at[:, :NCLS].set(
        params["b2"].reshape(1, NCLS).astype(jnp.float32))
    return {
        "wp": params["pooler_w"].astype(jnp.bfloat16),
        "w1": params["w1"].astype(jnp.bfloat16),
        "b1": params["b1"].reshape(1, FC1).astype(jnp.float32),
        "w2p": w2_pad,
        "b2p": b2_pad,
    }


# ------------------------------ kernel wrapper --------------------------------
def bert_pooler_head(pooled, prep, tile_b=1024):
    """pooled: [B, 768] f32 -> log-probs [B, 2] f32 via one batch-tiled fused kernel."""
    B, H = pooled.shape
    assert H == HIDDEN

    # Batch tile: multiple of 8 (f32 sublane packing). Target ~cdiv(B, 2) so the grid
    # has >= 2 "parallel" steps (v7x megacore), capped at tile_b (default 1024).
    granule = 8
    tb = min(tile_b, _round_up(max(-(-B // 2), 1), granule))
    grid = (pl.cdiv(B, tb),)  # ragged last block: OOB rows are garbage, sliced off later

    flops = 2 * B * (HIDDEN * HIDDEN + HIDDEN * FC1 + FC1 * NPAD)
    bytes_accessed = (pooled.size * 4 + prep["wp"].size * 2 + prep["w1"].size * 2
                      + prep["w2p"].size * 2 + prep["b1"].size * 4
                      + prep["b2p"].size * 4 + B * NPAD * 4)

    out = pl.pallas_call(
        bert_head_kernel,
        out_shape=jax.ShapeDtypeStruct((B, NPAD), jnp.float32),
        grid=grid,
        in_specs=[
            pl.BlockSpec((tb, HIDDEN), lambda i: (i, 0)),      # activations: batch-tiled
            pl.BlockSpec((HIDDEN, HIDDEN), lambda i: (0, 0)),  # pooler W: VMEM-resident
            pl.BlockSpec((HIDDEN, FC1), lambda i: (0, 0)),     # w1: resident
            pl.BlockSpec((1, FC1), lambda i: (0, 0)),          # b1: resident
            pl.BlockSpec((FC1, NPAD), lambda i: (0, 0)),       # w2 (lane-padded): resident
            pl.BlockSpec((1, NPAD), lambda i: (0, 0)),         # b2 (lane-padded): resident
        ],
        out_specs=pl.BlockSpec((tb, NPAD), lambda i: (i, 0)),
        compiler_params=pltpu.CompilerParams(
            dimension_semantics=("parallel",),
            # explicit scoped-VMEM budget so large tiles also fit v5e's 16 MiB default
            vmem_limit_bytes=48 * 1024 * 1024,
        ),
        cost_estimate=pl.CostEstimate(
            flops=flops,
            transcendentals=B * (HIDDEN + NPAD + 1),
            bytes_accessed=bytes_accessed,
        ),
    )(pooled, prep["wp"], prep["w1"], prep["b1"], prep["w2p"], prep["b2p"])

    return out[:, :NCLS]


# --------------------------- backbone stand-in + forward ----------------------
def init_params(key, vocab_size=30, hidden=HIDDEN):
    ks = jax.random.split(key, 6)
    return {
        # stand-in "bert": token embedding + pooler dense (pooler fused into the kernel)
        "emb": jax.random.normal(ks[0], (vocab_size, hidden), jnp.float32) * 0.02,
        "pooler_w": jax.random.normal(ks[1], (hidden, hidden), jnp.float32) * 0.02,
        # head: fc1 (768 -> 512), fc2 (512 -> 2); weights stored transposed vs. PyTorch
        "w1": jax.random.normal(ks[2], (hidden, FC1), jnp.float32) * 0.02,
        "b1": jax.random.normal(ks[3], (1, FC1), jnp.float32) * 0.02,
        "w2": jax.random.normal(ks[4], (FC1, NCLS), jnp.float32) * 0.02,
        "b2": jax.random.normal(ks[5], (1, NCLS), jnp.float32) * 0.02,
    }


def masked_mean_embed(sent_id, mask, emb):
    """Deterministic stand-in for the pretrained BERT body: embed + masked mean pool."""
    e = emb[sent_id]                                     # [B, S, 768]
    m = mask.astype(jnp.float32)[..., None]              # [B, S, 1]
    return (e * m).sum(axis=1) / jnp.maximum(m.sum(axis=1), 1.0)  # [B, 768]


@functools.partial(jax.jit, static_argnames=("tile_b",))
def bert_arch_forward(emb, prep, sent_id, mask, tile_b=1024):
    pooled = masked_mean_embed(sent_id, mask, emb)        # plain-JAX glue (backbone stand-in)
    return bert_pooler_head(pooled, prep, tile_b=tile_b)  # fused pooler+head Pallas kernel


# ---------------------------------- main -------------------------------------
if __name__ == "__main__":
    key = jax.random.PRNGKey(0)
    pkey, dkey, mkey = jax.random.split(key, 3)

    B, S, VOCAB = 8, 8, 30
    params = init_params(pkey, vocab_size=VOCAB)
    prep = prepare_head_params(params)   # one-time weight prep (not per call)

    sent_id = jax.random.randint(dkey, (B, S), 0, VOCAB, dtype=jnp.int32)
    mask = (jax.random.uniform(mkey, (B, S)) > 0.2).astype(jnp.int32)

    out = bert_arch_forward(params["emb"], prep, sent_id, mask)
    out = jax.block_until_ready(out)

    # pure-JAX reference using the same bf16-rounded weights / intermediates
    pooled = masked_mean_embed(sent_id, mask, params["emb"])
    xb = pooled.astype(jnp.bfloat16).astype(jnp.float32)
    wpb = params["pooler_w"].astype(jnp.bfloat16).astype(jnp.float32)
    w1b = params["w1"].astype(jnp.bfloat16).astype(jnp.float32)
    w2b = params["w2"].astype(jnp.bfloat16).astype(jnp.float32)
    cls = jnp.tanh(jnp.dot(xb, wpb, precision=jax.lax.Precision.HIGHEST))
    cls = cls.astype(jnp.bfloat16).astype(jnp.float32)
    ref_h = jnp.maximum(
        jnp.dot(cls, w1b, precision=jax.lax.Precision.HIGHEST) + params["b1"], 0.0)
    ref_h = ref_h.astype(jnp.bfloat16).astype(jnp.float32)
    ref_logits = jnp.dot(ref_h, w2b, precision=jax.lax.Precision.HIGHEST) + params["b2"]
    ref = jax.nn.log_softmax(ref_logits, axis=1)

    assert out.shape == (B, NCLS)
    assert jnp.allclose(out, ref, atol=2e-3, rtol=2e-3), (
        float(jnp.max(jnp.abs(out - ref))))

    print("KERNEL_OK")
</pallas_src>

<mosaic_0001>
module attributes {stable_mosaic.version = 11 : i64} {
  func.func @bert_head_kernel(%arg0: i32, %arg1: memref<8x768xf32, #tpu.memory_space<vmem>>, %arg2: memref<768x768xbf16, #tpu.memory_space<vmem>>, %arg3: memref<768x512xbf16, #tpu.memory_space<vmem>>, %arg4: memref<1x512xf32, #tpu.memory_space<vmem>>, %arg5: memref<512x128xbf16, #tpu.memory_space<vmem>>, %arg6: memref<1x128xf32, #tpu.memory_space<vmem>>, %arg7: memref<8x128xf32, #tpu.memory_space<vmem>>) attributes {dimension_semantics = [#tpu.dimension_semantics<parallel>], iteration_bounds = array<i64: 1>, scalar_prefetch = 0 : i64, scratch_operands = 0 : i64, tpu.core_type = #tpu.core_type<tc>, window_params = [{transform_indices = @transform_0, window_bounds = array<i64: 8, 768>}, {pipeline_mode = #tpu.pipeline_mode<synchronous>, transform_indices = @transform_1, window_bounds = array<i64: 768, 768>}, {pipeline_mode = #tpu.pipeline_mode<synchronous>, transform_indices = @transform_2, window_bounds = array<i64: 768, 512>}, {pipeline_mode = #tpu.pipeline_mode<synchronous>, transform_indices = @transform_3, window_bounds = array<i64: 1, 512>}, {pipeline_mode = #tpu.pipeline_mode<synchronous>, transform_indices = @transform_4, window_bounds = array<i64: 512, 128>}, {pipeline_mode = #tpu.pipeline_mode<synchronous>, transform_indices = @transform_5, window_bounds = array<i64: 1, 128>}, {transform_indices = @transform_6, window_bounds = array<i64: 8, 128>}]} {
    %c0 = arith.constant 0 : index
    %c0_0 = arith.constant 0 : index
    %0 = vector.load %arg1[%c0, %c0_0] : memref<8x768xf32, #tpu.memory_space<vmem>>, vector<8x768xf32>
    %1 = arith.truncf %0 : vector<8x768xf32> to vector<8x768xbf16>
    %c0_1 = arith.constant 0 : index
    %c0_2 = arith.constant 0 : index
    %2 = vector.load %arg2[%c0_1, %c0_2] : memref<768x768xbf16, #tpu.memory_space<vmem>>, vector<768x768xbf16>
    %cst = arith.constant dense<0.000000e+00> : vector<8x768xf32>
    %3 = tpu.matmul %1, %2, %cst {dimension_numbers = #tpu.dot_dimension_numbers<[1], [0], [0], [1], [0, 0, 1, 1], [], []>} : vector<8x768xbf16>, vector<768x768xbf16>, vector<8x768xf32> -> vector<8x768xf32>
    %4 = math.tanh %3 : vector<8x768xf32>
    %5 = arith.truncf %4 : vector<8x768xf32> to vector<8x768xbf16>
    %c0_3 = arith.constant 0 : index
    %c0_4 = arith.constant 0 : index
    %6 = vector.load %arg3[%c0_3, %c0_4] : memref<768x512xbf16, #tpu.memory_space<vmem>>, vector<768x512xbf16>
    %cst_5 = arith.constant dense<0.000000e+00> : vector<8x512xf32>
    %7 = tpu.matmul %5, %6, %cst_5 {dimension_numbers = #tpu.dot_dimension_numbers<[1], [0], [0], [1], [0, 0, 1, 1], [], []>} : vector<8x768xbf16>, vector<768x512xbf16>, vector<8x512xf32> -> vector<8x512xf32>
    %c0_6 = arith.constant 0 : index
    %c0_7 = arith.constant 0 : index
    %8 = vector.load %arg4[%c0_6, %c0_7] : memref<1x512xf32, #tpu.memory_space<vmem>>, vector<1x512xf32>
    %9 = vector.broadcast %8 : vector<1x512xf32> to vector<8x512xf32>
    %10 = arith.addf %7, %9 : vector<8x512xf32>
    %cst_8 = arith.constant 0.000000e+00 : f32
    %11 = vector.broadcast %cst_8 : f32 to vector<8x512xf32>
    %12 = arith.maximumf %10, %11 : vector<8x512xf32>
    %13 = arith.truncf %12 : vector<8x512xf32> to vector<8x512xbf16>
    %c0_9 = arith.constant 0 : index
    %c0_10 = arith.constant 0 : index
    %14 = vector.load %arg5[%c0_9, %c0_10] : memref<512x128xbf16, #tpu.memory_space<vmem>>, vector<512x128xbf16>
    %cst_11 = arith.constant dense<0.000000e+00> : vector<8x128xf32>
    %15 = tpu.matmul %13, %14, %cst_11 {dimension_numbers = #tpu.dot_dimension_numbers<[1], [0], [0], [1], [0, 0, 1, 1], [], []>} : vector<8x512xbf16>, vector<512x128xbf16>, vector<8x128xf32> -> vector<8x128xf32>
    %c0_12 = arith.constant 0 : index
    %c0_13 = arith.constant 0 : index
    %16 = vector.load %arg6[%c0_12, %c0_13] : memref<1x128xf32, #tpu.memory_space<vmem>>, vector<1x128xf32>
    %17 = vector.broadcast %16 : vector<1x128xf32> to vector<8x128xf32>
    %18 = arith.addf %15, %17 : vector<8x128xf32>
    %cst_14 = arith.constant dense<0xFF800000> : vector<8xf32>
    %19 = vector.multi_reduction <maximumf>, %18, %cst_14 [1] : vector<8x128xf32> to vector<8xf32>
    %20 = vector.shape_cast %19 : vector<8xf32> to vector<8x1xf32>
    %21 = vector.broadcast %20 : vector<8x1xf32> to vector<8x128xf32>
    %22 = arith.subf %18, %21 : vector<8x128xf32>
    %23 = math.exp %22 : vector<8x128xf32>
    %cst_15 = arith.constant dense<0.000000e+00> : vector<8xf32>
    %24 = vector.multi_reduction <add>, %23, %cst_15 [1] : vector<8x128xf32> to vector<8xf32>
    %25 = vector.shape_cast %24 : vector<8xf32> to vector<8x1xf32>
    %26 = math.log %25 : vector<8x1xf32>
    %27 = vector.broadcast %26 : vector<8x1xf32> to vector<8x128xf32>
    %28 = arith.subf %22, %27 : vector<8x128xf32>
    %c0_16 = arith.constant 0 : index
    %c0_17 = arith.constant 0 : index
    %29 = vector.load %arg7[%c0_16, %c0_17] : memref<8x128xf32, #tpu.memory_space<vmem>>, vector<8x128xf32>
    tpu.vector_store %arg7[%c0_16, %c0_17], %28 {strides = array<i32>} : memref<8x128xf32, #tpu.memory_space<vmem>>, vector<8x128xf32>,
    return
  }
  func.func @transform_0(%arg0: i32) -> (i32, i32) {
    %c0_i32 = arith.constant 0 : i32
    %c0_i32_0 = arith.constant 0 : i32
    return %arg0, %c0_i32 : i32, i32
  }
  func.func @transform_1(%arg0: i32) -> (i32, i32) {
    %c0_i32 = arith.constant 0 : i32
    %c0_i32_0 = arith.constant 0 : i32
    %c0_i32_1 = arith.constant 0 : i32
    return %c0_i32, %c0_i32_0 : i32, i32
  }
  func.func @transform_2(%arg0: i32) -> (i32, i32) {
    %c0_i32 = arith.constant 0 : i32
    %c0_i32_0 = arith.constant 0 : i32
    %c0_i32_1 = arith.constant 0 : i32
    return %c0_i32, %c0_i32_0 : i32, i32
  }
  func.func @transform_3(%arg0: i32) -> (i32, i32) {
    %c0_i32 = arith.constant 0 : i32
    %c0_i32_0 = arith.constant 0 : i32
    %c0_i32_1 = arith.constant 0 : i32
    return %c0_i32, %c0_i32_0 : i32, i32
  }
  func.func @transform_4(%arg0: i32) -> (i32, i32) {
    %c0_i32 = arith.constant 0 : i32
    %c0_i32_0 = arith.constant 0 : i32
    %c0_i32_1 = arith.constant 0 : i32
    return %c0_i32, %c0_i32_0 : i32, i32
  }
  func.func @transform_5(%arg0: i32) -> (i32, i32) {
    %c0_i32 = arith.constant 0 : i32
    %c0_i32_0 = arith.constant 0 : i32
    %c0_i32_1 = arith.constant 0 : i32
    return %c0_i32, %c0_i32_0 : i32, i32
  }
  func.func @transform_6(%arg0: i32) -> (i32, i32) {
    %c0_i32 = arith.constant 0 : i32
    %c0_i32_0 = arith.constant 0 : i32
    return %arg0, %c0_i32 : i32, i32
  }
}

</mosaic_0001>

<bundles_post_ra>
// kernel: bert_arch_forward.1
= control target key start
LH: loop header
LB: loop body
LE: loop exit
PB: predicated region body
PF: predicated region fallthrough
CT: control target
= control target key end

     0   :  { %11 = vsyncpa [#allocation3], 0  ;;  %s6675_s24 = smov [#allocation2]   ;;  %s6676_s26 = smov 64   ;;  %s9776_s0 = inlined_call_operand.vmem [shape: f32[8,768], index: 0, kind: input, shape index: {}]   ;;  %s9777_s1 = inlined_call_operand.vmem [shape: bf16[768,768], index: 1, kind: input, shape index: {}]   ;;  %s9778_s2 = inlined_call_operand.vmem [shape: bf16[768,512], index: 2, kind: input, shape index: {}]   ;;  %s9779_s3 = inlined_call_operand.vmem [shape: f32[1,512], index: 3, kind: input, shape index: {}]   ;;  %s9780_s4 = inlined_call_operand.hbm [shape: bf16[512,128], index: 4, kind: input, shape index: {}]   ;;  %s9781_s5 = inlined_call_operand.vmem [shape: f32[1,128], index: 5, kind: input, shape index: {}]   ;;  %s9782_s6 = inlined_call_operand.vmem [shape: f32[8,128], index: 6, kind: output, shape index: {}]  }
   0x1   :  { %s24_s23 = sshll.u32 %s9780_s4, 4  ;;  %s26_s25 = sshll.u32 %s6675_s24, 4  ;;  %s25_s23 = int_to_ptr.hbm [resolvable:$true] %s24_s23  ;;  %s27_s25 = int_to_ptr.vmem [resolvable:$true] %s26_s25 }
   0x2   :  { %s6677_s27 = smov 4  }
   0x3   :  { %32 = dma.hbm_to_vmem [thread:$0]  %s25_s23, 4096, %s27_s25, [#allocation3], %s6676_s26, %s6676_s26, %s6677_s27  }
   0x4   :  { %6673 = dma.done.wait [#allocation3], 4096  }
   0x5   :  { %6674 = vsyncadd [#allocation3], 4294963200  ;;  %v4239_v0 = vld [vmem:[%s9777_s1 + $0x150] sm:$0xf]  ;;  %v6162_v1 = vld [vmem:[%s9777_s1 + $0x164] sm:$0xf0] }
   0x6   :  { %v4431_v2 = vld [vmem:[%s9777_s1 + $0x2d0] sm:$0xf]  ;;  %v4240_v3 = vor.u32 %v6162_v1, %v4239_v0  ;;  %v6210_v4 = vld [vmem:[%s9777_s1 + $0x2e4] sm:$0xf0]  ;;  %v4215_v11 = vld [vmem:[%s9777_s1 + $0x120] sm:$0xf] }
   0x7   :  { %v4623_v5 = vld [vmem:[%s9777_s1 + $0x450] sm:$0xf]  ;;  %v6258_v6 = vld [vmem:[%s9777_s1 + $0x464] sm:$0xf0]  ;;  %v4432_v7 = vor.u32 %v6210_v4, %v4431_v2  ;;  %v6156_v13 = vld [vmem:[%s9777_s1 + $0x134] sm:$0xf0] }
   0x8   :  { %v4624_v8 = vor.u32 %v6258_v6, %v4623_v5  ;;  %v4815_v9 = vld [vmem:[%s9777_s1 + $0x5d0] sm:$0xf]  ;;  %v6306_v10 = vld [vmem:[%s9777_s1 + $0x5e4] sm:$0xf0]  ;;  %1779 = vmatpush.bf16.msra.mxu0 %v4240_v3  ;;  %v4407_v14 = vld [vmem:[%s9777_s1 + $0x2a0] sm:$0xf]  ;;  %v4216_v16 = vor.u32 %v6156_v13, %v4215_v11 }
   0x9   :  { %v4816_v12 = vor.u32 %v6306_v10, %v4815_v9  ;;  %v6204_v15 = vld [vmem:[%s9777_s1 + $0x2b4] sm:$0xf0]  ;;  %1792 = vmatpush.bf16.msra.mxu1 %v4432_v7  ;;  %v4599_v18 = vld [vmem:[%s9777_s1 + $0x420] sm:$0xf]  ;;  %v4191_v23 = vld [vmem:[%s9777_s1 + $0xf0] sm:$0xf] }
   0xa   :  { %1805 = vmatpush.bf16.msra.mxu2 %v4624_v8  ;;  %v4408_v17 = vor.u32 %v6204_v15, %v4407_v14  ;;  %v6252_v19 = vld [vmem:[%s9777_s1 + $0x434] sm:$0xf0]  ;;  %v4791_v20 = vld [vmem:[%s9777_s1 + $0x5a0] sm:$0xf]  ;;  %v6150_v24 = vld [vmem:[%s9777_s1 + $0x104] sm:$0xf0] }
   0xb   :  { %1818 = vmatpush.bf16.msra.mxu3 %v4816_v12  ;;  %v4600_v21 = vor.u32 %v6252_v19, %v4599_v18  ;;  %v6300_v22 = vld [vmem:[%s9777_s1 + $0x5b4] sm:$0xf0]  ;;  %v4383_v26 = vld [vmem:[%s9777_s1 + $0x270] sm:$0xf]  ;;  %v6198_v27 = vld [vmem:[%s9777_s1 + $0x284] sm:$0xf0]  ;;  %v4192_v29 = vor.u32 %v6150_v24, %v4191_v23 }
   0xc   :  { %v4792_v25 = vor.u32 %v6300_v22, %v4791_v20  ;;  %v4575_v28 = vld [vmem:[%s9777_s1 + $0x3f0] sm:$0xf]  ;;  %1780 = vmatpush.bf16.msra.mxu0 %v4216_v16  ;;  %v6246_v30 = vld [vmem:[%s9777_s1 + $0x404] sm:$0xf0]  ;;  %v4384_v33 = vor.u32 %v6198_v27, %v4383_v26  ;;  %v4167_v35 = vld [vmem:[%s9777_s1 + $0xc0] sm:$0xf] }
   0xd   :  { %v4767_v31 = vld [vmem:[%s9777_s1 + $0x570] sm:$0xf]  ;;  %v6294_v32 = vld [vmem:[%s9777_s1 + $0x584] sm:$0xf0]  ;;  %1793 = vmatpush.bf16.msra.mxu1 %v4408_v17  ;;  %v4576_v34 = vor.u32 %v6246_v30, %v4575_v28  ;;  %v6144_v36 = vld [vmem:[%s9777_s1 + $0xd4] sm:$0xf0] }
   0xe   :  { %1806 = vmatpush.bf16.msra.mxu2 %v4600_v21  ;;  %v4359_v37 = vld [vmem:[%s9777_s1 + $0x240] sm:$0xf]  ;;  %v4768_v38 = vor.u32 %v6294_v32, %v4767_v31  ;;  %v6192_v39 = vld [vmem:[%s9777_s1 + $0x254] sm:$0xf0]  ;;  %v4168_v44 = vor.u32 %v6144_v36, %v4167_v35  ;;  %v4143_v47 = vld [vmem:[%s9777_s1 + $0x90] sm:$0xf] }
   0xf   :  { %1819 = vmatpush.bf16.msra.mxu3 %v4792_v25  ;;  %v4551_v40 = vld [vmem:[%s9777_s1 + $0x3c0] sm:$0xf]  ;;  %v6240_v41 = vld [vmem:[%s9777_s1 + $0x3d4] sm:$0xf0]  ;;  %v4360_v45 = vor.u32 %v6192_v39, %v4359_v37  ;;  %v6138_v48 = vld [vmem:[%s9777_s1 + $0xa4] sm:$0xf0] }
  0x10   :  { %v4743_v42 = vld [vmem:[%s9777_s1 + $0x540] sm:$0xf]  ;;  %v6288_v43 = vld [vmem:[%s9777_s1 + $0x554] sm:$0xf0]  ;;  %1781 = vmatpush.bf16.msra.mxu0 %v4192_v29  ;;  %v4552_v46 = vor.u32 %v6240_v41, %v4551_v40  ;;  %v4335_v49 = vld [vmem:[%s9777_s1 + $0x210] sm:$0xf]  ;;  %v4144_v56 = vor.u32 %v6138_v48, %v4143_v47 }
  0x11   :  { %1794 = vmatpush.bf16.msra.mxu1 %v4384_v33  ;;  %v4744_v50 = vor.u32 %v6288_v43, %v4743_v42  ;;  %v6186_v51 = vld [vmem:[%s9777_s1 + $0x224] sm:$0xf0]  ;;  %v4527_v52 = vld [vmem:[%s9777_s1 + $0x390] sm:$0xf]  ;;  %v4119_v59 = vld [vmem:[%s9777_s1 + $0x60] sm:$0xf] }
  0x12   :  { %1807 = vmatpush.bf16.msra.mxu2 %v4576_v34  ;;  %v6234_v53 = vld [vmem:[%s9777_s1 + $0x3a4] sm:$0xf0]  ;;  %v4719_v54 = vld [vmem:[%s9777_s1 + $0x510] sm:$0xf]  ;;  %v4336_v57 = vor.u32 %v6186_v51, %v4335_v49  ;;  %v6132_v60 = vld [vmem:[%s9777_s1 + $0x74] sm:$0xf0] }
  0x13   :  { %1820 = vmatpush.bf16.msra.mxu3 %v4768_v38  ;;  %v6282_v55 = vld [vmem:[%s9777_s1 + $0x524] sm:$0xf0]  ;;  %v4528_v58 = vor.u32 %v6234_v53, %v4527_v52  ;;  %v4311_v61 = vld [vmem:[%s9777_s1 + $0x1e0] sm:$0xf]  ;;  %v6180_v63 = vld [vmem:[%s9777_s1 + $0x1f4] sm:$0xf0]  ;;  %v4120_v4 = vor.u32 %v6132_v60, %v4119_v59 }
  0x14   :  { %1782 = vmatpush.bf16.msra.mxu0 %v4168_v44  ;;  %v4720_v62 = vor.u32 %v6282_v55, %v4719_v54  ;;  %v4503_v0 = vld [vmem:[%s9777_s1 + $0x360] sm:$0xf]  ;;  %v6228_v1 = vld [vmem:[%s9777_s1 + $0x374] sm:$0xf0]  ;;  %v4312_v5 = vor.u32 %v6180_v63, %v4311_v61  ;;  %v4095_v7 = vld [vmem:[%s9777_s1 + $0x30] sm:$0xf] }
  0x15   :  { %1795 = vmatpush.bf16.msra.mxu1 %v4360_v45  ;;  %v4695_v2 = vld [vmem:[%s9777_s1 + $0x4e0] sm:$0xf]  ;;  %v6276_v3 = vld [vmem:[%s9777_s1 + $0x4f4] sm:$0xf0]  ;;  %v4504_v6 = vor.u32 %v6228_v1, %v4503_v0  ;;  %v6126_v8 = vld [vmem:[%s9777_s1 + $0x44] sm:$0xf0] }
  0x16   :  { %1808 = vmatpush.bf16.msra.mxu2 %v4552_v46  ;;  %v4287_v9 = vld [vmem:[%s9777_s1 + $0x1b0] sm:$0xf]  ;;  %v4696_v10 = vor.u32 %v6276_v3, %v4695_v2  ;;  %v6174_v11 = vld [vmem:[%s9777_s1 + $0x1c4] sm:$0xf0]  ;;  %v4096_v16 = vor.u32 %v6126_v8, %v4095_v7  ;;  %v4071_v17 = vld [vmem:[%s9777_s1] sm:$0xf] }
  0x17   :  { %1821 = vmatpush.bf16.msra.mxu3 %v4744_v50  ;;  %v4479_v12 = vld [vmem:[%s9777_s1 + $0x330] sm:$0xf]  ;;  %v6222_v13 = vld [vmem:[%s9777_s1 + $0x344] sm:$0xf0]  ;;  %v6120_v18 = vld [vmem:[%s9777_s1 + $0x14] sm:$0xf0]  ;;  %v4288_v19 = vor.u32 %v6174_v11, %v4287_v9 }
  0x18   :  { %1783 = vmatpush.bf16.msra.mxu0 %v4144_v56  ;;  %v4671_v14 = vld [vmem:[%s9777_s1 + $0x4b0] sm:$0xf]  ;;  %v6270_v15 = vld [vmem:[%s9777_s1 + $0x4c4] sm:$0xf0]  ;;  %v4480_v20 = vor.u32 %v6222_v13, %v4479_v12  ;;  %v4263_v21 = vld [vmem:[%s9777_s1 + $0x180] sm:$0xf]  ;;  %v4072_v31 = vor.u32 %v6120_v18, %v4071_v17 }
  0x19   :  { %1796 = vmatpush.bf16.msra.mxu1 %v4336_v57  ;;  %v6168_v22 = vld [vmem:[%s9777_s1 + $0x194] sm:$0xf0]  ;;  %v4455_v23 = vld [vmem:[%s9777_s1 + $0x300] sm:$0xf]  ;;  %v4672_v24 = vor.u32 %v6270_v15, %v4671_v14  ;;  %v5007_v28 = vld [vmem:[%s9777_s1 + $0x750] sm:$0xf] }
  0x1a   :  { %1809 = vmatpush.bf16.msra.mxu2 %v4528_v58  ;;  %v6216_v25 = vld [vmem:[%s9777_s1 + $0x314] sm:$0xf0]  ;;  %v4647_v26 = vld [vmem:[%s9777_s1 + $0x480] sm:$0xf]  ;;  %v6354_v29 = vld [vmem:[%s9777_s1 + $0x764] sm:$0xf0]  ;;  %v4264_v35 = vor.u32 %v6168_v22, %v4263_v21 }
  0x1b   :  { %1822 = vmatpush.bf16.msra.mxu3 %v4720_v62  ;;  %v6264_v27 = vld [vmem:[%s9777_s1 + $0x494] sm:$0xf0]  ;;  %v5199_v30 = vld [vmem:[%s9777_s1 + $0x8d0] sm:$0xf]  ;;  %v6402_v32 = vld [vmem:[%s9777_s1 + $0x8e4] sm:$0xf0]  ;;  %v4456_v36 = vor.u32 %v6216_v25, %v4455_v23  ;;  %v5008_v40 = vor.u32 %v6354_v29, %v5007_v28 }
  0x1c   :  { %1784 = vmatpush.bf16.msra.mxu0 %v4120_v4  ;;  %v6159_v33 = vld [vmem:[%s9777_s1 + $0x154] sm:$0xf]  ;;  %v4241_v34 = vld [vmem:[%s9777_s1 + $0x168] sm:$0xf0]  ;;  %v4648_v39 = vor.u32 %v6264_v27, %v4647_v26  ;;  %v5200_v41 = vor.u32 %v6402_v32, %v5199_v30  ;;  %v4983_v43 = vld [vmem:[%s9777_s1 + $0x720] sm:$0xf] }
  0x1d   :  { %1797 = vmatpush.bf16.msra.mxu1 %v4312_v5  ;;  %v6207_v37 = vld [vmem:[%s9777_s1 + $0x2d4] sm:$0xf]  ;;  %v4433_v38 = vld [vmem:[%s9777_s1 + $0x2e8] sm:$0xf0]  ;;  %v4244_v42 = vor.u32 %v6159_v33, %v4241_v34  ;;  %v6348_v44 = vld [vmem:[%s9777_s1 + $0x734] sm:$0xf0] }
  0x1e   :  { %1810 = vmatpush.bf16.msra.mxu2 %v4504_v6  ;;  %v5175_v45 = vld [vmem:[%s9777_s1 + $0x8a0] sm:$0xf]  ;;  %v4436_v46 = vor.u32 %v6207_v37, %v4433_v38  ;;  %v6396_v47 = vld [vmem:[%s9777_s1 + $0x8b4] sm:$0xf0]  ;;  %v6153_v48 = vld [vmem:[%s9777_s1 + $0x124] sm:$0xf]  ;;  %v4984_v52 = vor.u32 %v6348_v44, %v4983_v43 }
  0x1f   :  { %1823 = vmatpush.bf16.msra.mxu3 %v4696_v10  ;;  %v4217_v49 = vld [vmem:[%s9777_s1 + $0x138] sm:$0xf0]  ;;  %v6201_v50 = vld [vmem:[%s9777_s1 + $0x2a4] sm:$0xf]  ;;  %v4959_v53 = vld [vmem:[%s9777_s1 + $0x6f0] sm:$0xf]  ;;  %v5176_v54 = vor.u32 %v6396_v47, %v5175_v45 }
  0x20   :  { %1785 = vmatpush.bf16.msra.mxu0 %v4096_v16  ;;  %v4409_v51 = vld [vmem:[%s9777_s1 + $0x2b8] sm:$0xf0]  ;;  %v4220_v55 = vor.u32 %v6153_v48, %v4217_v49  ;;  %v6342_v56 = vld [vmem:[%s9777_s1 + $0x704] sm:$0xf0]  ;;  %v5151_v57 = vld [vmem:[%s9777_s1 + $0x870] sm:$0xf] }
  0x21   :  { %1798 = vmatpush.bf16.msra.mxu1 %v4288_v19  ;;  %v6390_v58 = vld [vmem:[%s9777_s1 + $0x884] sm:$0xf0]  ;;  %v4412_v59 = vor.u32 %v6201_v50, %v4409_v51  ;;  %v6147_v60 = vld [vmem:[%s9777_s1 + $0xf4] sm:$0xf]  ;;  %v4193_v61 = vld [vmem:[%s9777_s1 + $0x108] sm:$0xf0]  ;;  %v4960_v1 = vor.u32 %v6342_v56, %v4959_v53 }
  0x22   :  { %1811 = vmatpush.bf16.msra.mxu2 %v4480_v20  ;;  %v6195_v62 = vld [vmem:[%s9777_s1 + $0x274] sm:$0xf]  ;;  %v4385_v63 = vld [vmem:[%s9777_s1 + $0x288] sm:$0xf0]  ;;  %v4935_v0 = vld [vmem:[%s9777_s1 + $0x6c0] sm:$0xf]  ;;  %v5152_v2 = vor.u32 %v6390_v58, %v5151_v57  ;;  %v4196_v6 = vor.u32 %v6147_v60, %v4193_v61 }
  0x23   :  { %1824 = vmatpush.bf16.msra.mxu3 %v4672_v24  ;;  %v6336_v3 = vld [vmem:[%s9777_s1 + $0x6d4] sm:$0xf0]  ;;  %v39_v4 = vld [vmem:[%s9776_s0] sm:$0xff]  ;;  %v41_v5 = vld [vmem:[%s9776_s0 + $0x10] sm:$0xff]  ;;  %v4388_v12 = vor.u32 %v6195_v62, %v4385_v63 }
  0x24   :  { %1786 = vmatpush.bf16.msra.mxu0 %v4072_v31  ;;  %v5127_v7 = vld [vmem:[%s9777_s1 + $0x840] sm:$0xf]  ;;  %v6995_v8 = vpack.c.bf16 %v39_v4, %v39_v4  ;;  %v6997_v9 = vpack.c.bf16 %v41_v5, %v41_v5  ;;  %v40_v10 = vld [vmem:[%s9776_s0 + $0x8] sm:$0xff]  ;;  %v42_v11 = vld [vmem:[%s9776_s0 + $0x18] sm:$0xff]  ;;  %v4936_v20 = vor.u32 %v6336_v3, %v4935_v0 }
  0x25   :  { %1799 = vmatpush.bf16.msra.mxu1 %v4264_v35  ;;  %v6384_v13 = vld [vmem:[%s9777_s1 + $0x854] sm:$0xf0]  ;;  %v6141_v14 = vld [vmem:[%s9777_s1 + $0xc4] sm:$0xf]  ;;  %v4169_v15 = vld [vmem:[%s9777_s1 + $0xd8] sm:$0xf0]  ;;  %v7014_v16 = vpack.c.bf16 %v40_v10, %v40_v10  ;;  %v7024_v19 = vpack.c.bf16 %v42_v11, %v42_v11 }
  0x26   :  { %1812 = vmatpush.bf16.msra.mxu2 %v4456_v36  ;;  %v6189_v17 = vld [vmem:[%s9777_s1 + $0x244] sm:$0xf]  ;;  %v4361_v18 = vld [vmem:[%s9777_s1 + $0x258] sm:$0xf0]  ;;  %v5128_v21 = vor.u32 %v6384_v13, %v5127_v7  ;;  %v4172_v22 = vor.u32 %v6141_v14, %v4169_v15  ;;  %v4911_v23 = vld [vmem:[%s9777_s1 + $0x690] sm:$0xf] }
  0x27   :  { %1825 = vmatpush.bf16.msra.mxu3 %v4648_v39  ;;  %1787 = vmatmul.bf16.vlgmr.msra.gmra.mxu0 %v6995_v8  ;;  %v6330_v24 = vld [vmem:[%s9777_s1 + $0x6a4] sm:$0xf0]  ;;  %v5103_v25 = vld [vmem:[%s9777_s1 + $0x810] sm:$0xf]  ;;  %v4364_v26 = vor.u32 %v6189_v17, %v4361_v18  ;;  %v6135_v28 = vld [vmem:[%s9777_s1 + $0x94] sm:$0xf] }
  0x28   :  { %1831 = vmatpush.bf16.msrb.mxu0 %v5008_v40  ;;  %1800 = vmatmul.bf16.vlgmr.msra.gmra.mxu1 %v7014_v16  ;;  %v6378_v27 = vld [vmem:[%s9777_s1 + $0x824] sm:$0xf0]  ;;  %v4145_v29 = vld [vmem:[%s9777_s1 + $0xa8] sm:$0xf0]  ;;  %v6183_v30 = vld [vmem:[%s9777_s1 + $0x214] sm:$0xf]  ;;  %v4912_v32 = vor.u32 %v6330_v24, %v4911_v23 }
  0x29   :  { %1844 = vmatpush.bf16.msrb.mxu1 %v5200_v41  ;;  %1813 = vmatmul.bf16.vlgmr.msra.gmra.mxu2 %v6997_v9  ;;  %v4337_v31 = vld [vmem:[%s9777_s1 + $0x228] sm:$0xf0]  ;;  %v5104_v33 = vor.u32 %v6378_v27, %v5103_v25  ;;  %v4148_v34 = vor.u32 %v6135_v28, %v4145_v29  ;;  %v4887_v35 = vld [vmem:[%s9777_s1 + $0x660] sm:$0xf]  ;;  %v6324_v36 = vld [vmem:[%s9777_s1 + $0x674] sm:$0xf0] }
  0x2a   :  { %1857 = vmatpush.bf16.msrb.mxu2 %v4244_v42  ;;  %1826 = vmatmul.bf16.vlgmr.msra.gmra.mxu3 %v7024_v19  ;;  %v5079_v37 = vld [vmem:[%s9777_s1 + $0x7e0] sm:$0xf]  ;;  %v4340_v38 = vor.u32 %v6183_v30, %v4337_v31  ;;  %v6372_v39 = vld [vmem:[%s9777_s1 + $0x7f4] sm:$0xf0]  ;;  %v6129_v40 = vld [vmem:[%s9777_s1 + $0x64] sm:$0xf]  ;;  %v4888_v44 = vor.u32 %v6324_v36, %v4887_v35 }
  0x2b   :  { %1870 = vmatpush.bf16.msrb.mxu3 %v4436_v46  ;;  %v4121_v41 = vld [vmem:[%s9777_s1 + $0x78] sm:$0xf0]  ;;  %v6177_v42 = vld [vmem:[%s9777_s1 + $0x1e4] sm:$0xf]  ;;  %v5080_v45 = vor.u32 %v6372_v39, %v5079_v37  ;;  %v4863_v47 = vld [vmem:[%s9777_s1 + $0x630] sm:$0xf] }
  0x2c   :  { %1832 = vmatpush.bf16.msrb.mxu0 %v4984_v52  ;;  %v4313_v43 = vld [vmem:[%s9777_s1 + $0x1f8] sm:$0xf0]  ;;  %v4124_v46 = vor.u32 %v6129_v40, %v4121_v41  ;;  %v6318_v48 = vld [vmem:[%s9777_s1 + $0x644] sm:$0xf0]  ;;  %v5055_v49 = vld [vmem:[%s9777_s1 + $0x7b0] sm:$0xf] }
  0x2d   :  { %1845 = vmatpush.bf16.msrb.mxu1 %v5176_v54  ;;  %v4316_v50 = vor.u32 %v6177_v42, %v4313_v43  ;;  %v6366_v51 = vld [vmem:[%s9777_s1 + $0x7c4] sm:$0xf0]  ;;  %v6123_v52 = vld [vmem:[%s9777_s1 + $0x34] sm:$0xf]  ;;  %v4097_v53 = vld [vmem:[%s9777_s1 + $0x48] sm:$0xf0]  ;;  %v4864_v56 = vor.u32 %v6318_v48, %v4863_v47 }
  0x2e   :  { %1858 = vmatpush.bf16.msrb.mxu2 %v4220_v55  ;;  %v6171_v54 = vld [vmem:[%s9777_s1 + $0x1b4] sm:$0xf]  ;;  %v4289_v55 = vld [vmem:[%s9777_s1 + $0x1c8] sm:$0xf0]  ;;  %v4839_v57 = vld [vmem:[%s9777_s1 + $0x600] sm:$0xf]  ;;  %v4100_v60 = vor.u32 %v6123_v52, %v4097_v53 }
  0x2f   :  { %1871 = vmatpush.bf16.msrb.mxu3 %v4412_v59  ;;  %v6312_v58 = vld [vmem:[%s9777_s1 + $0x614] sm:$0xf0]  ;;  %v5056_v59 = vor.u32 %v6366_v51, %v5055_v49  ;;  %v5031_v61 = vld [vmem:[%s9777_s1 + $0x780] sm:$0xf]  ;;  %v6117_v63 = vld [vmem:[%s9777_s1 + $0x4] sm:$0xf]  ;;  %v4292_v0 = vor.u32 %v6171_v54, %v4289_v55 }
  0x30   :  { %1833 = vmatpush.bf16.msrb.mxu0 %v4960_v1  ;;  %v6360_v62 = vld [vmem:[%s9777_s1 + $0x794] sm:$0xf0]  ;;  %v4073_v1 = vld [vmem:[%s9777_s1 + $0x18] sm:$0xf0]  ;;  %v6255_v4 = vld [vmem:[%s9777_s1 + $0x454] sm:$0xf]  ;;  %v4840_v7 = vor.u32 %v6312_v58, %v4839_v57 }
  0x31   :  { %1846 = vmatpush.bf16.msrb.mxu1 %v5152_v2  ;;  %v6165_v2 = vld [vmem:[%s9777_s1 + $0x184] sm:$0xf]  ;;  %v4265_v3 = vld [vmem:[%s9777_s1 + $0x198] sm:$0xf0]  ;;  %v4625_v5 = vld [vmem:[%s9777_s1 + $0x468] sm:$0xf0]  ;;  %v5032_v13 = vor.u32 %v6360_v62, %v5031_v61  ;;  %v4076_v14 = vor.u32 %v6117_v63, %v4073_v1 }
  0x32   :  { %1859 = vmatpush.bf16.msrb.mxu2 %v4196_v6  ;;  %v6303_v6 = vld [vmem:[%s9777_s1 + $0x5d4] sm:$0xf]  ;;  %v4817_v10 = vld [vmem:[%s9777_s1 + $0x5e8] sm:$0xf0]  ;;  %v43_v18 = vld [vmem:[%s9776_s0 + $0x20] sm:$0xff] }
  0x33   :  { %1872 = vmatpush.bf16.msrb.mxu3 %v4388_v12  ;;  %v6351_v11 = vld [vmem:[%s9777_s1 + $0x754] sm:$0xf]  ;;  %v5009_v12 = vld [vmem:[%s9777_s1 + $0x768] sm:$0xf0]  ;;  %v4820_v23 = vor.u32 %v6303_v6, %v4817_v10  ;;  %v6249_v25 = vld [vmem:[%s9777_s1 + $0x424] sm:$0xf] }
  0x34   :  { %1834 = vmatpush.bf16.msrb.mxu0 %v4936_v20  ;;  %v6399_v15 = vld [vmem:[%s9777_s1 + $0x8d4] sm:$0xf]  ;;  %v5201_v17 = vld [vmem:[%s9777_s1 + $0x8e8] sm:$0xf0]  ;;  %v4268_v20 = vor.u32 %v6165_v2, %v4265_v3  ;;  %v5012_v24 = vor.u32 %v6351_v11, %v5009_v12  ;;  %v6297_v27 = vld [vmem:[%s9777_s1 + $0x5a4] sm:$0xf] }
  0x35   :  { %1847 = vmatpush.bf16.msrb.mxu1 %v5128_v21  ;;  %v4628_v21 = vor.u32 %v6255_v4, %v4625_v5  ;;  %v5204_v28 = vor.u32 %v6399_v15, %v5201_v17  ;;  %v4793_v29 = vld [vmem:[%s9777_s1 + $0x5b8] sm:$0xf0]  ;;  %v6345_v30 = vld [vmem:[%s9777_s1 + $0x724] sm:$0xf]  ;;  %v6243_v39 = vld [vmem:[%s9777_s1 + $0x3f4] sm:$0xf] }
  0x36   :  { %1860 = vmatpush.bf16.msrb.mxu2 %v4172_v22  ;;  %v44_v22 = vld [vmem:[%s9776_s0 + $0x28] sm:$0xff]  ;;  %v4985_v31 = vld [vmem:[%s9777_s1 + $0x738] sm:$0xf0]  ;;  %v4796_v37 = vor.u32 %v6297_v27, %v4793_v29  ;;  %v6291_v41 = vld [vmem:[%s9777_s1 + $0x574] sm:$0xf] }
  0x37   :  { %1873 = vmatpush.bf16.msrb.mxu3 %v4364_v26  ;;  %v4601_v26 = vld [vmem:[%s9777_s1 + $0x438] sm:$0xf0]  ;;  %v7180_v35 = vpack.c.bf16 %v44_v22, %v44_v22  ;;  %v4577_v40 = vld [vmem:[%s9777_s1 + $0x408] sm:$0xf0]  ;;  %v6237_v51 = vld [vmem:[%s9777_s1 + $0x3c4] sm:$0xf] }
  0x38   :  { %1835 = vmatpush.bf16.msrb.mxu0 %v4912_v32  ;;  %v7172_v32 = vpack.c.bf16 %v43_v18, %v43_v18  ;;  %v4604_v36 = vor.u32 %v6249_v25, %v4601_v26  ;;  %v4769_v43 = vld [vmem:[%s9777_s1 + $0x588] sm:$0xf0]  ;;  %v4580_v48 = vor.u32 %v6243_v39, %v4577_v40  ;;  %v4553_v52 = vld [vmem:[%s9777_s1 + $0x3d8] sm:$0xf0]  ;;  %v6285_v53 = vld [vmem:[%s9777_s1 + $0x544] sm:$0xf] }
  0x39   :  { %1848 = vmatpush.bf16.msrb.mxu1 %v5104_v33  ;;  %v6393_v33 = vld [vmem:[%s9777_s1 + $0x8a4] sm:$0xf]  ;;  %v5153_v47 = vld [vmem:[%s9777_s1 + $0x888] sm:$0xf0]  ;;  %v4772_v49 = vor.u32 %v6291_v41, %v4769_v43  ;;  %v4745_v55 = vld [vmem:[%s9777_s1 + $0x558] sm:$0xf0] }
  0x3a   :  { %1861 = vmatpush.bf16.msrb.mxu2 %v4148_v34  ;;  %v5177_v34 = vld [vmem:[%s9777_s1 + $0x8b8] sm:$0xf0]  ;;  %v6381_v58 = vld [vmem:[%s9777_s1 + $0x844] sm:$0xf]  ;;  %v4748_v61 = vor.u32 %v6285_v53, %v4745_v55  ;;  %v6231_v63 = vld [vmem:[%s9777_s1 + $0x394] sm:$0xf] }
  0x3b   :  { %1874 = vmatpush.bf16.msrb.mxu3 %v4340_v38  ;;  %v4988_v38 = vor.u32 %v6345_v30, %v4985_v31  ;;  %v5180_v42 = vor.u32 %v6393_v33, %v5177_v34  ;;  %v4937_v57 = vld [vmem:[%s9777_s1 + $0x6d8] sm:$0xf0]  ;;  %v6279_v1 = vld [vmem:[%s9777_s1 + $0x514] sm:$0xf]  ;;  %v4721_v3 = vld [vmem:[%s9777_s1 + $0x528] sm:$0xf0] }
  0x3c   :  { %1836 = vmatpush.bf16.msrb.mxu0 %v4888_v44  ;;  %v6339_v44 = vld [vmem:[%s9777_s1 + $0x6f4] sm:$0xf]  ;;  %v4913_v5 = vld [vmem:[%s9777_s1 + $0x6a8] sm:$0xf0]  ;;  %v4724_v11 = vor.u32 %v6279_v1, %v4721_v3  ;;  %v6273_v15 = vld [vmem:[%s9777_s1 + $0x4e4] sm:$0xf] }
  0x3d   :  { %1849 = vmatpush.bf16.msrb.mxu1 %v5080_v45  ;;  %v4961_v45 = vld [vmem:[%s9777_s1 + $0x708] sm:$0xf0]  ;;  %v6327_v4 = vld [vmem:[%s9777_s1 + $0x694] sm:$0xf]  ;;  %v4697_v18 = vld [vmem:[%s9777_s1 + $0x4f8] sm:$0xf0] }
  0x3e   :  { %1862 = vmatpush.bf16.msrb.mxu2 %v4124_v46  ;;  %v6387_v46 = vld [vmem:[%s9777_s1 + $0x874] sm:$0xf]  ;;  %v4916_v12 = vor.u32 %v6327_v4, %v4913_v5  ;;  %v6369_v22 = vld [vmem:[%s9777_s1 + $0x7e4] sm:$0xf]  ;;  %v4700_v25 = vor.u32 %v6273_v15, %v4697_v18  ;;  %v4673_v31 = vld [vmem:[%s9777_s1 + $0x4c8] sm:$0xf0] }
  0x3f   :  { %1875 = vmatpush.bf16.msrb.mxu3 %v4316_v50  ;;  %v4964_v50 = vor.u32 %v6339_v44, %v4961_v45  ;;  %v5156_v54 = vor.u32 %v6387_v46, %v5153_v47  ;;  %v6375_v6 = vld [vmem:[%s9777_s1 + $0x814] sm:$0xf]  ;;  %v4865_v34 = vld [vmem:[%s9777_s1 + $0x648] sm:$0xf0]  ;;  %v6213_v39 = vld [vmem:[%s9777_s1 + $0x304] sm:$0xf] }
  0x40   :  { %1837 = vmatpush.bf16.msrb.mxu0 %v4864_v56  ;;  %v6333_v56 = vld [vmem:[%s9777_s1 + $0x6c4] sm:$0xf]  ;;  %v6219_v27 = vld [vmem:[%s9777_s1 + $0x334] sm:$0xf]  ;;  %v4457_v40 = vld [vmem:[%s9777_s1 + $0x318] sm:$0xf0] }
  0x41   :  { %1850 = vmatpush.bf16.msrb.mxu1 %v5056_v59  ;;  %v5129_v59 = vld [vmem:[%s9777_s1 + $0x858] sm:$0xf0]  ;;  %v4940_v62 = vor.u32 %v6333_v56, %v4937_v57  ;;  %v6267_v29 = vld [vmem:[%s9777_s1 + $0x4b4] sm:$0xf]  ;;  %v6261_v43 = vld [vmem:[%s9777_s1 + $0x484] sm:$0xf]  ;;  %v4460_v53 = vor.u32 %v6213_v39, %v4457_v40 }
  0x42   :  { %1863 = vmatpush.bf16.msrb.mxu2 %v4100_v60  ;;  %v4556_v60 = vor.u32 %v6237_v51, %v4553_v52  ;;  %v5132_v2 = vor.u32 %v6381_v58, %v5129_v59  ;;  %v6315_v33 = vld [vmem:[%s9777_s1 + $0x634] sm:$0xf]  ;;  %v4676_v41 = vor.u32 %v6267_v29, %v4673_v31  ;;  %v4649_v44 = vld [vmem:[%s9777_s1 + $0x498] sm:$0xf0]  ;;  %v6309_v45 = vld [vmem:[%s9777_s1 + $0x604] sm:$0xf] }
  0x43   :  { %1876 = vmatpush.bf16.msrb.mxu3 %v4292_v0  ;;  %v4529_v0 = vld [vmem:[%s9777_s1 + $0x3a8] sm:$0xf0]  ;;  %v4841_v47 = vld [vmem:[%s9777_s1 + $0x618] sm:$0xf0]  ;;  %v6163_v51 = vld [vmem:[%s9777_s1 + $0x16c] sm:$0xf0]  ;;  %v4652_v57 = vor.u32 %v6261_v43, %v4649_v44 }
  0x44   :  { %1838 = vmatpush.bf16.msrb.mxu0 %v4840_v7  ;;  %v5105_v7 = vld [vmem:[%s9777_s1 + $0x828] sm:$0xf0]  ;;  %v4532_v10 = vor.u32 %v6231_v63, %v4529_v0  ;;  %v4439_v52 = vld [vmem:[%s9777_s1 + $0x2d8] sm:$0xf]  ;;  %v6259_v56 = vld [vmem:[%s9777_s1 + $0x46c] sm:$0xf0]  ;;  %v4844_v58 = vor.u32 %v6309_v45, %v4841_v47 }
  0x45   :  { %1851 = vmatpush.bf16.msrb.mxu1 %v5032_v13  ;;  %v6225_v13 = vld [vmem:[%s9777_s1 + $0x364] sm:$0xf]  ;;  %v5108_v17 = vor.u32 %v6375_v6, %v5105_v7  ;;  %v4631_v55 = vld [vmem:[%s9777_s1 + $0x458] sm:$0xf]  ;;  %v4223_v1 = vld [vmem:[%s9777_s1 + $0x128] sm:$0xf] }
  0x46   :  { %1864 = vmatpush.bf16.msrb.mxu2 %v4076_v14  ;;  %v4505_v14 = vld [vmem:[%s9777_s1 + $0x378] sm:$0xf0]  ;;  %v4823_v59 = vld [vmem:[%s9777_s1 + $0x5d8] sm:$0xf]  ;;  %v4632_v0 = vor.u32 %v6259_v56, %v4631_v55  ;;  %v4415_v3 = vld [vmem:[%s9777_s1 + $0x2a8] sm:$0xf] }
  0x47   :  { %1877 = vmatpush.bf16.msrb.mxu3 %v4268_v20  ;;  %1839 = vmatmul.bf16.vlgmr.msrb.gmra.mxu0 %v7172_v32  ;;  %v6321_v20 = vld [vmem:[%s9777_s1 + $0x664] sm:$0xf]  ;;  %v6205_v5 = vld [vmem:[%s9777_s1 + $0x2bc] sm:$0xf0]  ;;  %v4607_v6 = vld [vmem:[%s9777_s1 + $0x428] sm:$0xf] }
  0x48   :  { %1883 = vmatpush.bf16.msra.mxu0 %v4628_v21  ;;  %1852 = vmatmul.bf16.vlgmr.msrb.gmra.mxu1 %v7180_v35  ;;  %v4889_v21 = vld [vmem:[%s9777_s1 + $0x678] sm:$0xf0]  ;;  %v6253_v7 = vld [vmem:[%s9777_s1 + $0x43c] sm:$0xf0]  ;;  %v4199_v15 = vld [vmem:[%s9777_s1 + $0xf8] sm:$0xf] }
  0x49   :  { %1896 = vmatpush.bf16.msra.mxu1 %v4820_v23  ;;  %1865 = vmatmul.bf16.vlgmr.msrb.gmra.mxu2 %v6995_v8  ;;  %v5081_v23 = vld [vmem:[%s9777_s1 + $0x7f8] sm:$0xf0]  ;;  %v4892_v26 = vor.u32 %v6321_v20, %v4889_v21  ;;  %v4391_v18 = vld [vmem:[%s9777_s1 + $0x278] sm:$0xf]  ;;  %v6199_v21 = vld [vmem:[%s9777_s1 + $0x28c] sm:$0xf0] }
  0x4a   :  { %1909 = vmatpush.bf16.msra.mxu2 %v5012_v24  ;;  %1878 = vmatmul.bf16.vlgmr.msrb.gmra.mxu3 %v7014_v16  ;;  %v4508_v24 = vor.u32 %v6225_v13, %v4505_v14  ;;  %v5084_v30 = vor.u32 %v6369_v22, %v5081_v23  ;;  %v4416_v13 = vor.u32 %v6205_v5, %v4415_v3  ;;  %v4583_v22 = vld [vmem:[%s9777_s1 + $0x3f8] sm:$0xf]  ;;  %v6247_v23 = vld [vmem:[%s9777_s1 + $0x40c] sm:$0xf0]  ;;  %v4175_v29 = vld [vmem:[%s9777_s1 + $0xc8] sm:$0xf] }
  0x4b   :  { %1922 = vmatpush.bf16.msra.mxu3 %v5204_v28  ;;  %v4481_v28 = vld [vmem:[%s9777_s1 + $0x348] sm:$0xf0]  ;;  %v4608_v14 = vor.u32 %v6253_v7, %v4607_v6  ;;  %v4367_v31 = vld [vmem:[%s9777_s1 + $0x248] sm:$0xf]  ;;  %v6289_v39 = vld [vmem:[%s9777_s1 + $0x55c] sm:$0xf0] }
  0x4c   :  { %1884 = vmatpush.bf16.msra.mxu0 %v4604_v36  ;;  %v6363_v36 = vld [vmem:[%s9777_s1 + $0x7b4] sm:$0xf]  ;;  %v4151_v43 = vld [vmem:[%s9777_s1 + $0x98] sm:$0xf]  ;;  %v6139_v44 = vld [vmem:[%s9777_s1 + $0xac] sm:$0xf0] }
  0x4d   :  { %1897 = vmatpush.bf16.msra.mxu1 %v4796_v37  ;;  %v5057_v37 = vld [vmem:[%s9777_s1 + $0x7c8] sm:$0xf0]  ;;  %v4343_v45 = vld [vmem:[%s9777_s1 + $0x218] sm:$0xf]  ;;  %v6187_v47 = vld [vmem:[%s9777_s1 + $0x22c] sm:$0xf0] }
  0x4e   :  { %1910 = vmatpush.bf16.msra.mxu2 %v4988_v38  ;;  %v4484_v38 = vor.u32 %v6219_v27, %v4481_v28  ;;  %v5060_v46 = vor.u32 %v6363_v36, %v5057_v37  ;;  %v4392_v27 = vor.u32 %v6199_v21, %v4391_v18  ;;  %v4584_v28 = vor.u32 %v6247_v23, %v4583_v22  ;;  %v4559_v36 = vld [vmem:[%s9777_s1 + $0x3c8] sm:$0xf]  ;;  %v6241_v37 = vld [vmem:[%s9777_s1 + $0x3dc] sm:$0xf0]  ;;  %v4103_v3 = vld [vmem:[%s9777_s1 + $0x38] sm:$0xf] }
  0x4f   :  { %1923 = vmatpush.bf16.msra.mxu3 %v5180_v42  ;;  %v4868_v42 = vor.u32 %v6315_v33, %v4865_v34  ;;  %v6193_v34 = vld [vmem:[%s9777_s1 + $0x25c] sm:$0xf0]  ;;  %v4127_v55 = vld [vmem:[%s9777_s1 + $0x68] sm:$0xf]  ;;  %v4295_v5 = vld [vmem:[%s9777_s1 + $0x1b8] sm:$0xf] }
  0x50   :  { %1885 = vmatpush.bf16.msra.mxu0 %v4580_v48  ;;  %v6357_v48 = vld [vmem:[%s9777_s1 + $0x784] sm:$0xf]  ;;  %v6133_v56 = vld [vmem:[%s9777_s1 + $0x7c] sm:$0xf0]  ;;  %v6175_v7 = vld [vmem:[%s9777_s1 + $0x1cc] sm:$0xf0] }
  0x51   :  { %1898 = vmatpush.bf16.msra.mxu1 %v4772_v49  ;;  %v5033_v49 = vld [vmem:[%s9777_s1 + $0x798] sm:$0xf0]  ;;  %v4296_v18 = vor.u32 %v6175_v7, %v4295_v5  ;;  %v4271_v21 = vld [vmem:[%s9777_s1 + $0x188] sm:$0xf]  ;;  %v6169_v22 = vld [vmem:[%s9777_s1 + $0x19c] sm:$0xf0] }
  0x52   :  { %1911 = vmatpush.bf16.msra.mxu2 %v4964_v50  ;;  %v4247_v50 = vld [vmem:[%s9777_s1 + $0x158] sm:$0xf]  ;;  %v4463_v23 = vld [vmem:[%s9777_s1 + $0x308] sm:$0xf] }
  0x53   :  { %1924 = vmatpush.bf16.msra.mxu3 %v5156_v54  ;;  %v6211_v54 = vld [vmem:[%s9777_s1 + $0x2ec] sm:$0xf0]  ;;  %v4943_v5 = vld [vmem:[%s9777_s1 + $0x6c8] sm:$0xf] }
  0x54   :  { %1886 = vmatpush.bf16.msra.mxu0 %v4556_v60  ;;  %v6307_v60 = vld [vmem:[%s9777_s1 + $0x5ec] sm:$0xf0]  ;;  %v4440_v63 = vor.u32 %v6211_v54, %v4439_v52  ;;  %v4152_v52 = vor.u32 %v6139_v44, %v4151_v43  ;;  %v5135_v7 = vld [vmem:[%s9777_s1 + $0x848] sm:$0xf] }
  0x55   :  { %1899 = vmatpush.bf16.msra.mxu1 %v4748_v61  ;;  %v5036_v61 = vor.u32 %v6357_v48, %v5033_v49  ;;  %v4824_v4 = vor.u32 %v6307_v60, %v4823_v59  ;;  %v4535_v48 = vld [vmem:[%s9777_s1 + $0x398] sm:$0xf]  ;;  %v6235_v49 = vld [vmem:[%s9777_s1 + $0x3ac] sm:$0xf0]  ;;  %v6181_v59 = vld [vmem:[%s9777_s1 + $0x1fc] sm:$0xf0] }
  0x56   :  { %1912 = vmatpush.bf16.msra.mxu2 %v4940_v62  ;;  %v4248_v62 = vor.u32 %v6163_v51, %v4247_v50  ;;  %v4727_v50 = vld [vmem:[%s9777_s1 + $0x518] sm:$0xf]  ;;  %v6283_v51 = vld [vmem:[%s9777_s1 + $0x52c] sm:$0xf0]  ;;  %v4536_v54 = vor.u32 %v6235_v49, %v4535_v48  ;;  %v4511_v60 = vld [vmem:[%s9777_s1 + $0x368] sm:$0xf] }
  0x57   :  { %1925 = vmatpush.bf16.msra.mxu3 %v5132_v2  ;;  %v6157_v2 = vld [vmem:[%s9777_s1 + $0x13c] sm:$0xf0] }
  0x58   :  { %1887 = vmatpush.bf16.msra.mxu0 %v4532_v10  ;;  %v4799_v10 = vld [vmem:[%s9777_s1 + $0x5a8] sm:$0xf]  ;;  %v6397_v49 = vld [vmem:[%s9777_s1 + $0x8bc] sm:$0xf0] }
  0x59   :  { %1900 = vmatpush.bf16.msra.mxu1 %v4724_v11  ;;  %v6301_v11 = vld [vmem:[%s9777_s1 + $0x5bc] sm:$0xf0] }
  0x5a   :  { %1913 = vmatpush.bf16.msra.mxu2 %v4916_v12  ;;  %v4224_v12 = vor.u32 %v6157_v2, %v4223_v1  ;;  %v4800_v20 = vor.u32 %v6301_v11, %v4799_v10  ;;  %v4487_v10 = vld [vmem:[%s9777_s1 + $0x338] sm:$0xf]  ;;  %v6223_v11 = vld [vmem:[%s9777_s1 + $0x34c] sm:$0xf0] }
  0x5b   :  { %1926 = vmatpush.bf16.msra.mxu3 %v5108_v17  ;;  %v6151_v17 = vld [vmem:[%s9777_s1 + $0x10c] sm:$0xf0] }
  0x5c   :  { %1888 = vmatpush.bf16.msra.mxu0 %v4508_v24  ;;  %v4775_v24 = vld [vmem:[%s9777_s1 + $0x578] sm:$0xf] }
  0x5d   :  { %1901 = vmatpush.bf16.msra.mxu1 %v4700_v25  ;;  %v6295_v25 = vld [vmem:[%s9777_s1 + $0x58c] sm:$0xf0] }
  0x5e   :  { %1914 = vmatpush.bf16.msra.mxu2 %v4892_v26  ;;  %v4200_v26 = vor.u32 %v6151_v17, %v4199_v15  ;;  %v4776_v33 = vor.u32 %v6295_v25, %v4775_v24  ;;  %v4079_v15 = vld [vmem:[%s9777_s1 + $0x8] sm:$0xf]  ;;  %v6121_v17 = vld [vmem:[%s9777_s1 + $0x1c] sm:$0xf0] }
  0x5f   :  { %1927 = vmatpush.bf16.msra.mxu3 %v5084_v30  ;;  %v6145_v30 = vld [vmem:[%s9777_s1 + $0xdc] sm:$0xf0] }
  0x60   :  { %1889 = vmatpush.bf16.msra.mxu0 %v4484_v38  ;;  %v4751_v38 = vld [vmem:[%s9777_s1 + $0x548] sm:$0xf]  ;;  %v4176_v40 = vor.u32 %v6145_v30, %v4175_v29  ;;  %v6217_v25 = vld [vmem:[%s9777_s1 + $0x31c] sm:$0xf0]  ;;  %v6355_v29 = vld [vmem:[%s9777_s1 + $0x76c] sm:$0xf0] }
  0x61   :  { %1902 = vmatpush.bf16.msra.mxu1 %v4676_v41  ;;  %v4368_v41 = vor.u32 %v6193_v34, %v4367_v31  ;;  %v5207_v30 = vld [vmem:[%s9777_s1 + $0x8d8] sm:$0xf]  ;;  %v4080_v31 = vor.u32 %v6121_v17, %v4079_v15  ;;  %v6160_v34 = vld [vmem:[%s9777_s1 + $0x15c] sm:$0xf]  ;;  %v4369_v15 = vld [vmem:[%s9777_s1 + $0x260] sm:$0xf0] }
  0x62   :  { %1915 = vmatpush.bf16.msra.mxu2 %v4868_v42  ;;  %v4560_v42 = vor.u32 %v6241_v37, %v4559_v36  ;;  %v4249_v36 = vld [vmem:[%s9777_s1 + $0x170] sm:$0xf0]  ;;  %v4272_v37 = vor.u32 %v6169_v22, %v4271_v21  ;;  %v4919_v21 = vld [vmem:[%s9777_s1 + $0x698] sm:$0xf]  ;;  %v6331_v22 = vld [vmem:[%s9777_s1 + $0x6ac] sm:$0xf0] }
  0x63   :  { %1928 = vmatpush.bf16.msra.mxu3 %v5060_v46  ;;  %v4752_v46 = vor.u32 %v6289_v39, %v4751_v38  ;;  %v4464_v38 = vor.u32 %v6217_v25, %v4463_v23  ;;  %v6208_v39 = vld [vmem:[%s9777_s1 + $0x2dc] sm:$0xf]  ;;  %v4252_v44 = vor.u32 %v6160_v34, %v4249_v36  ;;  %v5111_v23 = vld [vmem:[%s9777_s1 + $0x818] sm:$0xf]  ;;  %v6379_v25 = vld [vmem:[%s9777_s1 + $0x82c] sm:$0xf0] }
  0x64   :  { %1890 = vmatpush.bf16.msra.mxu0 %v4460_v53  ;;  %v4344_v53 = vor.u32 %v6187_v47, %v4343_v45  ;;  %v4991_v45 = vld [vmem:[%s9777_s1 + $0x728] sm:$0xf]  ;;  %v6325_v36 = vld [vmem:[%s9777_s1 + $0x67c] sm:$0xf0] }
  0x65   :  { %1903 = vmatpush.bf16.msra.mxu1 %v4652_v57  ;;  %v4319_v57 = vld [vmem:[%s9777_s1 + $0x1e8] sm:$0xf] }
  0x66   :  { %1916 = vmatpush.bf16.msra.mxu2 %v4844_v58  ;;  %v4728_v58 = vor.u32 %v6283_v51, %v4727_v50  ;;  %v4320_v1 = vor.u32 %v6181_v59, %v4319_v57  ;;  %v5183_v47 = vld [vmem:[%s9777_s1 + $0x8a8] sm:$0xf]  ;;  %v6154_v50 = vld [vmem:[%s9777_s1 + $0x12c] sm:$0xf]  ;;  %v4225_v51 = vld [vmem:[%s9777_s1 + $0x140] sm:$0xf0] }
  0x67   :  { %1929 = vmatpush.bf16.msra.mxu3 %v5036_v61  ;;  %1891 = vmatmul.bf16.vlgmr.msra.gmra.mxu0 %v6997_v9  ;;  %v6229_v61 = vld [vmem:[%s9777_s1 + $0x37c] sm:$0xf0]  ;;  %v4967_v57 = vld [vmem:[%s9777_s1 + $0x6f8] sm:$0xf]  ;;  %v4895_v34 = vld [vmem:[%s9777_s1 + $0x668] sm:$0xf] }
  0x68   :  { %1935 = vmatpush.bf16.msrb.mxu0 %v4248_v62  ;;  %1904 = vmatmul.bf16.vlgmr.msra.gmra.mxu1 %v7024_v19  ;;  %v4703_v62 = vld [vmem:[%s9777_s1 + $0x4e8] sm:$0xf]  ;;  %v4512_v2 = vor.u32 %v6229_v61, %v4511_v60  ;;  %v5159_v59 = vld [vmem:[%s9777_s1 + $0x878] sm:$0xf]  ;;  %v6391_v61 = vld [vmem:[%s9777_s1 + $0x88c] sm:$0xf0] }
  0x69   :  { %1948 = vmatpush.bf16.msrb.mxu1 %v4440_v63  ;;  %1917 = vmatmul.bf16.vlgmr.msra.gmra.mxu2 %v7172_v32  ;;  %v6277_v63 = vld [vmem:[%s9777_s1 + $0x4fc] sm:$0xf0] }
  0x6a   :  { %1961 = vmatpush.bf16.msrb.mxu2 %v4632_v0  ;;  %1930 = vmatmul.bf16.vlgmr.msra.gmra.mxu3 %v7180_v35  ;;  %v4128_v0 = vor.u32 %v6133_v56, %v4127_v55  ;;  %v4704_v6 = vor.u32 %v6277_v63, %v4703_v62  ;;  %v5184_v55 = vor.u32 %v6397_v49, %v5183_v47  ;;  %v6148_v62 = vld [vmem:[%s9777_s1 + $0xfc] sm:$0xf]  ;;  %v4201_v63 = vld [vmem:[%s9777_s1 + $0x110] sm:$0xf0]  ;;  %v4871_v47 = vld [vmem:[%s9777_s1 + $0x638] sm:$0xf] }
  0x6b   :  { %1974 = vmatpush.bf16.msrb.mxu3 %v4824_v4  ;;  %v6127_v4 = vld [vmem:[%s9777_s1 + $0x4c] sm:$0xf0]  ;;  %v4228_v56 = vor.u32 %v6154_v50, %v4225_v51  ;;  %v5063_v49 = vld [vmem:[%s9777_s1 + $0x7b8] sm:$0xf] }
  0x6c   :  { %1936 = vmatpush.bf16.msrb.mxu0 %v4224_v12  ;;  %v4679_v12 = vld [vmem:[%s9777_s1 + $0x4b8] sm:$0xf]  ;;  %v6367_v51 = vld [vmem:[%s9777_s1 + $0x7cc] sm:$0xf0] }
  0x6d   :  { %1949 = vmatpush.bf16.msrb.mxu1 %v4416_v13  ;;  %v6271_v13 = vld [vmem:[%s9777_s1 + $0x4cc] sm:$0xf0] }
  0x6e   :  { %1962 = vmatpush.bf16.msrb.mxu2 %v4608_v14  ;;  %v4104_v14 = vor.u32 %v6127_v4, %v4103_v3  ;;  %v4680_v24 = vor.u32 %v6271_v13, %v4679_v12  ;;  %v5160_v3 = vor.u32 %v6391_v61, %v5159_v59  ;;  %v4204_v4 = vor.u32 %v6148_v62, %v4201_v63  ;;  %v6142_v12 = vld [vmem:[%s9777_s1 + $0xcc] sm:$0xf]  ;;  %v4177_v13 = vld [vmem:[%s9777_s1 + $0xe0] sm:$0xf0]  ;;  %v5039_v61 = vld [vmem:[%s9777_s1 + $0x788] sm:$0xf] }
  0x6f   :  { %1975 = vmatpush.bf16.msrb.mxu3 %v4800_v20  ;;  %v4488_v20 = vor.u32 %v6223_v11, %v4487_v10  ;;  %v6385_v11 = vld [vmem:[%s9777_s1 + $0x85c] sm:$0xf0]  ;;  %v5064_v59 = vor.u32 %v6367_v51, %v5063_v49  ;;  %v6118_v63 = vld [vmem:[%s9777_s1 + $0xc] sm:$0xf] }
  0x70   :  { %1937 = vmatpush.bf16.msrb.mxu0 %v4200_v26  ;;  %v4655_v26 = vld [vmem:[%s9777_s1 + $0x488] sm:$0xf]  ;;  %v6361_v62 = vld [vmem:[%s9777_s1 + $0x79c] sm:$0xf0]  ;;  %v6238_v49 = vld [vmem:[%s9777_s1 + $0x3cc] sm:$0xf] }
  0x71   :  { %1950 = vmatpush.bf16.msrb.mxu1 %v4392_v27  ;;  %v6265_v27 = vld [vmem:[%s9777_s1 + $0x49c] sm:$0xf0]  ;;  %v6286_v51 = vld [vmem:[%s9777_s1 + $0x54c] sm:$0xf] }
  0x72   :  { %1963 = vmatpush.bf16.msrb.mxu2 %v4584_v28  ;;  %v5015_v28 = vld [vmem:[%s9777_s1 + $0x758] sm:$0xf] }
  0x73   :  { %1976 = vmatpush.bf16.msrb.mxu3 %v4776_v33  ;;  %v6403_v33 = vld [vmem:[%s9777_s1 + $0x8ec] sm:$0xf0] }
  0x74   :  { %1938 = vmatpush.bf16.msrb.mxu0 %v4176_v40  ;;  %v4441_v40 = vld [vmem:[%s9777_s1 + $0x2f0] sm:$0xf0]  ;;  %v5208_v43 = vor.u32 %v6403_v33, %v5207_v30  ;;  %v4920_v30 = vor.u32 %v6331_v22, %v4919_v21 }
  0x75   :  { %1951 = vmatpush.bf16.msrb.mxu1 %v4368_v41  ;;  %v4656_v41 = vor.u32 %v6265_v27, %v4655_v26  ;;  %v4444_v48 = vor.u32 %v6208_v39, %v4441_v40  ;;  %v6136_v26 = vld [vmem:[%s9777_s1 + $0x9c] sm:$0xf]  ;;  %v4153_v27 = vld [vmem:[%s9777_s1 + $0xb0] sm:$0xf0]  ;;  %v6373_v39 = vld [vmem:[%s9777_s1 + $0x7fc] sm:$0xf0] }
  0x76   :  { %1964 = vmatpush.bf16.msrb.mxu2 %v4560_v42  ;;  %v5016_v42 = vor.u32 %v6355_v29, %v5015_v28  ;;  %v6184_v28 = vld [vmem:[%s9777_s1 + $0x21c] sm:$0xf]  ;;  %v4345_v29 = vld [vmem:[%s9777_s1 + $0x230] sm:$0xf0]  ;;  %v4156_v33 = vor.u32 %v6136_v26, %v4153_v27  ;;  %v6130_v40 = vld [vmem:[%s9777_s1 + $0x6c] sm:$0xf] }
  0x77   :  { %1977 = vmatpush.bf16.msrb.mxu3 %v4752_v46  ;;  %v6349_v46 = vld [vmem:[%s9777_s1 + $0x73c] sm:$0xf0]  ;;  %v4801_v27 = vld [vmem:[%s9777_s1 + $0x5c0] sm:$0xf0] }
  0x78   :  { %1939 = vmatpush.bf16.msrb.mxu0 %v4152_v52  ;;  %v6202_v52 = vld [vmem:[%s9777_s1 + $0x2ac] sm:$0xf] }
  0x79   :  { %1952 = vmatpush.bf16.msrb.mxu1 %v4344_v53  ;;  %v4417_v53 = vld [vmem:[%s9777_s1 + $0x2c0] sm:$0xf0] }
  0x7a   :  { %1965 = vmatpush.bf16.msrb.mxu2 %v4536_v54  ;;  %v4992_v54 = vor.u32 %v6349_v46, %v4991_v45  ;;  %v4420_v60 = vor.u32 %v6202_v52, %v4417_v53  ;;  %v6124_v52 = vld [vmem:[%s9777_s1 + $0x3c] sm:$0xf]  ;;  %v4105_v53 = vld [vmem:[%s9777_s1 + $0x50] sm:$0xf0] }
  0x7b   :  { %1978 = vmatpush.bf16.msrb.mxu3 %v4728_v58  ;;  %v6343_v58 = vld [vmem:[%s9777_s1 + $0x70c] sm:$0xf0] }
  0x7c   :  { %1940 = vmatpush.bf16.msrb.mxu0 %v4128_v0  ;;  %v6196_v0 = vld [vmem:[%s9777_s1 + $0x27c] sm:$0xf] }
  0x7d   :  { %1953 = vmatpush.bf16.msrb.mxu1 %v4320_v1  ;;  %v4393_v1 = vld [vmem:[%s9777_s1 + $0x290] sm:$0xf0] }
  0x7e   :  { %1966 = vmatpush.bf16.msrb.mxu2 %v4512_v2  ;;  %v4968_v2 = vor.u32 %v6343_v58, %v4967_v57  ;;  %v4396_v10 = vor.u32 %v6196_v0, %v4393_v1  ;;  %v4847_v57 = vld [vmem:[%s9777_s1 + $0x608] sm:$0xf]  ;;  %v6313_v58 = vld [vmem:[%s9777_s1 + $0x61c] sm:$0xf0]  ;;  %v4081_v1 = vld [vmem:[%s9777_s1 + $0x20] sm:$0xf0] }
  0x7f   :  { %1979 = vmatpush.bf16.msrb.mxu3 %v4704_v6  ;;  %v6337_v6 = vld [vmem:[%s9777_s1 + $0x6dc] sm:$0xf0] }
  0x80   :  { %1941 = vmatpush.bf16.msrb.mxu0 %v4104_v14  ;;  %v6190_v14 = vld [vmem:[%s9777_s1 + $0x24c] sm:$0xf]  ;;  %v4944_v17 = vor.u32 %v6337_v6, %v4943_v5  ;;  %v4633_v5 = vld [vmem:[%s9777_s1 + $0x470] sm:$0xf0]  ;;  %v6304_v6 = vld [vmem:[%s9777_s1 + $0x5dc] sm:$0xf] }
  0x81   :  { %1954 = vmatpush.bf16.msrb.mxu1 %v4296_v18  ;;  %v5136_v18 = vor.u32 %v6385_v11, %v5135_v7  ;;  %v4848_v7 = vor.u32 %v6313_v58, %v4847_v57  ;;  %v6352_v11 = vld [vmem:[%s9777_s1 + $0x75c] sm:$0xf]  ;;  %v5137_v57 = vld [vmem:[%s9777_s1 + $0x860] sm:$0xf0] }
  0x82   :  { %1967 = vmatpush.bf16.msrb.mxu2 %v4488_v20  ;;  %v4180_v20 = vor.u32 %v6142_v12, %v4177_v13  ;;  %v5017_v12 = vld [vmem:[%s9777_s1 + $0x770] sm:$0xf0]  ;;  %v5040_v13 = vor.u32 %v6361_v62, %v5039_v61  ;;  %v6232_v61 = vld [vmem:[%s9777_s1 + $0x39c] sm:$0xf] }
  0x83   :  { %1980 = vmatpush.bf16.msrb.mxu3 %v4680_v24  ;;  %v4372_v24 = vor.u32 %v6190_v14, %v4369_v15  ;;  %v4084_v14 = vor.u32 %v6118_v63, %v4081_v1  ;;  %v6400_v15 = vld [vmem:[%s9777_s1 + $0x8dc] sm:$0xf]  ;;  %v5020_v22 = vor.u32 %v6352_v11, %v5017_v12  ;;  %v4537_v62 = vld [vmem:[%s9777_s1 + $0x3b0] sm:$0xf0]  ;;  %v6226_v12 = vld [vmem:[%s9777_s1 + $0x36c] sm:$0xf] }
  0x84   :  { %1942 = vmatpush.bf16.msrb.mxu0 %v4080_v31  ;;  %v5112_v31 = vor.u32 %v6379_v25, %v5111_v23  ;;  %v6250_v23 = vld [vmem:[%s9777_s1 + $0x42c] sm:$0xf]  ;;  %v6280_v63 = vld [vmem:[%s9777_s1 + $0x51c] sm:$0xf]  ;;  %v4729_v1 = vld [vmem:[%s9777_s1 + $0x530] sm:$0xf0] }
  0x85   :  { %1955 = vmatpush.bf16.msrb.mxu1 %v4272_v37  ;;  %v5087_v37 = vld [vmem:[%s9777_s1 + $0x7e8] sm:$0xf]  ;;  %v6298_v25 = vld [vmem:[%s9777_s1 + $0x5ac] sm:$0xf] }
  0x86   :  { %1968 = vmatpush.bf16.msrb.mxu2 %v4464_v38  ;;  %v4348_v38 = vor.u32 %v6184_v28, %v4345_v29  ;;  %v5088_v45 = vor.u32 %v6373_v39, %v5087_v37  ;;  %v6346_v28 = vld [vmem:[%s9777_s1 + $0x72c] sm:$0xf]  ;;  %v4993_v29 = vld [vmem:[%s9777_s1 + $0x740] sm:$0xf0]  ;;  %v6244_v37 = vld [vmem:[%s9777_s1 + $0x3fc] sm:$0xf] }
  0x87   :  { %1981 = vmatpush.bf16.msrb.mxu3 %v4656_v41  ;;  %1943 = vmatmul.bf16.vlgmr.msrb.gmra.mxu0 %v6995_v8  ;;  %v4129_v41 = vld [vmem:[%s9777_s1 + $0x80] sm:$0xf0]  ;;  %v6292_v39 = vld [vmem:[%s9777_s1 + $0x57c] sm:$0xf] }
  0x88   :  { %1987 = vmatpush.bf16.msra.mxu0 %v5016_v42  ;;  %1956 = vmatmul.bf16.vlgmr.msrb.gmra.mxu1 %v7014_v16  ;;  %v6178_v42 = vld [vmem:[%s9777_s1 + $0x1ec] sm:$0xf]  ;;  %v4132_v46 = vor.u32 %v6130_v40, %v4129_v41  ;;  %v4777_v41 = vld [vmem:[%s9777_s1 + $0x590] sm:$0xf0] }
  0x89   :  { %2000 = vmatpush.bf16.msra.mxu1 %v5208_v43  ;;  %1969 = vmatmul.bf16.vlgmr.msrb.gmra.mxu2 %v6997_v9  ;;  %v4321_v43 = vld [vmem:[%s9777_s1 + $0x200] sm:$0xf0] }
  0x8a   :  { %2013 = vmatpush.bf16.msra.mxu2 %v4252_v44  ;;  %1982 = vmatmul.bf16.vlgmr.msrb.gmra.mxu3 %v7024_v19  ;;  %v4896_v44 = vor.u32 %v6325_v36, %v4895_v34  ;;  %v4324_v50 = vor.u32 %v6178_v42, %v4321_v43  ;;  %v4804_v34 = vor.u32 %v6298_v25, %v4801_v27  ;;  %v6340_v42 = vld [vmem:[%s9777_s1 + $0x6fc] sm:$0xf]  ;;  %v4969_v43 = vld [vmem:[%s9777_s1 + $0x710] sm:$0xf0] }
  0x8b   :  { %2026 = vmatpush.bf16.msra.mxu3 %v4444_v48  ;;  %v6319_v48 = vld [vmem:[%s9777_s1 + $0x64c] sm:$0xf0]  ;;  %v4996_v36 = vor.u32 %v6346_v28, %v4993_v29  ;;  %v6220_v28 = vld [vmem:[%s9777_s1 + $0x33c] sm:$0xf]  ;;  %v4489_v29 = vld [vmem:[%s9777_s1 + $0x350] sm:$0xf0] }
  0x8c   :  { %1988 = vmatpush.bf16.msra.mxu0 %v4992_v54  ;;  %v6172_v54 = vld [vmem:[%s9777_s1 + $0x1bc] sm:$0xf] }
  0x8d   :  { %2001 = vmatpush.bf16.msra.mxu1 %v5184_v55  ;;  %v4297_v55 = vld [vmem:[%s9777_s1 + $0x1d0] sm:$0xf0] }
  0x8e   :  { %2014 = vmatpush.bf16.msra.mxu2 %v4228_v56  ;;  %v4872_v56 = vor.u32 %v6319_v48, %v4871_v47  ;;  %v4300_v0 = vor.u32 %v6172_v54, %v4297_v55  ;;  %v4780_v47 = vor.u32 %v6292_v39, %v4777_v41  ;;  %v4972_v48 = vor.u32 %v6340_v42, %v4969_v43  ;;  %v6334_v54 = vld [vmem:[%s9777_s1 + $0x6cc] sm:$0xf]  ;;  %v4945_v55 = vld [vmem:[%s9777_s1 + $0x6e0] sm:$0xf0]  ;;  %v5065_v39 = vld [vmem:[%s9777_s1 + $0x7d0] sm:$0xf0] }
  0x8f   :  { %2027 = vmatpush.bf16.msra.mxu3 %v4420_v60  ;;  %v4108_v60 = vor.u32 %v6124_v52, %v4105_v53  ;;  %v4753_v53 = vld [vmem:[%s9777_s1 + $0x560] sm:$0xf0]  ;;  %v4492_v41 = vor.u32 %v6220_v28, %v4489_v29  ;;  %v6214_v42 = vld [vmem:[%s9777_s1 + $0x30c] sm:$0xf]  ;;  %v4399_v28 = vld [vmem:[%s9777_s1 + $0x280] sm:$0xf] }
  0x90   :  { %1989 = vmatpush.bf16.msra.mxu0 %v4968_v2  ;;  %v6166_v2 = vld [vmem:[%s9777_s1 + $0x18c] sm:$0xf]  ;;  %v4465_v43 = vld [vmem:[%s9777_s1 + $0x320] sm:$0xf0] }
  0x91   :  { %2002 = vmatpush.bf16.msra.mxu1 %v5160_v3  ;;  %v4273_v3 = vld [vmem:[%s9777_s1 + $0x1a0] sm:$0xf0] }
  0x92   :  { %2015 = vmatpush.bf16.msra.mxu2 %v4204_v4  ;;  %v6256_v4 = vld [vmem:[%s9777_s1 + $0x45c] sm:$0xf] }
  0x93   :  { %2028 = vmatpush.bf16.msra.mxu3 %v4396_v10  ;;  %v4825_v10 = vld [vmem:[%s9777_s1 + $0x5f0] sm:$0xf0] }
  0x94   :  { %1990 = vmatpush.bf16.msra.mxu0 %v4944_v17  ;;  %v5209_v17 = vld [vmem:[%s9777_s1 + $0x8f0] sm:$0xf0]  ;;  %v4828_v21 = vor.u32 %v6304_v6, %v4825_v10  ;;  %v4540_v6 = vor.u32 %v6232_v61, %v4537_v62  ;;  %v4732_v10 = vor.u32 %v6280_v63, %v4729_v1  ;;  %v6212_v61 = vld [vmem:[%s9777_s1 + $0x2f4] sm:$0xf0]  ;;  %v4639_v62 = vld [vmem:[%s9777_s1 + $0x460] sm:$0xf] }
  0x95   :  { %2003 = vmatpush.bf16.msra.mxu1 %v5136_v18  ;;  %v4276_v18 = vor.u32 %v6166_v2, %v4273_v3  ;;  %v5212_v26 = vor.u32 %v6400_v15, %v5209_v17  ;;  %v6328_v2 = vld [vmem:[%s9777_s1 + $0x69c] sm:$0xf]  ;;  %v4921_v3 = vld [vmem:[%s9777_s1 + $0x6b0] sm:$0xf0]  ;;  %v6260_v63 = vld [vmem:[%s9777_s1 + $0x474] sm:$0xf0] }
  0x96   :  { %2016 = vmatpush.bf16.msra.mxu2 %v4180_v20  ;;  %v4636_v20 = vor.u32 %v6256_v4, %v4633_v5  ;;  %v6376_v4 = vld [vmem:[%s9777_s1 + $0x81c] sm:$0xf]  ;;  %v5113_v5 = vld [vmem:[%s9777_s1 + $0x830] sm:$0xf0]  ;;  %v4924_v11 = vor.u32 %v6328_v2, %v4921_v3  ;;  %v4831_v2 = vld [vmem:[%s9777_s1 + $0x5e0] sm:$0xf] }
  0x97   :  { %2029 = vmatpush.bf16.msra.mxu3 %v4372_v24  ;;  %v4609_v24 = vld [vmem:[%s9777_s1 + $0x440] sm:$0xf0]  ;;  %v5116_v17 = vor.u32 %v6376_v4, %v5113_v5  ;;  %v6308_v3 = vld [vmem:[%s9777_s1 + $0x5f4] sm:$0xf0] }
  0x98   :  { %1991 = vmatpush.bf16.msra.mxu0 %v4920_v30  ;;  %v6394_v30 = vld [vmem:[%s9777_s1 + $0x8ac] sm:$0xf] }
  0x99   :  { %2004 = vmatpush.bf16.msra.mxu1 %v5112_v31  ;;  %v5185_v31 = vld [vmem:[%s9777_s1 + $0x8c0] sm:$0xf0] }
  0x9a   :  { %2017 = vmatpush.bf16.msra.mxu2 %v4156_v33  ;;  %v4612_v33 = vor.u32 %v6250_v23, %v4609_v24  ;;  %v5188_v40 = vor.u32 %v6394_v30, %v5185_v31  ;;  %v6370_v23 = vld [vmem:[%s9777_s1 + $0x7ec] sm:$0xf]  ;;  %v5089_v24 = vld [vmem:[%s9777_s1 + $0x800] sm:$0xf0]  ;;  %v6268_v30 = vld [vmem:[%s9777_s1 + $0x4bc] sm:$0xf] }
  0x9b   :  { %2030 = vmatpush.bf16.msra.mxu3 %v4348_v38  ;;  %v4585_v38 = vld [vmem:[%s9777_s1 + $0x410] sm:$0xf0]  ;;  %v5092_v31 = vor.u32 %v6370_v23, %v5089_v24 }
  0x9c   :  { %1992 = vmatpush.bf16.msra.mxu0 %v4896_v44  ;;  %v6388_v44 = vld [vmem:[%s9777_s1 + $0x87c] sm:$0xf] }
  0x9d   :  { %2005 = vmatpush.bf16.msra.mxu1 %v5088_v45  ;;  %v5161_v45 = vld [vmem:[%s9777_s1 + $0x890] sm:$0xf0] }
  0x9e   :  { %2018 = vmatpush.bf16.msra.mxu2 %v4132_v46  ;;  %v4588_v46 = vor.u32 %v6244_v37, %v4585_v38  ;;  %v5164_v52 = vor.u32 %v6388_v44, %v5161_v45  ;;  %v6364_v38 = vld [vmem:[%s9777_s1 + $0x7bc] sm:$0xf] }
  0x9f   :  { %2031 = vmatpush.bf16.msra.mxu3 %v4324_v50  ;;  %v4561_v50 = vld [vmem:[%s9777_s1 + $0x3e0] sm:$0xf0] }
  0xa0   :  { %1993 = vmatpush.bf16.msra.mxu0 %v4872_v56  ;;  %v6382_v56 = vld [vmem:[%s9777_s1 + $0x84c] sm:$0xf]  ;;  %v4564_v58 = vor.u32 %v6238_v49, %v4561_v50 }
  0xa1   :  { %2006 = vmatpush.bf16.msra.mxu1 %v5064_v59  ;;  %v4756_v59 = vor.u32 %v6286_v51, %v4753_v53  ;;  %v6310_v49 = vld [vmem:[%s9777_s1 + $0x60c] sm:$0xf]  ;;  %v5068_v51 = vor.u32 %v6364_v38, %v5065_v39 }
  0xa2   :  { %2019 = vmatpush.bf16.msra.mxu2 %v4108_v60  ;;  %v4948_v60 = vor.u32 %v6334_v54, %v4945_v55  ;;  %v6358_v53 = vld [vmem:[%s9777_s1 + $0x78c] sm:$0xf]  ;;  %v5041_v54 = vld [vmem:[%s9777_s1 + $0x7a0] sm:$0xf0] }
  0xa3   :  { %2032 = vmatpush.bf16.msra.mxu3 %v4300_v0  ;;  %v5140_v0 = vor.u32 %v6382_v56, %v5137_v57  ;;  %v4255_v56 = vld [vmem:[%s9777_s1 + $0x160] sm:$0xf]  ;;  %v6164_v57 = vld [vmem:[%s9777_s1 + $0x174] sm:$0xf0]  ;;  %v5044_v4 = vor.u32 %v6358_v53, %v5041_v54 }
  0xa4   :  { %1994 = vmatpush.bf16.msra.mxu0 %v4848_v7  ;;  %v1788_v7 = vpop.f32.mrf.mxu0  ;;  %v4256_v5 = vor.u32 %v6164_v57, %v4255_v56  ;;  %v6140_v56 = vld [vmem:[%s9777_s1 + $0xb4] sm:$0xf0]  ;;  %v4351_v57 = vld [vmem:[%s9777_s1 + $0x220] sm:$0xf] }
  0xa5   :  { %2007 = vmatpush.bf16.msra.mxu1 %v5040_v13  ;;  %v4513_v13 = vld [vmem:[%s9777_s1 + $0x380] sm:$0xf0]  ;;  %v1801_v15 = vpop.f32.mrf.mxu1 }
  0xa6   :  { %2020 = vmatpush.bf16.msra.mxu2 %v4084_v14  ;;  %v6274_v14 = vld [vmem:[%s9777_s1 + $0x4ec] sm:$0xf]  ;;  %v4516_v25 = vor.u32 %v6226_v12, %v4513_v13  ;;  %v6158_v12 = vld [vmem:[%s9777_s1 + $0x144] sm:$0xf0]  ;;  %v4423_v13 = vld [vmem:[%s9777_s1 + $0x2b0] sm:$0xf] }
  0xa7   :  { %2033 = vmatpush.bf16.msra.mxu3 %v4276_v18  ;;  %1995 = vmatmul.bf16.vlgmr.msra.gmra.mxu0 %v7172_v32  ;;  %v4705_v18 = vld [vmem:[%s9777_s1 + $0x500] sm:$0xf0] }
  0xa8   :  { %2039 = vmatpush.bf16.msrb.mxu0 %v4636_v20  ;;  %2008 = vmatmul.bf16.vlgmr.msra.gmra.mxu1 %v7180_v35  ;;  %v6322_v20 = vld [vmem:[%s9777_s1 + $0x66c] sm:$0xf] }
  0xa9   :  { %2052 = vmatpush.bf16.msrb.mxu1 %v4828_v21  ;;  %2021 = vmatmul.bf16.vlgmr.msra.gmra.mxu2 %v6995_v8  ;;  %v4897_v21 = vld [vmem:[%s9777_s1 + $0x680] sm:$0xf0] }
  0xaa   :  { %2065 = vmatpush.bf16.msrb.mxu2 %v5020_v22  ;;  %2034 = vmatmul.bf16.vlgmr.msra.gmra.mxu3 %v7014_v16  ;;  %v1802_v22 = vadd.f32 %v1801_v15, %v1788_v7  ;;  %v4900_v27 = vor.u32 %v6322_v20, %v4897_v21  ;;  %v6206_v15 = vld [vmem:[%s9777_s1 + $0x2c4] sm:$0xf0]  ;;  %v4807_v20 = vld [vmem:[%s9777_s1 + $0x5b0] sm:$0xf] }
  0xab   :  { %2078 = vmatpush.bf16.msrb.mxu3 %v5212_v26  ;;  %v4708_v26 = vor.u32 %v6274_v14, %v4705_v18  ;;  %v4832_v14 = vor.u32 %v6308_v3, %v4831_v2  ;;  %v6254_v18 = vld [vmem:[%s9777_s1 + $0x444] sm:$0xf0]  ;;  %v4424_v24 = vor.u32 %v6206_v15, %v4423_v13 }
  0xac   :  { %2040 = vmatpush.bf16.msrb.mxu0 %v4612_v33  ;;  %v4681_v33 = vld [vmem:[%s9777_s1 + $0x4d0] sm:$0xf0]  ;;  %v1814_v37 = vpop.f32.mrf.mxu2  ;;  %v1790_v44 = vpop.f32.mrf.mxu0  ;;  %v6302_v21 = vld [vmem:[%s9777_s1 + $0x5c4] sm:$0xf0] }
  0xad   :  { %2053 = vmatpush.bf16.msrb.mxu1 %v4804_v34  ;;  %v6316_v34 = vld [vmem:[%s9777_s1 + $0x63c] sm:$0xf]  ;;  %v4684_v45 = vor.u32 %v6268_v30, %v4681_v33  ;;  %v1803_v50 = vpop.f32.mrf.mxu1  ;;  %v1827_v55 = vpop.f32.mrf.mxu3  ;;  %v4808_v29 = vor.u32 %v6302_v21, %v4807_v20  ;;  %v6200_v30 = vld [vmem:[%s9777_s1 + $0x294] sm:$0xf0]  ;;  %v6194_v44 = vld [vmem:[%s9777_s1 + $0x264] sm:$0xf0] }
  0xae   :  { %2066 = vmatpush.bf16.msrb.mxu2 %v4996_v36  ;;  %v4873_v36 = vld [vmem:[%s9777_s1 + $0x650] sm:$0xf0]  ;;  %v6248_v33 = vld [vmem:[%s9777_s1 + $0x414] sm:$0xf0]  ;;  %v4400_v38 = vor.u32 %v6200_v30, %v4399_v28  ;;  %v6278_v15 = vld [vmem:[%s9777_s1 + $0x504] sm:$0xf0] }
  0xaf   :  { %2079 = vmatpush.bf16.msrb.mxu3 %v5188_v40  ;;  %v1815_v40 = vadd.f32 %v1814_v37, %v1802_v22  ;;  %v4495_v30 = vld [vmem:[%s9777_s1 + $0x340] sm:$0xf] }
  0xb0   :  { %2041 = vmatpush.bf16.msrb.mxu0 %v4588_v46  ;;  %v4876_v46 = vor.u32 %v6316_v34, %v4873_v36  ;;  %v4783_v34 = vld [vmem:[%s9777_s1 + $0x580] sm:$0xf]  ;;  %v6296_v36 = vld [vmem:[%s9777_s1 + $0x594] sm:$0xf0] }
  0xb1   :  { %2054 = vmatpush.bf16.msrb.mxu1 %v4780_v47  ;;  %v6262_v47 = vld [vmem:[%s9777_s1 + $0x48c] sm:$0xf] }
  0xb2   :  { %2067 = vmatpush.bf16.msrb.mxu2 %v4972_v48  ;;  %v4657_v48 = vld [vmem:[%s9777_s1 + $0x4a0] sm:$0xf0] }
  0xb3   :  { %2080 = vmatpush.bf16.msrb.mxu3 %v5164_v52  ;;  %v4849_v52 = vld [vmem:[%s9777_s1 + $0x620] sm:$0xf0] }
  0xb4   :  { %2042 = vmatpush.bf16.msrb.mxu0 %v4564_v58  ;;  %v4447_v58 = vld [vmem:[%s9777_s1 + $0x2e0] sm:$0xf]  ;;  %v4852_v1 = vor.u32 %v6310_v49, %v4849_v52 }
  0xb5   :  { %2055 = vmatpush.bf16.msrb.mxu1 %v4756_v59  ;;  %v7927_v59 = vadd.f32 %v1827_v55, %v1815_v40  ;;  %v4448_v7 = vor.u32 %v6212_v61, %v4447_v58  ;;  %v1829_v23 = vpop.f32.mrf.mxu3  ;;  %v4183_v40 = vld [vmem:[%s9777_s1 + $0xd0] sm:$0xf]  ;;  %v4159_v55 = vld [vmem:[%s9777_s1 + $0xa0] sm:$0xf]  ;;  %v6236_v61 = vld [vmem:[%s9777_s1 + $0x3b4] sm:$0xf0] }
  0xb6   :  { %2068 = vmatpush.bf16.msrb.mxu2 %v4948_v60  ;;  %v4468_v60 = vor.u32 %v6214_v42, %v4465_v43  ;;  %v4375_v42 = vld [vmem:[%s9777_s1 + $0x250] sm:$0xf]  ;;  %v4784_v43 = vor.u32 %v6296_v36, %v4783_v34  ;;  %v6272_v34 = vld [vmem:[%s9777_s1 + $0x4d4] sm:$0xf0] }
  0xb7   :  { %2081 = vmatpush.bf16.msrb.mxu3 %v5140_v0  ;;  %v4660_v0 = vor.u32 %v6262_v47, %v4657_v48  ;;  %v4759_v47 = vld [vmem:[%s9777_s1 + $0x550] sm:$0xf]  ;;  %v6290_v48 = vld [vmem:[%s9777_s1 + $0x564] sm:$0xf0]  ;;  %v4376_v53 = vor.u32 %v6194_v44, %v4375_v42 }
  0xb8   :  { %2043 = vmatpush.bf16.msrb.mxu0 %v4540_v6  ;;  %v1816_v6 = vpop.f32.mrf.mxu2  ;;  %v4760_v58 = vor.u32 %v6290_v48, %v4759_v47  ;;  %v6170_v42 = vld [vmem:[%s9777_s1 + $0x1a4] sm:$0xf0] }
  0xb9   :  { %2056 = vmatpush.bf16.msrb.mxu1 %v4732_v10  ;;  %v4640_v10 = vor.u32 %v6260_v63, %v4639_v62  ;;  %v4735_v63 = vld [vmem:[%s9777_s1 + $0x520] sm:$0xf]  ;;  %v4327_v6 = vld [vmem:[%s9777_s1 + $0x1f0] sm:$0xf]  ;;  %v6266_v47 = vld [vmem:[%s9777_s1 + $0x4a4] sm:$0xf0] }
  0xba   :  { %2069 = vmatpush.bf16.msrb.mxu2 %v4924_v11  ;;  %v4231_v11 = vld [vmem:[%s9777_s1 + $0x130] sm:$0xf] }
  0xbb   :  { %2082 = vmatpush.bf16.msrb.mxu3 %v5116_v17  ;;  %v4615_v17 = vld [vmem:[%s9777_s1 + $0x430] sm:$0xf]  ;;  %v4232_v22 = vor.u32 %v6158_v12, %v4231_v11  ;;  %v6230_v12 = vld [vmem:[%s9777_s1 + $0x384] sm:$0xf0] }
  0xbc   :  { %2044 = vmatpush.bf16.msrb.mxu0 %v4516_v25  ;;  %v4616_v25 = vor.u32 %v6254_v18, %v4615_v17  ;;  %v4519_v11 = vld [vmem:[%s9777_s1 + $0x370] sm:$0xf] }
  0xbd   :  { %2057 = vmatpush.bf16.msrb.mxu1 %v4708_v26  ;;  %v4207_v26 = vld [vmem:[%s9777_s1 + $0x100] sm:$0xf] }
  0xbe   :  { %2070 = vmatpush.bf16.msrb.mxu2 %v4900_v27  ;;  %v6152_v27 = vld [vmem:[%s9777_s1 + $0x114] sm:$0xf0] }
  0xbf   :  { %2083 = vmatpush.bf16.msrb.mxu3 %v5092_v31  ;;  %v4591_v31 = vld [vmem:[%s9777_s1 + $0x400] sm:$0xf]  ;;  %v4208_v37 = vor.u32 %v6152_v27, %v4207_v26  ;;  %v6128_v26 = vld [vmem:[%s9777_s1 + $0x54] sm:$0xf0] }
  0xc0   :  { %2045 = vmatpush.bf16.msrb.mxu0 %v4492_v41  ;;  %v4592_v39 = vor.u32 %v6248_v33, %v4591_v31  ;;  %v6146_v41 = vld [vmem:[%s9777_s1 + $0xe4] sm:$0xf0]  ;;  %v4303_v27 = vld [vmem:[%s9777_s1 + $0x1c0] sm:$0xf]  ;;  %v6224_v31 = vld [vmem:[%s9777_s1 + $0x354] sm:$0xf0] }
  0xc1   :  { %2058 = vmatpush.bf16.msrb.mxu1 %v4684_v45  ;;  %v4567_v45 = vld [vmem:[%s9777_s1 + $0x3d0] sm:$0xf]  ;;  %v4184_v50 = vor.u32 %v6146_v41, %v4183_v40  ;;  %v4687_v33 = vld [vmem:[%s9777_s1 + $0x4c0] sm:$0xf]  ;;  %v4496_v40 = vor.u32 %v6224_v31, %v4495_v30 }
  0xc2   :  { %2071 = vmatpush.bf16.msrb.mxu2 %v4876_v46  ;;  %v6242_v46 = vld [vmem:[%s9777_s1 + $0x3e4] sm:$0xf0]  ;;  %v4279_v41 = vld [vmem:[%s9777_s1 + $0x190] sm:$0xf]  ;;  %v4688_v44 = vor.u32 %v6272_v34, %v4687_v33 }
  0xc3   :  { %2084 = vmatpush.bf16.msrb.mxu3 %v5068_v51  ;;  %v4568_v54 = vor.u32 %v6242_v46, %v4567_v45  ;;  %v6218_v45 = vld [vmem:[%s9777_s1 + $0x324] sm:$0xf0]  ;;  %v4663_v46 = vld [vmem:[%s9777_s1 + $0x490] sm:$0xf] }
  0xc4   :  { %2046 = vmatpush.bf16.msrb.mxu0 %v4468_v60  ;;  %v1840_v49 = vpop.f32.mrf.mxu0  ;;  %v4543_v60 = vld [vmem:[%s9777_s1 + $0x3a0] sm:$0xf]  ;;  %v4951_v31 = vld [vmem:[%s9777_s1 + $0x6d0] sm:$0xf]  ;;  %v6338_v33 = vld [vmem:[%s9777_s1 + $0x6e4] sm:$0xf0] }
  0xc5   :  { %2059 = vmatpush.bf16.msrb.mxu1 %v4660_v0  ;;  %v1841_v51 = vadd.f32 %v1840_v49, %v7927_v59  ;;  %v1853_v52 = vpop.f32.mrf.mxu1  ;;  %v6188_v59 = vld [vmem:[%s9777_s1 + $0x234] sm:$0xf0]  ;;  %v4544_v3 = vor.u32 %v6236_v61, %v4543_v60  ;;  %v5023_v49 = vld [vmem:[%s9777_s1 + $0x760] sm:$0xf]  ;;  %v4449_v60 = vld [vmem:[%s9777_s1 + $0x2f8] sm:$0xf0]  ;;  %v4664_v61 = vor.u32 %v6266_v47, %v4663_v46 }
  0xc6   :  { %2072 = vmatpush.bf16.msrb.mxu2 %v4852_v1  ;;  %v6284_v0 = vld [vmem:[%s9777_s1 + $0x534] sm:$0xf0]  ;;  %v4160_v1 = vor.u32 %v6140_v56, %v4159_v55  ;;  %v4352_v2 = vor.u32 %v6188_v59, %v4351_v57  ;;  %v6161_v55 = vld [vmem:[%s9777_s1 + $0x164] sm:$0xf]  ;;  %v4257_v56 = vld [vmem:[%s9777_s1 + $0x178] sm:$0xf0]  ;;  %v4280_v57 = vor.u32 %v6170_v42, %v4279_v41  ;;  %v4952_v42 = vor.u32 %v6338_v33, %v4951_v31 }
  0xc7   :  { %2085 = vmatpush.bf16.msrb.mxu3 %v5044_v4  ;;  %2047 = vmatmul.bf16.vlgmr.msrb.gmra.mxu0 %v6997_v9  ;;  %v8039_v62 = vadd.f32 %v1853_v52, %v1841_v51  ;;  %v4135_v4 = vld [vmem:[%s9777_s1 + $0x70] sm:$0xf]  ;;  %v5215_v51 = vld [vmem:[%s9777_s1 + $0x8e0] sm:$0xf]  ;;  %v6209_v59 = vld [vmem:[%s9777_s1 + $0x2e4] sm:$0xf] }
  0xc8   :  { %2091 = vmatpush.bf16.msra.mxu0 %v4256_v5  ;;  %2060 = vmatmul.bf16.vlgmr.msrb.gmra.mxu1 %v7024_v19  ;;  %v6134_v5 = vld [vmem:[%s9777_s1 + $0x84] sm:$0xf0]  ;;  %v5143_v34 = vld [vmem:[%s9777_s1 + $0x850] sm:$0xf]  ;;  %v4377_v41 = vld [vmem:[%s9777_s1 + $0x268] sm:$0xf0] }
  0xc9   :  { %2104 = vmatpush.bf16.msra.mxu1 %v4448_v7  ;;  %2073 = vmatmul.bf16.vlgmr.msrb.gmra.mxu2 %v7172_v32  ;;  %v4736_v7 = vor.u32 %v6284_v0, %v4735_v63  ;;  %v4136_v20 = vor.u32 %v6134_v5, %v4135_v4  ;;  %v5191_v4 = vld [vmem:[%s9777_s1 + $0x8b0] sm:$0xf]  ;;  %v4452_v5 = vor.u32 %v6209_v59, %v4449_v60  ;;  %v4927_v46 = vld [vmem:[%s9777_s1 + $0x6a0] sm:$0xf]  ;;  %v6332_v47 = vld [vmem:[%s9777_s1 + $0x6b4] sm:$0xf0] }
  0xca   :  { %2117 = vmatpush.bf16.msra.mxu2 %v4640_v10  ;;  %2086 = vmatmul.bf16.vlgmr.msrb.gmra.mxu3 %v7180_v35  ;;  %v6182_v10 = vld [vmem:[%s9777_s1 + $0x204] sm:$0xf0]  ;;  %v4903_v60 = vld [vmem:[%s9777_s1 + $0x670] sm:$0xf] }
  0xcb   :  { %2130 = vmatpush.bf16.msra.mxu3 %v4832_v14  ;;  %v4711_v14 = vld [vmem:[%s9777_s1 + $0x4f0] sm:$0xf]  ;;  %v4328_v23 = vor.u32 %v6182_v10, %v4327_v6  ;;  %v6398_v6 = vld [vmem:[%s9777_s1 + $0x8c4] sm:$0xf0]  ;;  %v4233_v10 = vld [vmem:[%s9777_s1 + $0x148] sm:$0xf0] }
  0xcc   :  { %2092 = vmatpush.bf16.msra.mxu0 %v4232_v22  ;;  %v1866_v13 = vpop.f32.mrf.mxu2  ;;  %v1842_v18 = vpop.f32.mrf.mxu0  ;;  %v4712_v28 = vor.u32 %v6278_v15, %v4711_v14  ;;  %v5192_v14 = vor.u32 %v6398_v6, %v5191_v4  ;;  %v4137_v4 = vld [vmem:[%s9777_s1 + $0x88] sm:$0xf0]  ;;  %v6314_v31 = vld [vmem:[%s9777_s1 + $0x624] sm:$0xf0] }
  0xcd   :  { %2105 = vmatpush.bf16.msra.mxu1 %v4424_v24  ;;  %v1879_v17 = vpop.f32.mrf.mxu3  ;;  %v1855_v22 = vpop.f32.mrf.mxu1  ;;  %v4520_v24 = vor.u32 %v6230_v12, %v4519_v11  ;;  %v6203_v11 = vld [vmem:[%s9777_s1 + $0x2b4] sm:$0xf]  ;;  %v4425_v12 = vld [vmem:[%s9777_s1 + $0x2c8] sm:$0xf0]  ;;  %v6344_v18 = vld [vmem:[%s9777_s1 + $0x714] sm:$0xf0] }
  0xce   :  { %2118 = vmatpush.bf16.msra.mxu2 %v4616_v25  ;;  %v8071_v21 = vadd.f32 %v1879_v17, %v1866_v13  ;;  %v4111_v25 = vld [vmem:[%s9777_s1 + $0x40] sm:$0xf]  ;;  %v4428_v22 = vor.u32 %v6203_v11, %v4425_v12 }
  0xcf   :  { %2131 = vmatpush.bf16.msra.mxu3 %v4808_v29  ;;  %v6176_v29 = vld [vmem:[%s9777_s1 + $0x1d4] sm:$0xf0]  ;;  %v4112_v36 = vor.u32 %v6128_v26, %v4111_v25  ;;  %v4975_v17 = vld [vmem:[%s9777_s1 + $0x700] sm:$0xf]  ;;  %v4209_v25 = vld [vmem:[%s9777_s1 + $0x118] sm:$0xf0] }
  0xd0   :  { %2093 = vmatpush.bf16.msra.mxu0 %v4208_v37  ;;  %v4087_v37 = vld [vmem:[%s9777_s1 + $0x10] sm:$0xf]  ;;  %v6197_v26 = vld [vmem:[%s9777_s1 + $0x284] sm:$0xf] }
  0xd1   :  { %2106 = vmatpush.bf16.msra.mxu1 %v4400_v38  ;;  %v6122_v38 = vld [vmem:[%s9777_s1 + $0x24] sm:$0xf0] }
  0xd2   :  { %2119 = vmatpush.bf16.msra.mxu2 %v4592_v39  ;;  %v4304_v39 = vor.u32 %v6176_v29, %v4303_v27  ;;  %v4401_v27 = vld [vmem:[%s9777_s1 + $0x298] sm:$0xf0] }
  0xd3   :  { %2132 = vmatpush.bf16.msra.mxu3 %v4784_v43  ;;  %v4471_v43 = vld [vmem:[%s9777_s1 + $0x310] sm:$0xf] }
  0xd4   :  { %2094 = vmatpush.bf16.msra.mxu0 %v4184_v50  ;;  %v1868_v48 = vpop.f32.mrf.mxu2  ;;  %v6356_v50 = vld [vmem:[%s9777_s1 + $0x774] sm:$0xf0] }
  0xd5   :  { %2107 = vmatpush.bf16.msra.mxu1 %v4376_v53  ;;  %v1881_v52 = vpop.f32.mrf.mxu3  ;;  %v4088_v53 = vor.u32 %v6122_v38, %v4087_v37  ;;  %v5024_v63 = vor.u32 %v6356_v50, %v5023_v49  ;;  %v6386_v37 = vld [vmem:[%s9777_s1 + $0x864] sm:$0xf0]  ;;  %v6143_v38 = vld [vmem:[%s9777_s1 + $0xd4] sm:$0xf]  ;;  %v5119_v48 = vld [vmem:[%s9777_s1 + $0x820] sm:$0xf] }
  0xd6   :  { %2120 = vmatpush.bf16.msra.mxu2 %v4568_v54  ;;  %v6404_v54 = vld [vmem:[%s9777_s1 + $0x8f4] sm:$0xf0] }
  0xd7   :  { %2133 = vmatpush.bf16.msra.mxu3 %v4760_v58  ;;  %v4472_v58 = vor.u32 %v6218_v45, %v4471_v43  ;;  %v5216_v0 = vor.u32 %v6404_v54, %v5215_v51  ;;  %v6380_v52 = vld [vmem:[%s9777_s1 + $0x834] sm:$0xf0]  ;;  %v4161_v54 = vld [vmem:[%s9777_s1 + $0xb8] sm:$0xf0] }
  0xd8   :  { %2095 = vmatpush.bf16.msra.mxu0 %v4160_v1  ;;  %v4260_v1 = vor.u32 %v6161_v55, %v4257_v56  ;;  %v6185_v55 = vld [vmem:[%s9777_s1 + $0x224] sm:$0xf] }
  0xd9   :  { %2108 = vmatpush.bf16.msra.mxu1 %v4352_v2  ;;  %v4999_v2 = vld [vmem:[%s9777_s1 + $0x730] sm:$0xf] }
  0xda   :  { %2121 = vmatpush.bf16.msra.mxu2 %v4544_v3  ;;  %v6350_v3 = vld [vmem:[%s9777_s1 + $0x744] sm:$0xf0] }
  0xdb   :  { %2134 = vmatpush.bf16.msra.mxu3 %v4736_v7  ;;  %v6155_v7 = vld [vmem:[%s9777_s1 + $0x134] sm:$0xf]  ;;  %v5000_v13 = vor.u32 %v6350_v3, %v4999_v2  ;;  %v6374_v2 = vld [vmem:[%s9777_s1 + $0x804] sm:$0xf0] }
  0xdc   :  { %2096 = vmatpush.bf16.msra.mxu0 %v4136_v20  ;;  %v4236_v15 = vor.u32 %v6155_v7, %v4233_v10  ;;  %v5167_v20 = vld [vmem:[%s9777_s1 + $0x880] sm:$0xf]  ;;  %v6131_v3 = vld [vmem:[%s9777_s1 + $0x74] sm:$0xf]  ;;  %v4329_v10 = vld [vmem:[%s9777_s1 + $0x208] sm:$0xf0] }
  0xdd   :  { %2109 = vmatpush.bf16.msra.mxu1 %v4328_v23  ;;  %v6392_v23 = vld [vmem:[%s9777_s1 + $0x894] sm:$0xf0]  ;;  %v6179_v7 = vld [vmem:[%s9777_s1 + $0x1f4] sm:$0xf] }
  0xde   :  { %2122 = vmatpush.bf16.msra.mxu2 %v4520_v24  ;;  %v6149_v24 = vld [vmem:[%s9777_s1 + $0x104] sm:$0xf]  ;;  %v5168_v29 = vor.u32 %v6392_v23, %v5167_v20  ;;  %v5071_v20 = vld [vmem:[%s9777_s1 + $0x7c0] sm:$0xf]  ;;  %v4332_v23 = vor.u32 %v6179_v7, %v4329_v10 }
  0xdf   :  { %2135 = vmatpush.bf16.msra.mxu3 %v4712_v28  ;;  %v4976_v28 = vor.u32 %v6344_v18, %v4975_v17  ;;  %v4212_v30 = vor.u32 %v6149_v24, %v4209_v25  ;;  %v4879_v17 = vld [vmem:[%s9777_s1 + $0x640] sm:$0xf]  ;;  %v6320_v18 = vld [vmem:[%s9777_s1 + $0x654] sm:$0xf0]  ;;  %v6125_v25 = vld [vmem:[%s9777_s1 + $0x44] sm:$0xf] }
  0xe0   :  { %2097 = vmatpush.bf16.msra.mxu0 %v4112_v36  ;;  %v4404_v36 = vor.u32 %v6197_v26, %v4401_v27  ;;  %v6368_v24 = vld [vmem:[%s9777_s1 + $0x7d4] sm:$0xf0]  ;;  %v4113_v26 = vld [vmem:[%s9777_s1 + $0x58] sm:$0xf0]  ;;  %v6173_v27 = vld [vmem:[%s9777_s1 + $0x1c4] sm:$0xf] }
  0xe1   :  { %2110 = vmatpush.bf16.msra.mxu1 %v4304_v39  ;;  %v4185_v39 = vld [vmem:[%s9777_s1 + $0xe8] sm:$0xf0]  ;;  %v5072_v33 = vor.u32 %v6368_v24, %v5071_v20  ;;  %v6245_v10 = vld [vmem:[%s9777_s1 + $0x404] sm:$0xf] }
  0xe2   :  { %2123 = vmatpush.bf16.msra.mxu2 %v4496_v40  ;;  %v6191_v40 = vld [vmem:[%s9777_s1 + $0x254] sm:$0xf]  ;;  %v4188_v45 = vor.u32 %v6143_v38, %v4185_v39  ;;  %v6389_v20 = vld [vmem:[%s9777_s1 + $0x884] sm:$0xf] }
  0xe3   :  { %2136 = vmatpush.bf16.msra.mxu3 %v4688_v44  ;;  %v5144_v44 = vor.u32 %v6386_v37, %v5143_v34  ;;  %v4380_v51 = vor.u32 %v6191_v40, %v4377_v41  ;;  %v4116_v34 = vor.u32 %v6125_v25, %v4113_v26  ;;  %v6362_v37 = vld [vmem:[%s9777_s1 + $0x7a4] sm:$0xf0]  ;;  %v6119_v38 = vld [vmem:[%s9777_s1 + $0x14] sm:$0xf]  ;;  %v4089_v41 = vld [vmem:[%s9777_s1 + $0x28] sm:$0xf0] }
  0xe4   :  { %2098 = vmatpush.bf16.msra.mxu0 %v4088_v53  ;;  %v1892_v43 = vpop.f32.mrf.mxu0  ;;  %v6137_v53 = vld [vmem:[%s9777_s1 + $0xa4] sm:$0xf]  ;;  %v4569_v26 = vld [vmem:[%s9777_s1 + $0x3e8] sm:$0xf0] }
  0xe5   :  { %2111 = vmatpush.bf16.msra.mxu1 %v4280_v57  ;;  %v1893_v49 = vadd.f32 %v1892_v43, %v8071_v21  ;;  %v1905_v50 = vpop.f32.mrf.mxu1  ;;  %v4353_v21 = vld [vmem:[%s9777_s1 + $0x238] sm:$0xf0]  ;;  %v4928_v57 = vor.u32 %v6332_v47, %v4927_v46  ;;  %v4164_v59 = vor.u32 %v6137_v53, %v4161_v54  ;;  %v4281_v43 = vld [vmem:[%s9777_s1 + $0x1a8] sm:$0xf0]  ;;  %v6305_v47 = vld [vmem:[%s9777_s1 + $0x5e4] sm:$0xf]  ;;  %v4092_v53 = vor.u32 %v6119_v38, %v4089_v41 }
  0xe6   :  { %2124 = vmatpush.bf16.msra.mxu2 %v4472_v58  ;;  %v5120_v58 = vor.u32 %v6380_v52, %v5119_v48  ;;  %v4641_v46 = vld [vmem:[%s9777_s1 + $0x478] sm:$0xf0]  ;;  %v6401_v54 = vld [vmem:[%s9777_s1 + $0x8e4] sm:$0xf] }
  0xe7   :  { %2137 = vmatpush.bf16.msra.mxu3 %v4664_v61  ;;  %2099 = vmatmul.bf16.vlgmr.msra.gmra.mxu0 %v6995_v8  ;;  %v1906_v56 = vadd.f32 %v1905_v50, %v1893_v49  ;;  %v6326_v61 = vld [vmem:[%s9777_s1 + $0x684] sm:$0xf0]  ;;  %v4833_v49 = vld [vmem:[%s9777_s1 + $0x5f8] sm:$0xf0]  ;;  %v6353_v50 = vld [vmem:[%s9777_s1 + $0x764] sm:$0xf] }
  0xe8   :  { %2143 = vmatpush.bf16.msrb.mxu0 %v5024_v63  ;;  %2112 = vmatmul.bf16.vlgmr.msra.gmra.mxu1 %v7014_v16  ;;  %v5095_v63 = vld [vmem:[%s9777_s1 + $0x7f0] sm:$0xf]  ;;  %v4904_v11 = vor.u32 %v6326_v61, %v4903_v60  ;;  %v4617_v60 = vld [vmem:[%s9777_s1 + $0x448] sm:$0xf0]  ;;  %v6299_v61 = vld [vmem:[%s9777_s1 + $0x5b4] sm:$0xf] }
  0xe9   :  { %2156 = vmatpush.bf16.msrb.mxu1 %v5216_v0  ;;  %2125 = vmatmul.bf16.vlgmr.msra.gmra.mxu2 %v6997_v9  ;;  %v4545_v41 = vld [vmem:[%s9777_s1 + $0x3b8] sm:$0xf0] }
  0xea   :  { %2169 = vmatpush.bf16.msrb.mxu2 %v4260_v1  ;;  %2138 = vmatmul.bf16.vlgmr.msra.gmra.mxu3 %v7024_v19  ;;  %v4356_v1 = vor.u32 %v6185_v55, %v4353_v21  ;;  %v5217_v55 = vld [vmem:[%s9777_s1 + $0x8f8] sm:$0xf0] }
  0xeb   :  { %2182 = vmatpush.bf16.msrb.mxu3 %v4452_v5 }
  0xec   :  { %2144 = vmatpush.bf16.msrb.mxu0 %v5000_v13  ;;  %v1918_v0 = vpop.f32.mrf.mxu2  ;;  %v1894_v13 = vpop.f32.mrf.mxu0 }
  0xed   :  { %2157 = vmatpush.bf16.msrb.mxu1 %v5192_v14  ;;  %v1919_v5 = vadd.f32 %v1918_v0, %v1906_v56  ;;  %v1931_v6 = vpop.f32.mrf.mxu3  ;;  %v5096_v14 = vor.u32 %v6374_v2, %v5095_v63  ;;  %v5220_v63 = vor.u32 %v6401_v54, %v5217_v55  ;;  %v4809_v0 = vld [vmem:[%s9777_s1 + $0x5c8] sm:$0xf0]  ;;  %v6293_v13 = vld [vmem:[%s9777_s1 + $0x584] sm:$0xf]  ;;  %v6275_v54 = vld [vmem:[%s9777_s1 + $0x4f4] sm:$0xf] }
  0xee   :  { %2170 = vmatpush.bf16.msrb.mxu2 %v4236_v15  ;;  %v4140_v15 = vor.u32 %v6131_v3, %v4137_v4  ;;  %v5001_v2 = vld [vmem:[%s9777_s1 + $0x748] sm:$0xf0]  ;;  %v6395_v3 = vld [vmem:[%s9777_s1 + $0x8b4] sm:$0xf] }
  0xef   :  { %2183 = vmatpush.bf16.msrb.mxu3 %v4428_v22  ;;  %v8270_v12 = vadd.f32 %v1931_v6, %v1919_v5  ;;  %v1907_v22 = vpop.f32.mrf.mxu1  ;;  %v5193_v4 = vld [vmem:[%s9777_s1 + $0x8c8] sm:$0xf0]  ;;  %v4812_v6 = vor.u32 %v6299_v61, %v4809_v0 }
  0xf0   :  { %2145 = vmatpush.bf16.msrb.mxu0 %v4976_v28  ;;  %v4305_v28 = vld [vmem:[%s9777_s1 + $0x1d8] sm:$0xf0] }
  0xf1   :  { %2158 = vmatpush.bf16.msrb.mxu1 %v5168_v29  ;;  %v4880_v29 = vor.u32 %v6320_v18, %v4879_v17  ;;  %v4308_v40 = vor.u32 %v6173_v27, %v4305_v28  ;;  %v6341_v17 = vld [vmem:[%s9777_s1 + $0x704] sm:$0xf]  ;;  %v4977_v18 = vld [vmem:[%s9777_s1 + $0x718] sm:$0xf0]  ;;  %v6287_v27 = vld [vmem:[%s9777_s1 + $0x554] sm:$0xf] }
  0xf2   :  { %2171 = vmatpush.bf16.msrb.mxu2 %v4212_v30  ;;  %v4855_v30 = vld [vmem:[%s9777_s1 + $0x610] sm:$0xf]  ;;  %v5169_v22 = vld [vmem:[%s9777_s1 + $0x898] sm:$0xf0]  ;;  %v4980_v25 = vor.u32 %v6341_v17, %v4977_v18  ;;  %v6215_v18 = vld [vmem:[%s9777_s1 + $0x314] sm:$0xf] }
  0xf3   :  { %2184 = vmatpush.bf16.msrb.mxu3 %v4404_v36  ;;  %v5047_v36 = vld [vmem:[%s9777_s1 + $0x790] sm:$0xf]  ;;  %v4856_v48 = vor.u32 %v6314_v31, %v4855_v30  ;;  %v5172_v28 = vor.u32 %v6389_v20, %v5169_v22  ;;  %v4953_v30 = vld [vmem:[%s9777_s1 + $0x6e8] sm:$0xf0]  ;;  %v6383_v31 = vld [vmem:[%s9777_s1 + $0x854] sm:$0xf] }
  0xf4   :  { %2146 = vmatpush.bf16.msrb.mxu0 %v4952_v42  ;;  %v1920_v39 = vpop.f32.mrf.mxu2  ;;  %v6167_v42 = vld [vmem:[%s9777_s1 + $0x194] sm:$0xf]  ;;  %v5048_v52 = vor.u32 %v6362_v37, %v5047_v36  ;;  %v4473_v20 = vld [vmem:[%s9777_s1 + $0x328] sm:$0xf0] }
  0xf5   :  { %2159 = vmatpush.bf16.msrb.mxu1 %v5144_v44  ;;  %v1933_v44 = vpop.f32.mrf.mxu3  ;;  %v4284_v21 = vor.u32 %v6167_v42, %v4281_v43  ;;  %v6281_v42 = vld [vmem:[%s9777_s1 + $0x524] sm:$0xf] }
  0xf6   :  { %2172 = vmatpush.bf16.msrb.mxu2 %v4188_v45  ;;  %v6257_v45 = vld [vmem:[%s9777_s1 + $0x464] sm:$0xf]  ;;  %v4737_v44 = vld [vmem:[%s9777_s1 + $0x538] sm:$0xf0] }
  0xf7   :  { %2185 = vmatpush.bf16.msrb.mxu3 %v4380_v51  ;;  %v5025_v51 = vld [vmem:[%s9777_s1 + $0x778] sm:$0xf0]  ;;  %v4644_v56 = vor.u32 %v6257_v45, %v4641_v46  ;;  %v6329_v45 = vld [vmem:[%s9777_s1 + $0x6a4] sm:$0xf] }
  0xf8   :  { %2147 = vmatpush.bf16.msrb.mxu0 %v4928_v57  ;;  %v4836_v57 = vor.u32 %v6305_v47, %v4833_v49  ;;  %v4929_v46 = vld [vmem:[%s9777_s1 + $0x6b8] sm:$0xf0]  ;;  %v6377_v47 = vld [vmem:[%s9777_s1 + $0x824] sm:$0xf] }
  0xf9   :  { %2160 = vmatpush.bf16.msrb.mxu1 %v5120_v58  ;;  %v5028_v58 = vor.u32 %v6353_v50, %v5025_v51  ;;  %v4740_v50 = vor.u32 %v6281_v42, %v4737_v44  ;;  %v4932_v51 = vor.u32 %v6329_v45, %v4929_v46  ;;  %v5319_v46 = vld [vmem:[%s9778_s2 + $0xc0] sm:$0xf] }
  0xfa   :  { %2173 = vmatpush.bf16.msrb.mxu2 %v4164_v59  ;;  %v6251_v59 = vld [vmem:[%s9777_s1 + $0x434] sm:$0xf] }
  0xfb   :  { %2186 = vmatpush.bf16.msrb.mxu3 %v4356_v1  ;;  %v6347_v1 = vld [vmem:[%s9777_s1 + $0x734] sm:$0xf]  ;;  %v4620_v5 = vor.u32 %v6251_v59, %v4617_v60  ;;  %v5097_v60 = vld [vmem:[%s9777_s1 + $0x808] sm:$0xf0] }
  0xfc   :  { %2148 = vmatpush.bf16.msrb.mxu0 %v4904_v11  ;;  %v5004_v7 = vor.u32 %v6347_v1, %v5001_v2  ;;  %v4593_v11 = vld [vmem:[%s9777_s1 + $0x418] sm:$0xf0]  ;;  %v6371_v59 = vld [vmem:[%s9777_s1 + $0x7f4] sm:$0xf] }
  0xfd   :  { %2161 = vmatpush.bf16.msrb.mxu1 %v5096_v14  ;;  %v5196_v14 = vor.u32 %v6395_v3, %v5193_v4  ;;  %v6221_v4 = vld [vmem:[%s9777_s1 + $0x344] sm:$0xf] }
  0xfe   :  { %2174 = vmatpush.bf16.msrb.mxu2 %v4140_v15  ;;  %v4785_v15 = vld [vmem:[%s9777_s1 + $0x598] sm:$0xf0] }
  0xff   :  { %2187 = vmatpush.bf16.msrb.mxu3 %v4332_v23  ;;  %v4596_v23 = vor.u32 %v6245_v10, %v4593_v11  ;;  %v4788_v24 = vor.u32 %v6293_v13, %v4785_v15  ;;  %v4689_v10 = vld [vmem:[%s9777_s1 + $0x4d8] sm:$0xf0]  ;;  %v6317_v11 = vld [vmem:[%s9777_s1 + $0x644] sm:$0xf] }
 0x100   :  { %2149 = vmatpush.bf16.msrb.mxu0 %v4880_v29  ;;  %v6335_v29 = vld [vmem:[%s9777_s1 + $0x6d4] sm:$0xf]  ;;  %v4881_v13 = vld [vmem:[%s9777_s1 + $0x658] sm:$0xf0] }
 0x101   :  { %2162 = vmatpush.bf16.msrb.mxu1 %v5072_v33  ;;  %v5145_v33 = vld [vmem:[%s9777_s1 + $0x868] sm:$0xf0]  ;;  %v4956_v39 = vor.u32 %v6335_v29, %v4953_v30  ;;  %v5073_v15 = vld [vmem:[%s9777_s1 + $0x7d8] sm:$0xf0]  ;;  %v5335_v30 = vld [vmem:[%s9778_s2 + $0xe0] sm:$0xf] }
 0x102   :  { %2175 = vmatpush.bf16.msrb.mxu2 %v4116_v34  ;;  %v5148_v43 = vor.u32 %v6383_v31, %v5145_v33  ;;  %v6435_v31 = vld [vmem:[%s9778_s2 + $0xec] sm:$0xf0]  ;;  %v5463_v33 = vld [vmem:[%s9778_s2 + $0x1e0] sm:$0xf] }
 0x103   :  { %2188 = vmatpush.bf16.msrb.mxu3 %v4308_v40  ;;  %v6233_v40 = vld [vmem:[%s9777_s1 + $0x3a4] sm:$0xf]  ;;  %v5336_v45 = vor.u32 %v6435_v31, %v5335_v30  ;;  %v6483_v30 = vld [vmem:[%s9778_s2 + $0x26c] sm:$0xf0] }
 0x104   :  { %2150 = vmatpush.bf16.msrb.mxu0 %v4856_v48  ;;  %v8420_v34 = vpop.f32.mrf.mxu0  ;;  %v5121_v48 = vld [vmem:[%s9777_s1 + $0x838] sm:$0xf0]  ;;  %v4548_v49 = vor.u32 %v6233_v40, %v4545_v41  ;;  %v5591_v40 = vld [vmem:[%s9778_s2 + $0x2e0] sm:$0xf]  ;;  %v6499_v41 = vld [vmem:[%s9778_s2 + $0x2ec] sm:$0xf0] }
 0x105   :  { %2163 = vmatpush.bf16.msrb.mxu1 %v5048_v52  ;;  %v8422_v37 = vpop.f32.mrf.mxu1  ;;  %v6227_v52 = vld [vmem:[%s9777_s1 + $0x374] sm:$0xf]  ;;  %v5124_v55 = vor.u32 %v6377_v47, %v5121_v48  ;;  %v6431_v47 = vld [vmem:[%s9778_s2 + $0xcc] sm:$0xf0] }
 0x106   :  { %2176 = vmatpush.bf16.msrb.mxu2 %v4092_v53  ;;  %v4521_v53 = vld [vmem:[%s9777_s1 + $0x388] sm:$0xf0] }
 0x107   :  { %2189 = vmatpush.bf16.msrb.mxu3 %v4284_v21  ;;  %2151 = vmatmul.bf16.vlgmr.msrb.gmra.mxu0 %v7172_v32  ;;  %v4713_v21 = vld [vmem:[%s9777_s1 + $0x508] sm:$0xf0]  ;;  %v4524_v0 = vor.u32 %v6227_v52, %v4521_v53  ;;  %v6531_v52 = vld [vmem:[%s9778_s2 + $0x3ec] sm:$0xf0] }
 0x108   :  { %2195 = vmatpush.bf16.msra.mxu0 %v4644_v56  ;;  %2164 = vmatmul.bf16.vlgmr.msrb.gmra.mxu1 %v7180_v35  ;;  %v6323_v56 = vld [vmem:[%s9777_s1 + $0x674] sm:$0xf]  ;;  %v4716_v2 = vor.u32 %v6275_v54, %v4713_v21  ;;  %v6463_v53 = vld [vmem:[%s9778_s2 + $0x1cc] sm:$0xf0]  ;;  %v5575_v54 = vld [vmem:[%s9778_s2 + $0x2c0] sm:$0xf]  ;;  %v1958_v21 = vadd.f32 %v8422_v37, %v8420_v34 }
 0x109   :  { %2208 = vmatpush.bf16.msra.mxu1 %v4836_v57  ;;  %2177 = vmatmul.bf16.vlgmr.msrb.gmra.mxu2 %v6995_v8  ;;  %v6239_v8 = vld [vmem:[%s9777_s1 + $0x3d4] sm:$0xf]  ;;  %v4905_v57 = vld [vmem:[%s9777_s1 + $0x688] sm:$0xf0]  ;;  %v5431_v34 = vld [vmem:[%s9778_s2 + $0x1a0] sm:$0xf] }
 0x10a   :  { %2221 = vmatpush.bf16.msra.mxu2 %v5028_v58  ;;  %2190 = vmatmul.bf16.vlgmr.msrb.gmra.mxu3 %v7014_v16  ;;  %v4761_v16 = vld [vmem:[%s9777_s1 + $0x568] sm:$0xf0]  ;;  %v4572_v36 = vor.u32 %v6239_v8, %v4569_v26  ;;  %v4908_v3 = vor.u32 %v6323_v56, %v4905_v57  ;;  %v6311_v8 = vld [vmem:[%s9777_s1 + $0x614] sm:$0xf]  ;;  %v5320_v56 = vor.u32 %v6431_v47, %v5319_v46  ;;  %v5303_v57 = vld [vmem:[%s9778_s2 + $0xa0] sm:$0xf] }
 0x10b   :  { %2234 = vmatpush.bf16.msra.mxu3 %v5220_v63  ;;  %v4764_v38 = vor.u32 %v6287_v27, %v4761_v16  ;;  %v4857_v27 = vld [vmem:[%s9777_s1 + $0x628] sm:$0xf0]  ;;  %v5703_v37 = vld [vmem:[%s9778_s2 + $0x3c0] sm:$0xf]  ;;  %v6479_v47 = vld [vmem:[%s9778_s2 + $0x24c] sm:$0xf0] }
 0x10c   :  { %2196 = vmatpush.bf16.msra.mxu0 %v4620_v5  ;;  %v8466_v58 = vpop.f32.mrf.mxu2  ;;  %v1946_v61 = vpop.f32.mrf.mxu0  ;;  %v4497_v5 = vld [vmem:[%s9777_s1 + $0x358] sm:$0xf0]  ;;  %v5049_v16 = vld [vmem:[%s9777_s1 + $0x7a8] sm:$0xf0]  ;;  %v5511_v46 = vld [vmem:[%s9778_s2 + $0x240] sm:$0xf] }
 0x10d   :  { %2209 = vmatpush.bf16.msra.mxu1 %v4812_v6  ;;  %v8474_v63 = vpop.f32.mrf.mxu3  ;;  %v1959_v1 = vpop.f32.mrf.mxu1  ;;  %v6269_v6 = vld [vmem:[%s9777_s1 + $0x4c4] sm:$0xf]  ;;  %v4500_v17 = vor.u32 %v6221_v4, %v4497_v5  ;;  %v6491_v4 = vld [vmem:[%s9778_s2 + $0x2ac] sm:$0xf0]  ;;  %v5287_v5 = vld [vmem:[%s9778_s2 + $0x80] sm:$0xf] }
 0x10e   :  { %2222 = vmatpush.bf16.msra.mxu2 %v5004_v7  ;;  %v5100_v7 = vor.u32 %v6371_v59, %v5097_v60  ;;  %v4692_v22 = vor.u32 %v6269_v6, %v4689_v10  ;;  %v6427_v59 = vld [vmem:[%s9778_s2 + $0xac] sm:$0xf0] }
 0x10f   :  { %2235 = vmatpush.bf16.msra.mxu3 %v5196_v14  ;;  %v6365_v14 = vld [vmem:[%s9777_s1 + $0x7c4] sm:$0xf]  ;;  %v6527_v1 = vld [vmem:[%s9778_s2 + $0x3cc] sm:$0xf0] }
 0x110   :  { %2197 = vmatpush.bf16.msra.mxu0 %v4596_v23  ;;  %v4884_v23 = vor.u32 %v6317_v11, %v4881_v13  ;;  %v5076_v26 = vor.u32 %v6365_v14, %v5073_v15  ;;  %v6423_v6 = vld [vmem:[%s9778_s2 + $0x8c] sm:$0xf0]  ;;  %v5543_v14 = vld [vmem:[%s9778_s2 + $0x280] sm:$0xf] }
 0x111   :  { %2210 = vmatpush.bf16.msra.mxu1 %v4788_v24  ;;  %v6263_v24 = vld [vmem:[%s9777_s1 + $0x494] sm:$0xf]  ;;  %v6523_v11 = vld [vmem:[%s9778_s2 + $0x3ac] sm:$0xf0] }
 0x112   :  { %2223 = vmatpush.bf16.msra.mxu2 %v4980_v25  ;;  %v4665_v25 = vld [vmem:[%s9777_s1 + $0x4a8] sm:$0xf0]  ;;  %v6455_v13 = vld [vmem:[%s9778_s2 + $0x18c] sm:$0xf0] }
 0x113   :  { %2236 = vmatpush.bf16.msra.mxu3 %v5172_v28  ;;  %v6359_v28 = vld [vmem:[%s9777_s1 + $0x794] sm:$0xf]  ;;  %v4668_v42 = vor.u32 %v6263_v24, %v4665_v25  ;;  %v6487_v15 = vld [vmem:[%s9778_s2 + $0x28c] sm:$0xf0] }
 0x114   :  { %2198 = vmatpush.bf16.msra.mxu0 %v4572_v36  ;;  %v1972_v29 = vpop.f32.mrf.mxu2  ;;  %v5052_v44 = vor.u32 %v6359_v28, %v5049_v16  ;;  %v6519_v28 = vld [vmem:[%s9778_s2 + $0x38c] sm:$0xf0] }
 0x115   :  { %2211 = vmatpush.bf16.msra.mxu1 %v4764_v38  ;;  %v1985_v36 = vpop.f32.mrf.mxu3  ;;  %v4476_v38 = vor.u32 %v6215_v18, %v4473_v20  ;;  %v5288_v20 = vor.u32 %v6423_v6, %v5287_v5  ;;  %v6451_v16 = vld [vmem:[%s9778_s2 + $0x16c] sm:$0xf0]  ;;  %v5527_v29 = vld [vmem:[%s9778_s2 + $0x260] sm:$0xf] }
 0x116   :  { %2224 = vmatpush.bf16.msra.mxu2 %v4956_v39  ;;  %v6467_v39 = vld [vmem:[%s9778_s2 + $0x1ec] sm:$0xf0]  ;;  %v5255_v36 = vld [vmem:[%s9778_s2 + $0x40] sm:$0xf] }
 0x117   :  { %2237 = vmatpush.bf16.msra.mxu3 %v5148_v43  ;;  %v4860_v43 = vor.u32 %v6311_v8, %v4857_v27  ;;  %v5464_v48 = vor.u32 %v6467_v39, %v5463_v33  ;;  %v5671_v27 = vld [vmem:[%s9778_s2 + $0x380] sm:$0xf]  ;;  %v6439_v5 = vld [vmem:[%s9778_s2 + $0x10c] sm:$0xf0] }
 0x118   :  { %2199 = vmatpush.bf16.msra.mxu0 %v4548_v49  ;;  %v5592_v49 = vor.u32 %v6499_v41, %v5591_v40  ;;  %v5672_v39 = vor.u32 %v6519_v28, %v5671_v27  ;;  %v5528_v41 = vor.u32 %v6483_v30, %v5527_v29  ;;  %v5623_v6 = vld [vmem:[%s9778_s2 + $0x320] sm:$0xf]  ;;  %v5321_v28 = vld [vmem:[%s9778_s2 + $0xd0] sm:$0xf0] }
 0x119   :  { %2212 = vmatpush.bf16.msra.mxu1 %v4740_v50  ;;  %v5447_v50 = vld [vmem:[%s9778_s2 + $0x1c0] sm:$0xf]  ;;  %v5465_v29 = vld [vmem:[%s9778_s2 + $0x1f0] sm:$0xf0] }
 0x11a   :  { %2225 = vmatpush.bf16.msra.mxu2 %v4932_v51  ;;  %v5719_v51 = vld [vmem:[%s9778_s2 + $0x3e0] sm:$0xf]  ;;  %v5448_v61 = vor.u32 %v6463_v53, %v5447_v50 }
 0x11b   :  { %2238 = vmatpush.bf16.msra.mxu3 %v5124_v55  ;;  %v6495_v55 = vld [vmem:[%s9778_s2 + $0x2cc] sm:$0xf0]  ;;  %v5720_v60 = vor.u32 %v6531_v52, %v5719_v51  ;;  %v5239_v53 = vld [vmem:[%s9778_s2 + $0x20] sm:$0xf] }
 0x11c   :  { %2200 = vmatpush.bf16.msra.mxu0 %v4524_v0  ;;  %v5576_v0 = vor.u32 %v6495_v55, %v5575_v54  ;;  %v6411_v54 = vld [vmem:[%s9778_s2 + $0x2c] sm:$0xf0] }
 0x11d   :  { %2213 = vmatpush.bf16.msra.mxu1 %v4716_v2  ;;  %v6459_v2 = vld [vmem:[%s9778_s2 + $0x1ac] sm:$0xf0] }
 0x11e   :  { %2226 = vmatpush.bf16.msra.mxu2 %v4908_v3  ;;  %v5559_v3 = vld [vmem:[%s9778_s2 + $0x2a0] sm:$0xf]  ;;  %v5432_v10 = vor.u32 %v6459_v2, %v5431_v34 }
 0x11f   :  { %2239 = vmatpush.bf16.msra.mxu3 %v5100_v7  ;;  %v5704_v7 = vor.u32 %v6527_v1, %v5703_v37  ;;  %v5495_v34 = vld [vmem:[%s9778_s2 + $0x220] sm:$0xf]  ;;  %v6475_v37 = vld [vmem:[%s9778_s2 + $0x22c] sm:$0xf0]  ;;  %v5240_v1 = vor.u32 %v6411_v54, %v5239_v53 }
 0x120   :  { %2201 = vmatpush.bf16.msra.mxu0 %v4500_v17  ;;  %v5223_v2 = vld [vmem:[%s9778_s2] sm:$0xf] }
 0x121   :  { %2214 = vmatpush.bf16.msra.mxu1 %v4692_v22  ;;  %v5271_v22 = vld [vmem:[%s9778_s2 + $0x60] sm:$0xf] }
 0x122   :  { %2227 = vmatpush.bf16.msra.mxu2 %v4884_v23  ;;  %v6419_v23 = vld [vmem:[%s9778_s2 + $0x6c] sm:$0xf0] }
 0x123   :  { %2240 = vmatpush.bf16.msra.mxu3 %v5076_v26  ;;  %v5544_v26 = vor.u32 %v6487_v15, %v5543_v14  ;;  %v5272_v33 = vor.u32 %v6419_v23, %v5271_v22  ;;  %v6563_v14 = vld [vmem:[%s9778_s2 + $0x4ec] sm:$0xf0] }
 0x124   :  { %2202 = vmatpush.bf16.msra.mxu0 %v4476_v38  ;;  %v1996_v18 = vpop.f32.mrf.mxu0  ;;  %v6415_v38 = vld [vmem:[%s9778_s2 + $0x4c] sm:$0xf0] }
 0x125   :  { %2215 = vmatpush.bf16.msra.mxu1 %v4668_v42  ;;  %v2009_v24 = vpop.f32.mrf.mxu1  ;;  %v5383_v42 = vld [vmem:[%s9778_s2 + $0x140] sm:$0xf]  ;;  %v5256_v52 = vor.u32 %v6415_v38, %v5255_v36 }
 0x126   :  { %2228 = vmatpush.bf16.msra.mxu2 %v4860_v43  ;;  %v5655_v43 = vld [vmem:[%s9778_s2 + $0x360] sm:$0xf] }
 0x127   :  { %2241 = vmatpush.bf16.msra.mxu3 %v5052_v44  ;;  %2203 = vmatmul.bf16.vlgmr.msra.gmra.mxu0 %v6997_v9  ;;  %v1971_v9 = vadd.f32 %v8466_v58, %v1958_v21  ;;  %v5687_v58 = vld [vmem:[%s9778_s2 + $0x3a0] sm:$0xf]  ;;  %v6515_v44 = vld [vmem:[%s9778_s2 + $0x36c] sm:$0xf0] }
 0x128   :  { %3421 = vmatpush.bf16.msrb.mxu0 %v5336_v45  ;;  %2216 = vmatmul.bf16.vlgmr.msra.gmra.mxu1 %v7024_v19  ;;  %v5304_v19 = vor.u32 %v6427_v59, %v5303_v57  ;;  %v5688_v25 = vor.u32 %v6523_v11, %v5687_v58  ;;  %v6447_v45 = vld [vmem:[%s9778_s2 + $0x14c] sm:$0xf0]  ;;  %v5656_v55 = vor.u32 %v6515_v44, %v5655_v43  ;;  %v5367_v59 = vld [vmem:[%s9778_s2 + $0x120] sm:$0xf]  ;;  %v5337_v58 = vld [vmem:[%s9778_s2 + $0xf0] sm:$0xf0] }
 0x129   :  { %3434 = vmatpush.bf16.msrb.mxu1 %v5464_v48  ;;  %2229 = vmatmul.bf16.vlgmr.msra.gmra.mxu2 %v7172_v32  ;;  %v5560_v32 = vor.u32 %v6491_v4, %v5559_v3  ;;  %v1984_v17 = vadd.f32 %v8474_v63, %v1971_v9  ;;  %v5399_v63 = vld [vmem:[%s9778_s2 + $0x160] sm:$0xf]  ;;  %v5512_v57 = vor.u32 %v6479_v47, %v5511_v46  ;;  %v6407_v3 = vld [vmem:[%s9778_s2 + $0xc] sm:$0xf0]  ;;  %v5305_v43 = vld [vmem:[%s9778_s2 + $0xb0] sm:$0xf0] }
 0x12a   :  { %3447 = vmatpush.bf16.msrb.mxu2 %v5592_v49  ;;  %2242 = vmatmul.bf16.vlgmr.msra.gmra.mxu3 %v7180_v35  ;;  %v5415_v35 = vld [vmem:[%s9778_s2 + $0x180] sm:$0xf]  ;;  %v5400_v40 = vor.u32 %v6451_v16, %v5399_v63  ;;  %v5224_v15 = vor.u32 %v6407_v3, %v5223_v2  ;;  %v6465_v16 = vld [vmem:[%s9778_s2 + $0x1e4] sm:$0xf]  ;;  %v5417_v3 = vld [vmem:[%s9778_s2 + $0x190] sm:$0xf0] }
 0x12b   :  { %3460 = vmatpush.bf16.msrb.mxu3 %v5720_v60  ;;  %v5416_v8 = vor.u32 %v6455_v13, %v5415_v35  ;;  %v1997_v31 = vadd.f32 %v1996_v18, %v1984_v17  ;;  %v5639_v60 = vld [vmem:[%s9778_s2 + $0x340] sm:$0xf]  ;;  %v6461_v44 = vld [vmem:[%s9778_s2 + $0x1c4] sm:$0xf] }
 0x12c   :  { %3422 = vmatpush.bf16.msrb.mxu0 %v5320_v56  ;;  %v8670_v48 = vpop.f32.mrf.mxu2  ;;  %v1998_v51 = vpop.f32.mrf.mxu0  ;;  %v5384_v56 = vor.u32 %v6447_v45, %v5383_v42  ;;  %v5351_v4 = vld [vmem:[%s9778_s2 + $0x100] sm:$0xf]  ;;  %v5468_v42 = vor.u32 %v6465_v16, %v5465_v29  ;;  %v5449_v45 = vld [vmem:[%s9778_s2 + $0x1d0] sm:$0xf0]  ;;  %v6453_v2 = vld [vmem:[%s9778_s2 + $0x184] sm:$0xf] }
 0x12d   :  { %3435 = vmatpush.bf16.msrb.mxu1 %v5448_v61  ;;  %v2010_v49 = vadd.f32 %v2009_v24, %v1997_v31  ;;  %v8672_v50 = vpop.f32.mrf.mxu3  ;;  %v2011_v21 = vpop.f32.mrf.mxu1  ;;  %v6511_v61 = vld [vmem:[%s9778_s2 + $0x34c] sm:$0xf0]  ;;  %v5847_v13 = vld [vmem:[%s9778_s2 + $0x4e0] sm:$0xf]  ;;  %v5452_v53 = vor.u32 %v6461_v44, %v5449_v45  ;;  %v6405_v29 = vld [vmem:[%s9778_s2 + $0x4] sm:$0xf] }
 0x12e   :  { %3448 = vmatpush.bf16.msrb.mxu2 %v5576_v0  ;;  %v6443_v0 = vld [vmem:[%s9778_s2 + $0x12c] sm:$0xf0]  ;;  %v5640_v9 = vor.u32 %v6511_v61, %v5639_v60  ;;  %v5848_v63 = vor.u32 %v6563_v14, %v5847_v13  ;;  %v5831_v31 = vld [vmem:[%s9778_s2 + $0x4c0] sm:$0xf]  ;;  %v2036_v54 = vadd.f32 %v8672_v50, %v8670_v48  ;;  %v6457_v21 = vld [vmem:[%s9778_s2 + $0x1a4] sm:$0xf] }
 0x12f   :  { %3461 = vmatpush.bf16.msrb.mxu3 %v5704_v7  ;;  %6633 = vtanh.f32 %v2010_v49  ;;  %v6507_v7 = vld [vmem:[%s9778_s2 + $0x32c] sm:$0xf0]  ;;  %v5815_v47 = vld [vmem:[%s9778_s2 + $0x4a0] sm:$0xf]  ;;  %v6417_v61 = vld [vmem:[%s9778_s2 + $0x64] sm:$0xf] }
 0x130   :  { %3423 = vmatpush.bf16.msrb.mxu0 %v5304_v19  ;;  %6635 = vtanh.f32 %v8039_v62  ;;  %v5368_v62 = vor.u32 %v6443_v0, %v5367_v59  ;;  %v5496_v19 = vor.u32 %v6475_v37, %v5495_v34  ;;  %v5624_v17 = vor.u32 %v6507_v7, %v5623_v6  ;;  %v6555_v49 = vld [vmem:[%s9778_s2 + $0x4ac] sm:$0xf0]  ;;  %v5799_v59 = vld [vmem:[%s9778_s2 + $0x480] sm:$0xf]  ;;  %v6413_v6 = vld [vmem:[%s9778_s2 + $0x44] sm:$0xf] }
 0x131   :  { %3436 = vmatpush.bf16.msrb.mxu1 %v5432_v10  ;;  %6637 = vtanh.f32 %v8270_v12  ;;  %v5479_v12 = vld [vmem:[%s9778_s2 + $0x200] sm:$0xf]  ;;  %v6471_v10 = vld [vmem:[%s9778_s2 + $0x20c] sm:$0xf0]  ;;  %v5420_v7 = vor.u32 %v6453_v2, %v5417_v3  ;;  %v5849_v44 = vld [vmem:[%s9778_s2 + $0x4f0] sm:$0xf0] }
 0x132   :  { %3449 = vmatpush.bf16.msrb.mxu2 %v5560_v32  ;;  %v6433_v32 = vld [vmem:[%s9778_s2 + $0xe4] sm:$0xf]  ;;  %v5480_v22 = vor.u32 %v6471_v10, %v5479_v12  ;;  %v6551_v48 = vld [vmem:[%s9778_s2 + $0x48c] sm:$0xf0]  ;;  %v5257_v10 = vld [vmem:[%s9778_s2 + $0x50] sm:$0xf0] }
 0x133   :  { %3462 = vmatpush.bf16.msrb.mxu3 %v5688_v25  ;;  %v5340_v24 = vor.u32 %v6433_v32, %v5337_v58  ;;  %v6429_v25 = vld [vmem:[%s9778_s2 + $0xc4] sm:$0xf]  ;;  %v5767_v14 = vld [vmem:[%s9778_s2 + $0x440] sm:$0xf]  ;;  %v5577_v3 = vld [vmem:[%s9778_s2 + $0x2d0] sm:$0xf0] }
 0x134   :  { %3424 = vmatpush.bf16.msrb.mxu0 %v5288_v20  ;;  %v2024_v35 = vpop.f32.mrf.mxu2  ;;  %v5352_v20 = vor.u32 %v6439_v5, %v5351_v4  ;;  %v5800_v4 = vor.u32 %v6551_v48, %v5799_v59  ;;  %v6449_v32 = vld [vmem:[%s9778_s2 + $0x164] sm:$0xf]  ;;  %v5353_v59 = vld [vmem:[%s9778_s2 + $0x110] sm:$0xf0] }
 0x135   :  { %3437 = vmatpush.bf16.msrb.mxu1 %v5416_v8  ;;  %v2037_v11 = vpop.f32.mrf.mxu3  ;;  %v6634_v18 = vpop.eup %6633  ;;  %v5607_v8 = vld [vmem:[%s9778_s2 + $0x300] sm:$0xf]  ;;  %v5401_v35 = vld [vmem:[%s9778_s2 + $0x170] sm:$0xf0]  ;;  %v6493_v2 = vld [vmem:[%s9778_s2 + $0x2c4] sm:$0xf] }
 0x136   :  { %3450 = vmatpush.bf16.msrb.mxu2 %v5544_v26  ;;  %v6636_v23 = vpop.eup %6635  ;;  %v6503_v26 = vld [vmem:[%s9778_s2 + $0x30c] sm:$0xf0]  ;;  %v8754_v30 = vpack.c.bf16 %v6634_v18, %v6634_v18  ;;  %v5260_v18 = vor.u32 %v6413_v6, %v5257_v10 }
 0x137   :  { %3463 = vmatpush.bf16.msrb.mxu3 %v5672_v39  ;;  %v6638_v27 = vpop.eup %6637  ;;  %v8762_v36 = vpack.c.bf16 %v6636_v23, %v6636_v23  ;;  %v5608_v38 = vor.u32 %v6503_v26, %v5607_v8  ;;  %v5385_v8 = vld [vmem:[%s9778_s2 + $0x150] sm:$0xf0]  ;;  %v6591_v6 = vld [vmem:[%s9778_s2 + $0x5cc] sm:$0xf0] }
 0x138   :  { %3425 = vmatpush.bf16.msrb.mxu0 %v5272_v33  ;;  %v6559_v33 = vld [vmem:[%s9778_s2 + $0x4cc] sm:$0xf0]  ;;  %v8764_v39 = vpack.c.bf16 %v6638_v27, %v6638_v27  ;;  %v5751_v27 = vld [vmem:[%s9778_s2 + $0x420] sm:$0xf] }
 0x139   :  { %3438 = vmatpush.bf16.msrb.mxu1 %v5400_v40  ;;  %v5324_v40 = vor.u32 %v6429_v25, %v5321_v28  ;;  %v5832_v46 = vor.u32 %v6559_v33, %v5831_v31  ;;  %v6445_v25 = vld [vmem:[%s9778_s2 + $0x144] sm:$0xf]  ;;  %v6539_v28 = vld [vmem:[%s9778_s2 + $0x42c] sm:$0xf0]  ;;  %v5225_v31 = vld [vmem:[%s9778_s2 + $0x10] sm:$0xf0] }
 0x13a   :  { %3451 = vmatpush.bf16.msrb.mxu2 %v5528_v41  ;;  %v6425_v41 = vld [vmem:[%s9778_s2 + $0xa4] sm:$0xf]  ;;  %v5388_v33 = vor.u32 %v6445_v25, %v5385_v8  ;;  %v5945_v25 = vld [vmem:[%s9778_s2 + $0x5b0] sm:$0xf0] }
 0x13b   :  { %3464 = vmatpush.bf16.msrb.mxu3 %v5656_v55  ;;  %v5308_v51 = vor.u32 %v6425_v41, %v5305_v43  ;;  %v5289_v55 = vld [vmem:[%s9778_s2 + $0x90] sm:$0xf0]  ;;  %v5752_v43 = vor.u32 %v6539_v28, %v5751_v27  ;;  %v6485_v8 = vld [vmem:[%s9778_s2 + $0x284] sm:$0xf] }
 0x13c   :  { %3426 = vmatpush.bf16.msrb.mxu0 %v5256_v52  ;;  %v6421_v52 = vld [vmem:[%s9778_s2 + $0x84] sm:$0xf]  ;;  %v5369_v41 = vld [vmem:[%s9778_s2 + $0x130] sm:$0xf0] }
 0x13d   :  { %3439 = vmatpush.bf16.msrb.mxu1 %v5384_v56  ;;  %v5433_v56 = vld [vmem:[%s9778_s2 + $0x1b0] sm:$0xf0]  ;;  %v5292_v50 = vor.u32 %v6421_v52, %v5289_v55  ;;  %v6545_v27 = vld [vmem:[%s9778_s2 + $0x464] sm:$0xf] }
 0x13e   :  { %3452 = vmatpush.bf16.msrb.mxu2 %v5512_v57  ;;  %v5816_v57 = vor.u32 %v6555_v49, %v5815_v47  ;;  %v5436_v0 = vor.u32 %v6457_v21, %v5433_v56  ;;  %v6535_v47 = vld [vmem:[%s9778_s2 + $0x40c] sm:$0xf0]  ;;  %v6497_v49 = vld [vmem:[%s9778_s2 + $0x2e4] sm:$0xf] }
 0x13f   :  { %3465 = vmatpush.bf16.msrb.mxu3 %v5640_v9  ;;  %v5783_v9 = vld [vmem:[%s9778_s2 + $0x460] sm:$0xf]  ;;  %v6437_v21 = vld [vmem:[%s9778_s2 + $0x104] sm:$0xf] }
 0x140   :  { %3427 = vmatpush.bf16.msrb.mxu0 %v5240_v1  ;;  %v5273_v1 = vld [vmem:[%s9778_s2 + $0x70] sm:$0xf0] }
 0x141   :  { %3440 = vmatpush.bf16.msrb.mxu1 %v5368_v62  ;;  %v6547_v62 = vld [vmem:[%s9778_s2 + $0x46c] sm:$0xf0]  ;;  %v5276_v5 = vor.u32 %v6417_v61, %v5273_v1  ;;  %v5833_v61 = vld [vmem:[%s9778_s2 + $0x4d0] sm:$0xf0] }
 0x142   :  { %3453 = vmatpush.bf16.msrb.mxu2 %v5496_v19  ;;  %v5784_v58 = vor.u32 %v6547_v62, %v5783_v9  ;;  %v5977_v1 = vld [vmem:[%s9778_s2 + $0x5f0] sm:$0xf0]  ;;  %v6553_v62 = vld [vmem:[%s9778_s2 + $0x4a4] sm:$0xf] }
 0x143   :  { %3466 = vmatpush.bf16.msrb.mxu3 %v5624_v17 }
 0x144   :  { %3428 = vmatpush.bf16.msrb.mxu0 %v5224_v15  ;;  %v2048_v60 = vpop.f32.mrf.mxu0  ;;  %v6543_v15 = vld [vmem:[%s9778_s2 + $0x44c] sm:$0xf0] }
 0x145   :  { %3441 = vmatpush.bf16.msrb.mxu1 %v5352_v20  ;;  %v2049_v34 = vadd.f32 %v2048_v60, %v2036_v54  ;;  %v2061_v37 = vpop.f32.mrf.mxu1  ;;  %v6409_v20 = vld [vmem:[%s9778_s2 + $0x24] sm:$0xf]  ;;  %v6595_v60 = vld [vmem:[%s9778_s2 + $0x5ec] sm:$0xf0] }
 0x146   :  { %3454 = vmatpush.bf16.msrb.mxu2 %v5480_v22  ;;  %v5404_v22 = vor.u32 %v6449_v32, %v5401_v35  ;;  %v6557_v54 = vld [vmem:[%s9778_s2 + $0x4c4] sm:$0xf]  ;;  %v5961_v35 = vld [vmem:[%s9778_s2 + $0x5d0] sm:$0xf0] }
 0x147   :  { %3429 = vmatmul.bf16.vlgmr.msrb.gmra.mxu0 %v8762_v36  ;;  %3467 = vmatpush.bf16.msrb.mxu3 %v5608_v38  ;;  %v2062_v19 = vadd.f32 %v2061_v37, %v2049_v34  ;;  %v6561_v38 = vld [vmem:[%s9778_s2 + $0x4e4] sm:$0xf]  ;;  %v5836_v9 = vor.u32 %v6557_v54, %v5833_v61 }
 0x148   :  { %3473 = vmatpush.bf16.msra.mxu0 %v5848_v63  ;;  %3442 = vmatmul.bf16.vlgmr.msrb.gmra.mxu1 %v8764_v39  ;;  %v5768_v63 = vor.u32 %v6543_v15, %v5767_v14  ;;  %v6593_v37 = vld [vmem:[%s9778_s2 + $0x5e4] sm:$0xf] }
 0x149   :  { %3455 = vmatmul.bf16.vlgmr.msrb.gmra.mxu2 %v8754_v30  ;;  %v6589_v32 = vld [vmem:[%s9778_s2 + $0x5c4] sm:$0xf] }
 0x14a   :  { %3499 = vmatpush.bf16.msra.mxu2 %v5340_v24  ;;  %v5241_v24 = vld [vmem:[%s9778_s2 + $0x30] sm:$0xf0]  ;;  %v6549_v14 = vld [vmem:[%s9778_s2 + $0x484] sm:$0xf]  ;;  %v5964_v15 = vor.u32 %v6589_v32, %v5961_v35 }
 0x14b   :  { %3512 = vmatpush.bf16.msra.mxu3 %v5468_v42  ;;  %v5244_v16 = vor.u32 %v6409_v20, %v5241_v24  ;;  %v5801_v20 = vld [vmem:[%s9778_s2 + $0x490] sm:$0xf0]  ;;  %v6585_v24 = vld [vmem:[%s9778_s2 + $0x5a4] sm:$0xf] }
 0x14c   :  { %3474 = vmatpush.bf16.msra.mxu0 %v5832_v46  ;;  %v2074_v12 = vpop.f32.mrf.mxu2  ;;  %v2050_v23 = vpop.f32.mrf.mxu0  ;;  %v5735_v46 = vld [vmem:[%s9778_s2 + $0x400] sm:$0xf]  ;;  %v6537_v61 = vld [vmem:[%s9778_s2 + $0x424] sm:$0xf]  ;;  %v5737_v32 = vld [vmem:[%s9778_s2 + $0x410] sm:$0xf0] }
 0x14d   :  { %v2075_v11 = vadd.f32 %v2074_v12, %v2062_v19  ;;  %v2087_v13 = vpop.f32.mrf.mxu3  ;;  %v2063_v26 = vpop.f32.mrf.mxu1  ;;  %v5736_v48 = vor.u32 %v6535_v47, %v5735_v46  ;;  %v5980_v19 = vor.u32 %v6593_v37, %v5977_v1  ;;  %v5580_v12 = vor.u32 %v6493_v2, %v5577_v3  ;;  %v6541_v47 = vld [vmem:[%s9778_s2 + $0x444] sm:$0xf]  ;;  %v5895_v1 = vld [vmem:[%s9778_s2 + $0x540] sm:$0xf]  ;;  %v6575_v2 = vld [vmem:[%s9778_s2 + $0x54c] sm:$0xf0] }
 0x14e   :  { %3500 = vmatpush.bf16.msra.mxu2 %v5324_v40  ;;  %v6441_v40 = vld [vmem:[%s9778_s2 + $0x124] sm:$0xf]  ;;  %v5545_v26 = vld [vmem:[%s9778_s2 + $0x290] sm:$0xf0] }
 0x14f   :  { %3513 = vmatpush.bf16.msra.mxu3 %v5452_v53  ;;  %v2088_v17 = vadd.f32 %v2087_v13, %v2075_v11  ;;  %v5228_v53 = vor.u32 %v6405_v29, %v5225_v31  ;;  %v5372_v55 = vor.u32 %v6441_v40, %v5369_v41  ;;  %v5561_v11 = vld [vmem:[%s9778_s2 + $0x2b0] sm:$0xf0]  ;;  %v5927_v29 = vld [vmem:[%s9778_s2 + $0x580] sm:$0xf]  ;;  %v6583_v31 = vld [vmem:[%s9778_s2 + $0x58c] sm:$0xf0]  ;;  %v5548_v40 = vor.u32 %v6485_v8, %v5545_v26 }
 0x150   :  { %3475 = vmatpush.bf16.msra.mxu0 %v5816_v57  ;;  %v5852_v57 = vor.u32 %v6561_v38, %v5849_v44  ;;  %v5928_v41 = vor.u32 %v6583_v31, %v5927_v29  ;;  %v6481_v44 = vld [vmem:[%s9778_s2 + $0x264] sm:$0xf]  ;;  %v5753_v3 = vld [vmem:[%s9778_s2 + $0x430] sm:$0xf0]  ;;  %v5583_v8 = vld [vmem:[%s9778_s2 + $0x2c8] sm:$0xf] }
 0x151   :  { %6639 = vtanh.f32 %v2088_v17  ;;  %v5943_v17 = vld [vmem:[%s9778_s2 + $0x5a0] sm:$0xf]  ;;  %v6496_v26 = vld [vmem:[%s9778_s2 + $0x2d4] sm:$0xf0]  ;;  %v6567_v29 = vld [vmem:[%s9778_s2 + $0x50c] sm:$0xf0] }
 0x152   :  { %3501 = vmatpush.bf16.msra.mxu2 %v5308_v51  ;;  %v5593_v51 = vld [vmem:[%s9778_s2 + $0x2f0] sm:$0xf0] }
 0x153   :  { %3514 = vmatpush.bf16.msra.mxu3 %v5436_v0  ;;  %v5596_v0 = vor.u32 %v6497_v49, %v5593_v51  ;;  %v5911_v51 = vld [vmem:[%s9778_s2 + $0x560] sm:$0xf] }
 0x154   :  { %3476 = vmatpush.bf16.msra.mxu0 %v5800_v4  ;;  %v2076_v42 = vpop.f32.mrf.mxu2  ;;  %v5356_v4 = vor.u32 %v6437_v21, %v5353_v59  ;;  %v6577_v21 = vld [vmem:[%s9778_s2 + $0x564] sm:$0xf] }
 0x155   :  { %v2089_v45 = vpop.f32.mrf.mxu3  ;;  %v6581_v42 = vld [vmem:[%s9778_s2 + $0x584] sm:$0xf] }
 0x156   :  { %3502 = vmatpush.bf16.msra.mxu2 %v5292_v50  ;;  %v5975_v50 = vld [vmem:[%s9778_s2 + $0x5e0] sm:$0xf]  ;;  %v5529_v45 = vld [vmem:[%s9778_s2 + $0x270] sm:$0xf0]  ;;  %v6477_v59 = vld [vmem:[%s9778_s2 + $0x244] sm:$0xf] }
 0x157   :  { %3515 = vmatpush.bf16.msra.mxu3 %v5420_v7  ;;  %v6640_v52 = vpop.eup %6639  ;;  %v5976_v34 = vor.u32 %v6595_v60, %v5975_v50  ;;  %v5817_v7 = vld [vmem:[%s9778_s2 + $0x4b0] sm:$0xf0]  ;;  %v5532_v54 = vor.u32 %v6481_v44, %v5529_v45  ;;  %v5727_v45 = vld [vmem:[%s9778_s2 + $0x3e8] sm:$0xf] }
 0x158   :  { %3477 = vmatpush.bf16.msra.mxu0 %v5784_v58  ;;  %v8897_v56 = vpack.c.bf16 %v6640_v52, %v6640_v52  ;;  %v6489_v58 = vld [vmem:[%s9778_s2 + $0x2a4] sm:$0xf]  ;;  %v5820_v13 = vor.u32 %v6553_v62, %v5817_v7  ;;  %v6579_v52 = vld [vmem:[%s9778_s2 + $0x56c] sm:$0xf0]  ;;  %v5896_v62 = vor.u32 %v6575_v2, %v5895_v1  ;;  %v5497_v7 = vld [vmem:[%s9778_s2 + $0x230] sm:$0xf0] }
 0x159   :  { %3486 = vmatpush.bf16.msra.mxu1 %v5976_v34  ;;  %v5721_v44 = vld [vmem:[%s9778_s2 + $0x3f0] sm:$0xf0]  ;;  %v5695_v2 = vld [vmem:[%s9778_s2 + $0x3a8] sm:$0xf] }
 0x15a   :  { %3503 = vmatpush.bf16.msra.mxu2 %v5276_v5  ;;  %3468 = vmatmul.bf16.vlgmr.msrb.gmra.mxu3 %v8897_v56  ;;  %v5959_v5 = vld [vmem:[%s9778_s2 + $0x5c0] sm:$0xf]  ;;  %v5689_v1 = vld [vmem:[%s9778_s2 + $0x3b0] sm:$0xf0] }
 0x15b   :  { %3516 = vmatpush.bf16.msra.mxu3 %v5404_v22  ;;  %v5960_v10 = vor.u32 %v6591_v6, %v5959_v5  ;;  %v5564_v22 = vor.u32 %v6489_v58, %v5561_v11  ;;  %v5897_v5 = vld [vmem:[%s9778_s2 + $0x550] sm:$0xf0]  ;;  %v6473_v6 = vld [vmem:[%s9778_s2 + $0x224] sm:$0xf]  ;;  %v5879_v58 = vld [vmem:[%s9778_s2 + $0x520] sm:$0xf] }
 0x15c   :  { %3478 = vmatpush.bf16.msra.mxu0 %v5768_v63  ;;  %v5804_v63 = vor.u32 %v6549_v14, %v5801_v20  ;;  %v6571_v11 = vld [vmem:[%s9778_s2 + $0x52c] sm:$0xf0]  ;;  %v5500_v14 = vor.u32 %v6473_v6, %v5497_v7  ;;  %v6500_v20 = vld [vmem:[%s9778_s2 + $0x2f4] sm:$0xf0]  ;;  %v6517_v6 = vld [vmem:[%s9778_s2 + $0x384] sm:$0xf] }
 0x15d   :  { %3487 = vmatpush.bf16.msra.mxu1 %v5960_v10  ;;  %v5756_v10 = vor.u32 %v6537_v61, %v5753_v3  ;;  %v5551_v61 = vld [vmem:[%s9778_s2 + $0x288] sm:$0xf]  ;;  %v6524_v3 = vld [vmem:[%s9778_s2 + $0x3b4] sm:$0xf0]  ;;  %v5673_v7 = vld [vmem:[%s9778_s2 + $0x390] sm:$0xf0] }
 0x15e   :  { %3504 = vmatpush.bf16.msra.mxu2 %v5260_v18  ;;  %v6587_v18 = vld [vmem:[%s9778_s2 + $0x5ac] sm:$0xf0] }
 0x15f   :  { %3517 = vmatpush.bf16.msra.mxu3 %v5388_v33  ;;  %v5944_v23 = vor.u32 %v6587_v18, %v5943_v17  ;;  %v5785_v33 = vld [vmem:[%s9778_s2 + $0x470] sm:$0xf0]  ;;  %v6569_v17 = vld [vmem:[%s9778_s2 + $0x524] sm:$0xf] }
 0x160   :  { %3479 = vmatpush.bf16.msra.mxu0 %v5752_v43  ;;  %v5929_v43 = vld [vmem:[%s9778_s2 + $0x590] sm:$0xf0]  ;;  %v5788_v46 = vor.u32 %v6545_v27, %v5785_v33 }
 0x161   :  { %3488 = vmatpush.bf16.msra.mxu1 %v5944_v23  ;;  %v5932_v49 = vor.u32 %v6581_v42, %v5929_v43  ;;  %v5881_v18 = vld [vmem:[%s9778_s2 + $0x530] sm:$0xf0]  ;;  %v6529_v42 = vld [vmem:[%s9778_s2 + $0x3e4] sm:$0xf] }
 0x162   :  { %3505 = vmatpush.bf16.msra.mxu2 %v5244_v16  ;;  %v5948_v16 = vor.u32 %v6585_v24, %v5945_v25  ;;  %v5481_v23 = vld [vmem:[%s9778_s2 + $0x210] sm:$0xf0]  ;;  %v5884_v27 = vor.u32 %v6569_v17, %v5881_v18  ;;  %v6513_v18 = vld [vmem:[%s9778_s2 + $0x364] sm:$0xf] }
 0x163   :  { %3518 = vmatpush.bf16.msra.mxu3 %v5372_v55  ;;  %v5912_v55 = vor.u32 %v6579_v52, %v5911_v51  ;;  %v5584_v52 = vor.u32 %v6496_v26, %v5583_v8 }
 0x164   :  { %3480 = vmatpush.bf16.msra.mxu0 %v5736_v48  ;;  %v8976_v28 = vpop.f32.mrf.mxu0  ;;  %v5513_v48 = vld [vmem:[%s9778_s2 + $0x250] sm:$0xf0] }
 0x165   :  { %v8987_v38 = vpop.f32.mrf.mxu1  ;;  %3489 = vmatpush.bf16.msra.mxu1 %v5928_v41  ;;  %v5865_v41 = vld [vmem:[%s9778_s2 + $0x510] sm:$0xf0] }
 0x166   :  { %3506 = vmatpush.bf16.msra.mxu2 %v5228_v53  ;;  %v5769_v53 = vld [vmem:[%s9778_s2 + $0x450] sm:$0xf0] }
 0x167   :  { %3519 = vmatpush.bf16.msra.mxu3 %v5356_v4  ;;  %v5772_v60 = vor.u32 %v6541_v47, %v5769_v53  ;;  %v2114_v47 = vadd.f32 %v8987_v38, %v8976_v28  ;;  %v5567_v53 = vld [vmem:[%s9778_s2 + $0x2a8] sm:$0xf]  ;;  %v5705_v28 = vld [vmem:[%s9778_s2 + $0x3d0] sm:$0xf0]  ;;  %v6492_v38 = vld [vmem:[%s9778_s2 + $0x2b4] sm:$0xf0] }
 0x168   :  { %3525 = vmatpush.bf16.msrb.mxu0 %v5596_v0 }
 0x169   :  { %3507 = vmatmul.bf16.vlgmr.msra.gmra.mxu2 %v8762_v36  ;;  %3490 = vmatpush.bf16.msra.mxu1 %v5912_v55  ;;  %v6525_v55 = vld [vmem:[%s9778_s2 + $0x3c4] sm:$0xf] }
 0x16a   :  { %3551 = vmatpush.bf16.msrb.mxu2 %v5852_v57  ;;  %v5913_v57 = vld [vmem:[%s9778_s2 + $0x570] sm:$0xf0]  ;;  %3520 = vmatmul.bf16.vlgmr.msra.gmra.mxu3 %v8764_v39 }
 0x16b   :  { %3564 = vmatpush.bf16.msrb.mxu3 %v5980_v19  ;;  %v5916_v37 = vor.u32 %v6577_v21, %v5913_v57  ;;  %v6573_v19 = vld [vmem:[%s9778_s2 + $0x544] sm:$0xf]  ;;  %v5711_v21 = vld [vmem:[%s9778_s2 + $0x3c8] sm:$0xf]  ;;  %v6528_v57 = vld [vmem:[%s9778_s2 + $0x3d4] sm:$0xf0] }
 0x16c   :  { %3526 = vmatpush.bf16.msrb.mxu0 %v5580_v12  ;;  %v9026_v50 = vpop.f32.mrf.mxu2  ;;  %v2102_v0 = vpop.f32.mrf.mxu0  ;;  %v6533_v12 = vld [vmem:[%s9778_s2 + $0x404] sm:$0xf]  ;;  %v5900_v35 = vor.u32 %v6573_v19, %v5897_v5  ;;  %v5535_v19 = vld [vmem:[%s9778_s2 + $0x268] sm:$0xf]  ;;  %v5696_v5 = vor.u32 %v6524_v3, %v5695_v2  ;;  %v5609_v3 = vld [vmem:[%s9778_s2 + $0x310] sm:$0xf0] }
 0x16d   :  { %v9031_v34 = vpop.f32.mrf.mxu3  ;;  %v2115_v4 = vpop.f32.mrf.mxu1  ;;  %3491 = vmatpush.bf16.msra.mxu1 %v5896_v62  ;;  %v5740_v25 = vor.u32 %v6533_v12, %v5737_v32  ;;  %v5712_v0 = vor.u32 %v6528_v57, %v5711_v21  ;;  %v6520_v32 = vld [vmem:[%s9778_s2 + $0x394] sm:$0xf0]  ;;  %v6434_v57 = vld [vmem:[%s9778_s2 + $0xec] sm:$0xf]  ;;  %v6501_v2 = vld [vmem:[%s9778_s2 + $0x304] sm:$0xf] }
 0x16e   :  { %3552 = vmatpush.bf16.msrb.mxu2 %v5836_v9  ;;  %v5516_v9 = vor.u32 %v6477_v59, %v5513_v48  ;;  %v2127_v59 = vadd.f32 %v9026_v50, %v2114_v47  ;;  %v5708_v48 = vor.u32 %v6525_v55, %v5705_v28  ;;  %v6488_v50 = vld [vmem:[%s9778_s2 + $0x294] sm:$0xf0]  ;;  %v5487_v47 = vld [vmem:[%s9778_s2 + $0x208] sm:$0xf]  ;;  %v5625_v55 = vld [vmem:[%s9778_s2 + $0x330] sm:$0xf0] }
 0x16f   :  { %3565 = vmatpush.bf16.msrb.mxu3 %v5964_v15  ;;  %v5880_v15 = vor.u32 %v6571_v11, %v5879_v58  ;;  %v5552_v62 = vor.u32 %v6488_v50, %v5551_v61  ;;  %v5676_v11 = vor.u32 %v6517_v6, %v5673_v7  ;;  %v6432_v21 = vld [vmem:[%s9778_s2 + $0xd4] sm:$0xf0]  ;;  %v5631_v61 = vld [vmem:[%s9778_s2 + $0x328] sm:$0xf]  ;;  %v5329_v7 = vld [vmem:[%s9778_s2 + $0xd8] sm:$0xf0] }
 0x170   :  { %3527 = vmatpush.bf16.msrb.mxu0 %v5564_v22  ;;  %v6469_v22 = vld [vmem:[%s9778_s2 + $0x204] sm:$0xf]  ;;  %v2140_v4 = vadd.f32 %v9031_v34, %v2127_v59  ;;  %v6484_v34 = vld [vmem:[%s9778_s2 + $0x274] sm:$0xf0] }
 0x171   :  { %v5484_v33 = vor.u32 %v6469_v22, %v5481_v23  ;;  %3492 = vmatpush.bf16.msra.mxu1 %v5880_v15  ;;  %v5519_v15 = vld [vmem:[%s9778_s2 + $0x248] sm:$0xf]  ;;  %v6480_v22 = vld [vmem:[%s9778_s2 + $0x254] sm:$0xf0] }
 0x172   :  { %3553 = vmatpush.bf16.msrb.mxu2 %v5820_v13  ;;  %v5599_v13 = vld [vmem:[%s9778_s2 + $0x2e8] sm:$0xf]  ;;  %v5520_v8 = vor.u32 %v6480_v22, %v5519_v15  ;;  %v5313_v15 = vld [vmem:[%s9778_s2 + $0xb8] sm:$0xf0]  ;;  %v6420_v22 = vld [vmem:[%s9778_s2 + $0x74] sm:$0xf0] }
 0x173   :  { %3566 = vmatpush.bf16.msrb.mxu3 %v5948_v16  ;;  %v5863_v16 = vld [vmem:[%s9778_s2 + $0x500] sm:$0xf]  ;;  %v5600_v31 = vor.u32 %v6500_v20, %v5599_v13  ;;  %v5657_v20 = vld [vmem:[%s9778_s2 + $0x370] sm:$0xf0]  ;;  %v5663_v23 = vld [vmem:[%s9778_s2 + $0x368] sm:$0xf] }
 0x174   :  { %3528 = vmatpush.bf16.msrb.mxu0 %v5548_v40  ;;  %v2128_v24 = vpop.f32.mrf.mxu2  ;;  %v6565_v40 = vld [vmem:[%s9778_s2 + $0x504] sm:$0xf]  ;;  %v5864_v43 = vor.u32 %v6567_v29, %v5863_v16  ;;  %v5641_v29 = vld [vmem:[%s9778_s2 + $0x350] sm:$0xf0] }
 0x175   :  { %v5868_v51 = vor.u32 %v6565_v40, %v5865_v41  ;;  %v6516_v24 = vld [vmem:[%s9778_s2 + $0x374] sm:$0xf0]  ;;  %v6509_v16 = vld [vmem:[%s9778_s2 + $0x344] sm:$0xf]  ;;  %v5343_v40 = vld [vmem:[%s9778_s2 + $0xe8] sm:$0xf] }
 0x176   :  { %3554 = vmatpush.bf16.msrb.mxu2 %v5804_v63  ;;  %v2141_v63 = vpop.f32.mrf.mxu3  ;;  %3493 = vmatpush.bf16.msra.mxu1 %v5864_v43  ;;  %v6436_v41 = vld [vmem:[%s9778_s2 + $0xf4] sm:$0xf0] }
 0x177   :  { %3567 = vmatpush.bf16.msrb.mxu3 %v5932_v49  ;;  %v5724_v49 = vor.u32 %v6529_v42, %v5721_v44  ;;  %v5503_v63 = vld [vmem:[%s9778_s2 + $0x228] sm:$0xf]  ;;  %v5644_v44 = vor.u32 %v6509_v16, %v5641_v29  ;;  %v6418_v16 = vld [vmem:[%s9778_s2 + $0x6c] sm:$0xf]  ;;  %v5281_v29 = vld [vmem:[%s9778_s2 + $0x78] sm:$0xf0] }
 0x178   :  { %3529 = vmatpush.bf16.msrb.mxu0 %v5532_v54 }
 0x17a   :  { %3555 = vmatpush.bf16.msrb.mxu2 %v5788_v46  ;;  %v6532_v46 = vld [vmem:[%s9778_s2 + $0x3f4] sm:$0xf0]  ;;  %3538 = vmatpush.bf16.msrb.mxu1 %v5724_v49 }
 0x17b   :  { %3568 = vmatpush.bf16.msrb.mxu3 %v5916_v37  ;;  %v5728_v54 = vor.u32 %v6532_v46, %v5727_v45  ;;  %v6521_v37 = vld [vmem:[%s9778_s2 + $0x3a4] sm:$0xf]  ;;  %v5647_v45 = vld [vmem:[%s9778_s2 + $0x348] sm:$0xf]  ;;  %v6512_v46 = vld [vmem:[%s9778_s2 + $0x354] sm:$0xf0] }
 0x17c   :  { %3530 = vmatpush.bf16.msrb.mxu0 %v5516_v9  ;;  %v5692_v9 = vor.u32 %v6521_v37, %v5689_v1  ;;  %v5648_v59 = vor.u32 %v6512_v46, %v5647_v45  ;;  %v5247_v45 = vld [vmem:[%s9778_s2 + $0x28] sm:$0xf]  ;;  %v6412_v46 = vld [vmem:[%s9778_s2 + $0x34] sm:$0xf0] }
 0x17e   :  { %3556 = vmatpush.bf16.msrb.mxu2 %v5772_v60  ;;  %v5568_v60 = vor.u32 %v6492_v38, %v5567_v53  ;;  %3539 = vmatpush.bf16.msrb.mxu1 %v5708_v48  ;;  %v6472_v53 = vld [vmem:[%s9778_s2 + $0x214] sm:$0xf0]  ;;  %v5327_v38 = vld [vmem:[%s9778_s2 + $0xc8] sm:$0xf]  ;;  %v5345_v48 = vld [vmem:[%s9778_s2 + $0xf8] sm:$0xf0] }
 0x17f   :  { %3569 = vmatpush.bf16.msrb.mxu3 %v5900_v35  ;;  %v5488_v37 = vor.u32 %v6472_v53, %v5487_v47  ;;  %v5328_v1 = vor.u32 %v6432_v21, %v5327_v38  ;;  %v5248_v47 = vor.u32 %v6412_v46, %v5247_v45  ;;  %v6408_v53 = vld [vmem:[%s9778_s2 + $0x14] sm:$0xf0]  ;;  %v5249_v21 = vld [vmem:[%s9778_s2 + $0x38] sm:$0xf0]  ;;  %v6458_v46 = vld [vmem:[%s9778_s2 + $0x1ac] sm:$0xf] }
 0x180   :  { %3531 = vmatpush.bf16.msrb.mxu0 %v5500_v14  ;;  %v5536_v14 = vor.u32 %v6484_v34, %v5535_v19  ;;  %v6428_v19 = vld [vmem:[%s9778_s2 + $0xb4] sm:$0xf0]  ;;  %v5615_v34 = vld [vmem:[%s9778_s2 + $0x308] sm:$0xf] }
 0x181   :  { %v6460_v45 = vld [vmem:[%s9778_s2 + $0x1b4] sm:$0xf0] }
 0x182   :  { %3557 = vmatpush.bf16.msrb.mxu2 %v5756_v10  ;;  %v5679_v10 = vld [vmem:[%s9778_s2 + $0x388] sm:$0xf]  ;;  %3540 = vmatpush.bf16.msrb.mxu1 %v5692_v9 }
 0x183   :  { %3570 = vmatpush.bf16.msrb.mxu3 %v5884_v27  ;;  %v5680_v17 = vor.u32 %v6520_v32, %v5679_v10  ;;  %v5664_v27 = vor.u32 %v6516_v24, %v5663_v23  ;;  %v6504_v10 = vld [vmem:[%s9778_s2 + $0x314] sm:$0xf0]  ;;  %v6422_v23 = vld [vmem:[%s9778_s2 + $0x8c] sm:$0xf]  ;;  %v5297_v24 = vld [vmem:[%s9778_s2 + $0x98] sm:$0xf0] }
 0x184   :  { %3532 = vmatpush.bf16.msrb.mxu0 %v5484_v33  ;;  %v2152_v12 = vpop.f32.mrf.mxu0  ;;  %v6476_v33 = vld [vmem:[%s9778_s2 + $0x234] sm:$0xf0] }
 0x185   :  { %v2153_v35 = vadd.f32 %v2152_v12, %v2140_v4  ;;  %v2165_v58 = vpop.f32.mrf.mxu1  ;;  %v5348_v4 = vor.u32 %v6434_v57, %v5345_v48  ;;  %v5612_v12 = vor.u32 %v6501_v2, %v5609_v3  ;;  %v5855_v57 = vld [vmem:[%s9778_s2 + $0x4e8] sm:$0xf]  ;;  %v6406_v2 = vld [vmem:[%s9778_s2 + $0xc] sm:$0xf]  ;;  %v5233_v3 = vld [vmem:[%s9778_s2 + $0x18] sm:$0xf0] }
 0x186   :  { %3558 = vmatpush.bf16.msrb.mxu2 %v5740_v25  ;;  %3541 = vmatpush.bf16.msrb.mxu1 %v5676_v11  ;;  %v5660_v25 = vor.u32 %v6513_v18, %v5657_v20  ;;  %v6424_v11 = vld [vmem:[%s9778_s2 + $0x94] sm:$0xf0]  ;;  %v5279_v20 = vld [vmem:[%s9778_s2 + $0x68] sm:$0xf] }
 0x187   :  { %3571 = vmatpush.bf16.msrb.mxu3 %v5868_v51  ;;  %v2166_v13 = vadd.f32 %v2165_v58, %v2153_v35  ;;  %v5504_v51 = vor.u32 %v6476_v33, %v5503_v63  ;;  %v5295_v58 = vld [vmem:[%s9778_s2 + $0x88] sm:$0xf] }
 0x188   :  { %v5263_v63 = vld [vmem:[%s9778_s2 + $0x48] sm:$0xf] }
 0x189   :  { %6641 = vtanh.f32 %v2166_v13  ;;  %v5616_v13 = vor.u32 %v6504_v10, %v5615_v34  ;;  %v5471_v10 = vld [vmem:[%s9778_s2 + $0x1e8] sm:$0xf] }
 0x18a   :  { %3603 = vmatpush.bf16.msra.mxu2 %v5600_v31  ;;  %3542 = vmatpush.bf16.msrb.mxu1 %v5660_v25  ;;  %v5280_v25 = vor.u32 %v6420_v22, %v5279_v20 }
 0x18b   :  { %3616 = vmatpush.bf16.msra.mxu3 %v5728_v54  ;;  %v6505_v54 = vld [vmem:[%s9778_s2 + $0x324] sm:$0xf] }
 0x18c   :  { %v9190_v26 = vpop.f32.mrf.mxu2  ;;  %v2154_v42 = vpop.f32.mrf.mxu0 }
 0x18d   :  { %v9201_v31 = vpop.f32.mrf.mxu3  ;;  %v2167_v43 = vpop.f32.mrf.mxu1 }
 0x18e   :  { %3604 = vmatpush.bf16.msra.mxu2 %v5584_v52  ;;  %v5344_v52 = vor.u32 %v6436_v41, %v5343_v40  ;;  %3543 = vmatpush.bf16.msrb.mxu1 %v5644_v44  ;;  %v2192_v33 = vadd.f32 %v9201_v31, %v9190_v26  ;;  %v5284_v44 = vor.u32 %v6418_v16, %v5281_v29  ;;  %v6414_v26 = vld [vmem:[%s9778_s2 + $0x4c] sm:$0xf]  ;;  %v5265_v31 = vld [vmem:[%s9778_s2 + $0x58] sm:$0xf0]  ;;  %v5807_v16 = vld [vmem:[%s9778_s2 + $0x488] sm:$0xf] }
 0x18f   :  { %3617 = vmatpush.bf16.msra.mxu3 %v5712_v0  ;;  %v6642_v49 = vpop.eup %6641  ;;  %v6508_v0 = vld [vmem:[%s9778_s2 + $0x334] sm:$0xf0] }
 0x190   :  { %v9230_v28 = vpack.c.bf16 %v6642_v49, %v6642_v49  ;;  %v5632_v6 = vor.u32 %v6508_v0, %v5631_v61  ;;  %v6552_v29 = vld [vmem:[%s9778_s2 + $0x494] sm:$0xf0] }
 0x192   :  { %3605 = vmatpush.bf16.msra.mxu2 %v5568_v60  ;;  %v5628_v60 = vor.u32 %v6505_v54, %v5625_v55  ;;  %3481 = vmatmul.bf16.vlgmr.msra.gmra.mxu0 %v9230_v28  ;;  %v6410_v54 = vld [vmem:[%s9778_s2 + $0x2c] sm:$0xf] }
 0x193   :  { %3618 = vmatpush.bf16.msra.mxu3 %v5696_v5  ;;  %3559 = vmatmul.bf16.vlgmr.msrb.gmra.mxu2 %v9230_v28  ;;  %v6430_v5 = vld [vmem:[%s9778_s2 + $0xcc] sm:$0xf] }
 0x194   :  { %3577 = vmatpush.bf16.msra.mxu0 %v5344_v52  ;;  %v2180_v50 = vpop.f32.mrf.mxu2  ;;  %3544 = vmatpush.bf16.msrb.mxu1 %v5628_v60  ;;  %v5332_v35 = vor.u32 %v6430_v5, %v5329_v7  ;;  %v5231_v52 = vld [vmem:[%s9778_s2 + $0x8] sm:$0xf]  ;;  %v5236_v5 = vor.u32 %v6406_v2, %v5233_v3 }
 0x195   :  { %v2193_v9 = vpop.f32.mrf.mxu3  ;;  %v5232_v0 = vor.u32 %v6408_v53, %v5231_v52  ;;  %v5809_v52 = vld [vmem:[%s9778_s2 + $0x498] sm:$0xf0] }
 0x196   :  { %3606 = vmatpush.bf16.msra.mxu2 %v5552_v62  ;;  %v5311_v62 = vld [vmem:[%s9778_s2 + $0xa8] sm:$0xf]  ;;  %v6560_v9 = vld [vmem:[%s9778_s2 + $0x4d4] sm:$0xf0] }
 0x197   :  { %3619 = vmatpush.bf16.msra.mxu3 %v5680_v17  ;;  %v5312_v32 = vor.u32 %v6428_v19, %v5311_v62  ;;  %v5296_v17 = vor.u32 %v6424_v11, %v5295_v58  ;;  %v6562_v62 = vld [vmem:[%s9778_s2 + $0x4ec] sm:$0xf]  ;;  %v5857_v19 = vld [vmem:[%s9778_s2 + $0x4f8] sm:$0xf0]  ;;  %v5823_v11 = vld [vmem:[%s9778_s2 + $0x4a8] sm:$0xf] }
 0x198   :  { %3578 = vmatpush.bf16.msra.mxu0 %v5328_v1  ;;  %3545 = vmatpush.bf16.msrb.mxu1 %v5612_v12  ;;  %v5252_v1 = vor.u32 %v6410_v54, %v5249_v21  ;;  %v5860_v34 = vor.u32 %v6562_v62, %v5857_v19  ;;  %v5473_v58 = vld [vmem:[%s9778_s2 + $0x1f8] sm:$0xf0]  ;;  %v5423_v21 = vld [vmem:[%s9778_s2 + $0x188] sm:$0xf] }
 0x199   :  { %v5407_v19 = vld [vmem:[%s9778_s2 + $0x168] sm:$0xf] }
 0x19a   :  { %3607 = vmatpush.bf16.msra.mxu2 %v5536_v14  ;;  %v6426_v14 = vld [vmem:[%s9778_s2 + $0xac] sm:$0xf] }
 0x19b   :  { %3620 = vmatpush.bf16.msra.mxu3 %v5664_v27  ;;  %v5316_v18 = vor.u32 %v6426_v14, %v5313_v15  ;;  %v6416_v27 = vld [vmem:[%s9778_s2 + $0x54] sm:$0xf0]  ;;  %v6558_v14 = vld [vmem:[%s9778_s2 + $0x4cc] sm:$0xf]  ;;  %v5841_v15 = vld [vmem:[%s9778_s2 + $0x4d8] sm:$0xf0] }
 0x19c   :  { %3579 = vmatpush.bf16.msra.mxu0 %v5312_v32  ;;  %v5264_v42 = vor.u32 %v6416_v27, %v5263_v63  ;;  %v6468_v32 = vld [vmem:[%s9778_s2 + $0x1f4] sm:$0xf0]  ;;  %v5844_v63 = vor.u32 %v6558_v14, %v5841_v15  ;;  %v5457_v27 = vld [vmem:[%s9778_s2 + $0x1d8] sm:$0xf0] }
 0x19e   :  { %3608 = vmatpush.bf16.msra.mxu2 %v5520_v8  ;;  %v5300_v8 = vor.u32 %v6422_v23, %v5297_v24  ;;  %v5455_v24 = vld [vmem:[%s9778_s2 + $0x1c8] sm:$0xf] }
 0x19f   :  { %3621 = vmatpush.bf16.msra.mxu3 %v5648_v59  ;;  %v6564_v59 = vld [vmem:[%s9778_s2 + $0x4f4] sm:$0xf0] }
 0x1a0   :  { %3580 = vmatpush.bf16.msra.mxu0 %v5296_v17  ;;  %v5856_v50 = vor.u32 %v6564_v59, %v5855_v57  ;;  %v6456_v57 = vld [vmem:[%s9778_s2 + $0x194] sm:$0xf0]  ;;  %v6454_v59 = vld [vmem:[%s9778_s2 + $0x18c] sm:$0xf] }
 0x1a2   :  { %3609 = vmatpush.bf16.msra.mxu2 %v5504_v51  ;;  %3533 = vmatmul.bf16.vlgmr.msrb.gmra.mxu0 %v8754_v30  ;;  %v5268_v51 = vor.u32 %v6414_v26, %v5265_v31  ;;  %v5441_v31 = vld [vmem:[%s9778_s2 + $0x1b8] sm:$0xf0] }
 0x1a3   :  { %3622 = vmatpush.bf16.msra.mxu3 %v5632_v6 }
 0x1a4   :  { %v2204_v40 = vpop.f32.mrf.mxu0  ;;  %3581 = vmatpush.bf16.msra.mxu0 %v5280_v25  ;;  %v6464_v25 = vld [vmem:[%s9778_s2 + $0x1d4] sm:$0xf0] }
 0x1a5   :  { %v2217_v41 = vpop.f32.mrf.mxu1  ;;  %v2205_v43 = vadd.f32 %v2204_v40, %v2192_v33  ;;  %v6554_v33 = vld [vmem:[%s9778_s2 + $0x4ac] sm:$0xf]  ;;  %v5825_v40 = vld [vmem:[%s9778_s2 + $0x4b8] sm:$0xf0] }
 0x1a6   :  { %3610 = vmatpush.bf16.msra.mxu2 %v5488_v37  ;;  %v5828_v26 = vor.u32 %v6554_v33, %v5825_v40  ;;  %v6498_v33 = vld [vmem:[%s9778_s2 + $0x2ec] sm:$0xf]  ;;  %v5601_v40 = vld [vmem:[%s9778_s2 + $0x2f8] sm:$0xf0] }
 0x1a7   :  { %3623 = vmatpush.bf16.msra.mxu3 %v5616_v13  ;;  %v2218_v49 = vadd.f32 %v2217_v41, %v2205_v43  ;;  %v6556_v13 = vld [vmem:[%s9778_s2 + $0x4b4] sm:$0xf0]  ;;  %v5456_v41 = vor.u32 %v6464_v25, %v5455_v24  ;;  %v5743_v25 = vld [vmem:[%s9778_s2 + $0x408] sm:$0xf] }
 0x1a8   :  { %3582 = vmatpush.bf16.msra.mxu0 %v5264_v42  ;;  %v5824_v23 = vor.u32 %v6556_v13, %v5823_v11  ;;  %v5439_v42 = vld [vmem:[%s9778_s2 + $0x1a8] sm:$0xf] }
 0x1a9   :  { %3611 = vmatmul.bf16.vlgmr.msra.gmra.mxu2 %v8754_v30  ;;  %v5440_v53 = vor.u32 %v6460_v45, %v5439_v42  ;;  %v5391_v13 = vld [vmem:[%s9778_s2 + $0x148] sm:$0xf] }
 0x1aa   :  { %3655 = vmatpush.bf16.msrb.mxu2 %v5348_v4  ;;  %v5839_v4 = vld [vmem:[%s9778_s2 + $0x4c8] sm:$0xf] }
 0x1ab   :  { %v5840_v6 = vor.u32 %v6560_v9, %v5839_v4  ;;  %v5424_v4 = vor.u32 %v6456_v57, %v5423_v21  ;;  %v5375_v45 = vld [vmem:[%s9778_s2 + $0x128] sm:$0xf]  ;;  %v6440_v57 = vld [vmem:[%s9778_s2 + $0x114] sm:$0xf0] }
 0x1ac   :  { %v2230_v55 = vpop.f32.mrf.mxu2  ;;  %v2206_v60 = vpop.f32.mrf.mxu0  ;;  %3583 = vmatpush.bf16.msra.mxu0 %v5248_v47  ;;  %v5791_v47 = vld [vmem:[%s9778_s2 + $0x468] sm:$0xf] }
 0x1ad   :  { %v2243_v38 = vpop.f32.mrf.mxu3  ;;  %v2231_v48 = vadd.f32 %v2230_v55, %v2218_v49  ;;  %v2219_v61 = vpop.f32.mrf.mxu1  ;;  %v6548_v49 = vld [vmem:[%s9778_s2 + $0x474] sm:$0xf0]  ;;  %v5444_v55 = vor.u32 %v6458_v46, %v5441_v31  ;;  %v5425_v60 = vld [vmem:[%s9778_s2 + $0x198] sm:$0xf0]  ;;  %v5604_v31 = vor.u32 %v6498_v33, %v5601_v40  ;;  %v5359_v21 = vld [vmem:[%s9778_s2 + $0x108] sm:$0xf] }
 0x1ae   :  { %3656 = vmatpush.bf16.msrb.mxu2 %v5332_v35  ;;  %v6466_v35 = vld [vmem:[%s9778_s2 + $0x1ec] sm:$0xf]  ;;  %v5775_v61 = vld [vmem:[%s9778_s2 + $0x448] sm:$0xf]  ;;  %v5428_v9 = vor.u32 %v6454_v59, %v5425_v60  ;;  %v6444_v46 = vld [vmem:[%s9778_s2 + $0x134] sm:$0xf0] }
 0x1af   :  { %v2244_v37 = vadd.f32 %v2243_v38, %v2231_v48  ;;  %v5476_v22 = vor.u32 %v6466_v35, %v5473_v58  ;;  %v5792_v38 = vor.u32 %v6548_v49, %v5791_v47  ;;  %v6542_v35 = vld [vmem:[%s9778_s2 + $0x44c] sm:$0xf]  ;;  %v5777_v58 = vld [vmem:[%s9778_s2 + $0x458] sm:$0xf0] }
 0x1b0   :  { %3584 = vmatpush.bf16.msra.mxu0 %v5232_v0  ;;  %v6544_v0 = vld [vmem:[%s9778_s2 + $0x454] sm:$0xf0]  ;;  %v5780_v24 = vor.u32 %v6542_v35, %v5777_v58  ;;  %v6442_v47 = vld [vmem:[%s9778_s2 + $0x12c] sm:$0xf]  ;;  %v5377_v49 = vld [vmem:[%s9778_s2 + $0x138] sm:$0xf0] }
 0x1b1   :  { %6643 = vtanh.f32 %v2244_v37  ;;  %v5776_v62 = vor.u32 %v6544_v0, %v5775_v61  ;;  %v6438_v59 = vld [vmem:[%s9778_s2 + $0x10c] sm:$0xf]  ;;  %v5361_v0 = vld [vmem:[%s9778_s2 + $0x118] sm:$0xf0] }
 0x1b2   :  { %3657 = vmatpush.bf16.msrb.mxu2 %v5316_v18  ;;  %v5472_v18 = vor.u32 %v6468_v32, %v5471_v10  ;;  %v5759_v10 = vld [vmem:[%s9778_s2 + $0x428] sm:$0xf]  ;;  %v6540_v32 = vld [vmem:[%s9778_s2 + $0x434] sm:$0xf0]  ;;  %v5553_v35 = vld [vmem:[%s9778_s2 + $0x298] sm:$0xf0] }
 0x1b3   :  { %3585 = vmatmul.bf16.vlgmr.msra.gmra.mxu0 %v8762_v36  ;;  %v5760_v15 = vor.u32 %v6540_v32, %v5759_v10  ;;  %v5969_v10 = vld [vmem:[%s9778_s2 + $0x5d8] sm:$0xf0]  ;;  %v6486_v32 = vld [vmem:[%s9778_s2 + $0x28c] sm:$0xf] }
 0x1b4   :  { %3629 = vmatpush.bf16.msrb.mxu0 %v5856_v50  ;;  %v2232_v7 = vpop.f32.mrf.mxu2  ;;  %v5793_v50 = vld [vmem:[%s9778_s2 + $0x478] sm:$0xf0] }
 0x1b5   :  { %v2245_v12 = vpop.f32.mrf.mxu3  ;;  %v5521_v33 = vld [vmem:[%s9778_s2 + $0x258] sm:$0xf0] }
 0x1b6   :  { %3658 = vmatpush.bf16.msrb.mxu2 %v5300_v8  ;;  %v6462_v8 = vld [vmem:[%s9778_s2 + $0x1cc] sm:$0xf] }
 0x1b7   :  { %v6644_v17 = vpop.eup %6643  ;;  %v5460_v43 = vor.u32 %v6462_v8, %v5457_v27  ;;  %v6536_v8 = vld [vmem:[%s9778_s2 + $0x414] sm:$0xf0] }
 0x1b8   :  { %3630 = vmatpush.bf16.msrb.mxu0 %v5840_v6  ;;  %v9389_v20 = vpack.c.bf16 %v6644_v17, %v6644_v17  ;;  %v6450_v6 = vld [vmem:[%s9778_s2 + $0x16c] sm:$0xf]  ;;  %v6448_v17 = vld [vmem:[%s9778_s2 + $0x154] sm:$0xf0] }
 0x1b9   :  { %v5392_v42 = vor.u32 %v6448_v17, %v5391_v13  ;;  %v5951_v13 = vld [vmem:[%s9778_s2 + $0x5a8] sm:$0xf]  ;;  %v6586_v17 = vld [vmem:[%s9778_s2 + $0x5ac] sm:$0xf] }
 0x1ba   :  { %3659 = vmatpush.bf16.msrb.mxu2 %v5284_v44  ;;  %3494 = vmatmul.bf16.vlgmr.msra.gmra.mxu1 %v9389_v20  ;;  %v5808_v44 = vor.u32 %v6552_v29, %v5807_v16  ;;  %v5761_v29 = vld [vmem:[%s9778_s2 + $0x438] sm:$0xf0] }
 0x1bb   :  { %3572 = vmatmul.bf16.vlgmr.msrb.gmra.mxu3 %v9389_v20  ;;  %3590 = vmatpush.bf16.msra.mxu1 %v5472_v18  ;;  %v6446_v18 = vld [vmem:[%s9778_s2 + $0x14c] sm:$0xf] }
 0x1bc   :  { %3668 = vmatpush.bf16.msrb.mxu3 %v5476_v22  ;;  %3631 = vmatpush.bf16.msrb.mxu0 %v5824_v23  ;;  %v5393_v22 = vld [vmem:[%s9778_s2 + $0x158] sm:$0xf0] }
 0x1be   :  { %3660 = vmatpush.bf16.msrb.mxu2 %v5268_v51  ;;  %v6550_v51 = vld [vmem:[%s9778_s2 + $0x48c] sm:$0xf] }
 0x1bf   :  { %3591 = vmatpush.bf16.msra.mxu1 %v5456_v41  ;;  %v5812_v48 = vor.u32 %v6550_v51, %v5809_v52  ;;  %v6534_v51 = vld [vmem:[%s9778_s2 + $0x40c] sm:$0xf]  ;;  %v5745_v52 = vld [vmem:[%s9778_s2 + $0x418] sm:$0xf0] }
 0x1c0   :  { %3669 = vmatpush.bf16.msrb.mxu3 %v5460_v43  ;;  %3632 = vmatpush.bf16.msrb.mxu0 %v5808_v44  ;;  %v5396_v43 = vor.u32 %v6446_v18, %v5393_v22  ;;  %v5744_v44 = vor.u32 %v6536_v8, %v5743_v25  ;;  %v5748_v60 = vor.u32 %v6534_v51, %v5745_v52  ;;  %v6482_v18 = vld [vmem:[%s9778_s2 + $0x26c] sm:$0xf]  ;;  %v5537_v22 = vld [vmem:[%s9778_s2 + $0x278] sm:$0xf0]  ;;  %v5935_v25 = vld [vmem:[%s9778_s2 + $0x588] sm:$0xf] }
 0x1c1   :  { %v5540_v8 = vor.u32 %v6482_v18, %v5537_v22 }
 0x1c2   :  { %3661 = vmatpush.bf16.msrb.mxu2 %v5252_v1  ;;  %v6546_v1 = vld [vmem:[%s9778_s2 + $0x46c] sm:$0xf] }
 0x1c3   :  { %3592 = vmatpush.bf16.msra.mxu1 %v5440_v53  ;;  %v5796_v12 = vor.u32 %v6546_v1, %v5793_v50  ;;  %v6494_v53 = vld [vmem:[%s9778_s2 + $0x2cc] sm:$0xf]  ;;  %v6596_v1 = vld [vmem:[%s9778_s2 + $0x5f4] sm:$0xf0] }
 0x1c4   :  { %v3430_v37 = vpop.f32.mrf.mxu0  ;;  %3670 = vmatpush.bf16.msrb.mxu3 %v5444_v55  ;;  %3633 = vmatpush.bf16.msrb.mxu0 %v5792_v38  ;;  %v5376_v55 = vor.u32 %v6444_v46, %v5375_v45  ;;  %v5380_v38 = vor.u32 %v6442_v47, %v5377_v49  ;;  %v6594_v50 = vld [vmem:[%s9778_s2 + $0x5ec] sm:$0xf]  ;;  %v5505_v49 = vld [vmem:[%s9778_s2 + $0x238] sm:$0xf0] }
 0x1c5   :  { %v3443_v3 = vpop.f32.mrf.mxu1  ;;  %v6578_v46 = vld [vmem:[%s9778_s2 + $0x56c] sm:$0xf] }
 0x1c6   :  { %3662 = vmatpush.bf16.msrb.mxu2 %v5236_v5  ;;  %v6452_v5 = vld [vmem:[%s9778_s2 + $0x174] sm:$0xf0]  ;;  %v6474_v47 = vld [vmem:[%s9778_s2 + $0x22c] sm:$0xf] }
 0x1c7   :  { %3593 = vmatpush.bf16.msra.mxu1 %v5424_v4  ;;  %v5408_v11 = vor.u32 %v6452_v5, %v5407_v19  ;;  %v6490_v4 = vld [vmem:[%s9778_s2 + $0x2ac] sm:$0xf] }
 0x1c8   :  { %3671 = vmatpush.bf16.msrb.mxu3 %v5428_v9  ;;  %3634 = vmatpush.bf16.msrb.mxu0 %v5776_v62  ;;  %v5569_v9 = vld [vmem:[%s9778_s2 + $0x2b8] sm:$0xf0]  ;;  %v5364_v62 = vor.u32 %v6438_v59, %v5361_v0  ;;  %v6572_v0 = vld [vmem:[%s9778_s2 + $0x534] sm:$0xf0] }
 0x1c9   :  { %3663 = vmatmul.bf16.vlgmr.msrb.gmra.mxu2 %v8762_v36  ;;  %v9430_v36 = vld [vmem:[%s9779_s3] sm:$0xf]  ;;  %v5489_v59 = vld [vmem:[%s9778_s2 + $0x218] sm:$0xf0] }
 0x1ca   :  { %3707 = vmatpush.bf16.msra.mxu2 %v5860_v34  ;;  %v2453_v54 = vperm.slane %v9430_v36, 0  ;;  %v5409_v34 = vld [vmem:[%s9778_s2 + $0x178] sm:$0xf0]  ;;  %3546 = vmatmul.bf16.vlgmr.msrb.gmra.mxu1 %v8897_v56 }
 0x1cb   :  { %v5412_v14 = vor.u32 %v6450_v6, %v5409_v34  ;;  %3624 = vmatmul.bf16.vlgmr.msra.gmra.mxu3 %v8897_v56  ;;  %3594 = vmatpush.bf16.msra.mxu1 %v5408_v11  ;;  %v5967_v6 = vld [vmem:[%s9778_s2 + $0x5c8] sm:$0xf]  ;;  %v6590_v34 = vld [vmem:[%s9778_s2 + $0x5cc] sm:$0xf] }
 0x1cc   :  { %v3431_v2 = vadd.f32 %v3430_v37, %v2453_v54  ;;  %v3456_v23 = vpop.f32.mrf.mxu2  ;;  %v3432_v16 = vpop.f32.mrf.mxu0  ;;  %3635 = vmatpush.bf16.msrb.mxu0 %v5760_v15  ;;  %v5585_v54 = vld [vmem:[%s9778_s2 + $0x2d8] sm:$0xf0]  ;;  %v5983_v37 = vld [vmem:[%s9778_s2 + $0x5e8] sm:$0xf]  ;;  %v5972_v11 = vor.u32 %v6590_v34, %v5969_v10  ;;  %v5556_v15 = vor.u32 %v6486_v32, %v5553_v35 }
 0x1cd   :  { %v3445_v41 = vpop.f32.mrf.mxu1  ;;  %3672 = vmatpush.bf16.msrb.mxu3 %v5412_v14  ;;  %v5588_v61 = vor.u32 %v6494_v53, %v5585_v54  ;;  %v5984_v19 = vor.u32 %v6596_v1, %v5983_v37  ;;  %v6588_v14 = vld [vmem:[%s9778_s2 + $0x5b4] sm:$0xf0]  ;;  %v5937_v16 = vld [vmem:[%s9778_s2 + $0x598] sm:$0xf0]  ;;  %v5903_v53 = vld [vmem:[%s9778_s2 + $0x548] sm:$0xf] }
 0x1ce   :  { %3708 = vmatpush.bf16.msra.mxu2 %v5844_v63  ;;  %v3444_v7 = vadd.f32 %v3443_v3, %v3431_v2  ;;  %v6538_v63 = vld [vmem:[%s9778_s2 + $0x42c] sm:$0xf]  ;;  %v5985_v2 = vld [vmem:[%s9778_s2 + $0x5f8] sm:$0xf0]  ;;  %v5360_v3 = vor.u32 %v6440_v57, %v5359_v21 }
 0x1cf   :  { %3595 = vmatpush.bf16.msra.mxu1 %v5392_v42  ;;  %v5988_v5 = vor.u32 %v6594_v50, %v5985_v2  ;;  %v5919_v42 = vld [vmem:[%s9778_s2 + $0x568] sm:$0xf]  ;;  %v5905_v21 = vld [vmem:[%s9778_s2 + $0x558] sm:$0xf0]  ;;  %v6470_v57 = vld [vmem:[%s9778_s2 + $0x20c] sm:$0xf] }
 0x1d0   :  { %v9517_v27 = vadd.f32 %v3456_v23, %v3444_v7  ;;  %3636 = vmatpush.bf16.msrb.mxu0 %v5744_v44  ;;  %v6592_v7 = vld [vmem:[%s9778_s2 + $0x5d4] sm:$0xf0]  ;;  %v5952_v23 = vor.u32 %v6588_v14, %v5951_v13  ;;  %v5492_v37 = vor.u32 %v6470_v57, %v5489_v59  ;;  %v6570_v50 = vld [vmem:[%s9778_s2 + $0x52c] sm:$0xf]  ;;  %v5889_v2 = vld [vmem:[%s9778_s2 + $0x538] sm:$0xf0] }
 0x1d1   :  { %3673 = vmatpush.bf16.msrb.mxu3 %v5396_v43  ;;  %v5968_v58 = vor.u32 %v6592_v7, %v5967_v6  ;;  %v6580_v43 = vld [vmem:[%s9778_s2 + $0x574] sm:$0xf0]  ;;  %v5873_v7 = vld [vmem:[%s9778_s2 + $0x518] sm:$0xf0]  ;;  %v6526_v13 = vld [vmem:[%s9778_s2 + $0x3cc] sm:$0xf] }
 0x1d2   :  { %3709 = vmatpush.bf16.msra.mxu2 %v5828_v26  ;;  %v5764_v26 = vor.u32 %v6538_v63, %v5761_v29  ;;  %v6582_v63 = vld [vmem:[%s9778_s2 + $0x58c] sm:$0xf]  ;;  %v5920_v51 = vor.u32 %v6580_v43, %v5919_v42  ;;  %v5729_v34 = vld [vmem:[%s9778_s2 + $0x3f8] sm:$0xf0]  ;;  %v6609_v59 = vld [vmem:[#allocation2 + $0x60] sm:$0xff] }
 0x1d3   :  { %3596 = vmatpush.bf16.msra.mxu1 %v5376_v55  ;;  %3637 = vmatmul.bf16.vlgmr.msrb.gmra.mxu0 %v9230_v28  ;;  %v6478_v29 = vld [vmem:[%s9778_s2 + $0x24c] sm:$0xf]  ;;  %v5940_v41 = vor.u32 %v6582_v63, %v5937_v16  ;;  %v5508_v55 = vor.u32 %v6474_v47, %v5505_v49  ;;  %v5713_v14 = vld [vmem:[%s9778_s2 + $0x3d8] sm:$0xf0]  ;;  %v6603_v63 = vld [vmem:[#allocation2 + $0x30] sm:$0xff] }
 0x1d4   :  { %3681 = vmatpush.bf16.msra.mxu0 %v5604_v31  ;;  %v5524_v44 = vor.u32 %v6478_v29, %v5521_v33  ;;  %v6510_v29 = vld [vmem:[%s9778_s2 + $0x34c] sm:$0xf]  ;;  %v5649_v33 = vld [vmem:[%s9778_s2 + $0x358] sm:$0xf0] }
 0x1d5   :  { %3674 = vmatpush.bf16.msrb.mxu3 %v5380_v38  ;;  %v6574_v38 = vld [vmem:[%s9778_s2 + $0x54c] sm:$0xf]  ;;  %v5633_v43 = vld [vmem:[%s9778_s2 + $0x338] sm:$0xf0] }
 0x1d6   :  { %3710 = vmatpush.bf16.msra.mxu2 %v5812_v48  ;;  %v3458_v48 = vpop.f32.mrf.mxu2  ;;  %v6506_v42 = vld [vmem:[%s9778_s2 + $0x32c] sm:$0xf]  ;;  %v6600_v47 = vld [vmem:[#allocation2 + $0x18] sm:$0xff] }
 0x1d7   :  { %3597 = vmatpush.bf16.msra.mxu1 %v5360_v3  ;;  %v2454_v3 = vperm.slane %v9430_v36, 1  ;;  %v6610_v57 = vld [vmem:[#allocation2 + $0x68] sm:$0xff] }
 0x1d8   :  { %3682 = vmatpush.bf16.msra.mxu0 %v5588_v61  ;;  %v5887_v61 = vld [vmem:[%s9778_s2 + $0x528] sm:$0xf] }
 0x1d9   :  { %3675 = vmatpush.bf16.msrb.mxu3 %v5364_v62  ;;  %v5871_v62 = vld [vmem:[%s9778_s2 + $0x508] sm:$0xf] }
 0x1da   :  { %3711 = vmatpush.bf16.msra.mxu2 %v5796_v12  ;;  %v5572_v12 = vor.u32 %v6490_v4, %v5569_v9  ;;  %3598 = vmatmul.bf16.vlgmr.msra.gmra.mxu1 %v8764_v39  ;;  %v5888_v4 = vor.u32 %v6572_v0, %v5887_v61  ;;  %v5892_v9 = vor.u32 %v6570_v50, %v5889_v2  ;;  %v6607_v0 = vld [vmem:[#allocation2 + $0x50] sm:$0xff]  ;;  %v6605_v50 = vld [vmem:[#allocation2 + $0x40] sm:$0xff] }
 0x1db   :  { %3642 = vmatpush.bf16.msrb.mxu1 %v5984_v19  ;;  %v6568_v19 = vld [vmem:[%s9778_s2 + $0x514] sm:$0xf0] }
 0x1dc   :  { %3683 = vmatpush.bf16.msra.mxu0 %v5572_v12  ;;  %3676 = vmatmul.bf16.vlgmr.msrb.gmra.mxu3 %v8764_v39  ;;  %v6584_v39 = vld [vmem:[%s9778_s2 + $0x594] sm:$0xf0]  ;;  %v6530_v12 = vld [vmem:[%s9778_s2 + $0x3ec] sm:$0xf]  ;;  %v5872_v10 = vor.u32 %v6568_v19, %v5871_v62 }
 0x1dd   :  { %3720 = vmatpush.bf16.msra.mxu3 %v5988_v5  ;;  %v5936_v40 = vor.u32 %v6584_v39, %v5935_v25  ;;  %v3469_v45 = vpop.f32.mrf.mxu3  ;;  %v6566_v5 = vld [vmem:[%s9778_s2 + $0x50c] sm:$0xf]  ;;  %v6604_v25 = vld [vmem:[#allocation2 + $0x38] sm:$0xff] }
 0x1de   :  { %3712 = vmatpush.bf16.msra.mxu2 %v5780_v24  ;;  %v9655_v31 = vadd.f32 %v3469_v45, %v9517_v27  ;;  %v6576_v27 = vld [vmem:[%s9778_s2 + $0x554] sm:$0xf0]  ;;  %v5876_v35 = vor.u32 %v6566_v5, %v5873_v7  ;;  %v5636_v45 = vor.u32 %v6506_v42, %v5633_v43  ;;  %v6627_v42 = vld [vmem:[#allocation2 + $0xf0] sm:$0xff] }
 0x1df   :  { %3643 = vmatpush.bf16.msrb.mxu1 %v5968_v58  ;;  %v5904_v48 = vor.u32 %v6576_v27, %v5903_v53  ;;  %v5732_v58 = vor.u32 %v6530_v12, %v5729_v34  ;;  %v6598_v27 = vld [vmem:[#allocation2 + $0x8] sm:$0xff] }
 0x1e0   :  { %3684 = vmatpush.bf16.msra.mxu0 %v5556_v15 }
 0x1e1   :  { %3721 = vmatpush.bf16.msra.mxu3 %v5972_v11 }
 0x1e2   :  { %3713 = vmatpush.bf16.msra.mxu2 %v5764_v26  ;;  %v5921_v26 = vld [vmem:[%s9778_s2 + $0x578] sm:$0xf0] }
 0x1e3   :  { %3644 = vmatpush.bf16.msrb.mxu1 %v5952_v23  ;;  %v5924_v52 = vor.u32 %v6578_v46, %v5921_v26  ;;  %v6518_v23 = vld [vmem:[%s9778_s2 + $0x38c] sm:$0xf]  ;;  %v5617_v26 = vld [vmem:[%s9778_s2 + $0x318] sm:$0xf0] }
 0x1e4   :  { %3685 = vmatpush.bf16.msra.mxu0 %v5540_v8  ;;  %v6514_v8 = vld [vmem:[%s9778_s2 + $0x36c] sm:$0xf] }
 0x1e5   :  { %v3471_v1 = vpop.f32.mrf.mxu3  ;;  %v6502_v46 = vld [vmem:[%s9778_s2 + $0x30c] sm:$0xf] }
 0x1e6   :  { %3714 = vmatpush.bf16.msra.mxu2 %v5748_v60  ;;  %v5908_v60 = vor.u32 %v6574_v38, %v5905_v21  ;;  %v5620_v49 = vor.u32 %v6502_v46, %v5617_v26  ;;  %v6597_v21 = vld [vmem:[#allocation2] sm:$0xff]  ;;  %v6606_v1 = vld [vmem:[#allocation2 + $0x48] sm:$0xff] }
 0x1e7   :  { %3645 = vmatpush.bf16.msrb.mxu1 %v5936_v40  ;;  %v6602_v40 = vld [vmem:[#allocation2 + $0x28] sm:$0xff] }
 0x1e8   :  { %3686 = vmatpush.bf16.msra.mxu0 %v5524_v44  ;;  %v6601_v44 = vld [vmem:[#allocation2 + $0x20] sm:$0xff] }
 0x1e9   :  { %3715 = vmatmul.bf16.vlgmr.msra.gmra.mxu2 %v9230_v28  ;;  %v5953_v28 = vld [vmem:[%s9778_s2 + $0x5b8] sm:$0xf0] }
 0x1ea   :  { %v5956_v24 = vor.u32 %v6586_v17, %v5953_v28  ;;  %v5716_v17 = vor.u32 %v6526_v13, %v5713_v14  ;;  %v5697_v28 = vld [vmem:[%s9778_s2 + $0x3b8] sm:$0xf0]  ;;  %v6617_v13 = vld [vmem:[#allocation2 + $0xa0] sm:$0xff] }
 0x1eb   :  { %3646 = vmatpush.bf16.msrb.mxu1 %v5920_v51  ;;  %v6599_v51 = vld [vmem:[#allocation2 + $0x10] sm:$0xff] }
 0x1ec   :  { %3722 = vmatpush.bf16.msra.mxu3 %v5956_v24  ;;  %v3508_v54 = vpop.f32.mrf.mxu2  ;;  %3687 = vmatpush.bf16.msra.mxu0 %v5508_v55  ;;  %v5681_v24 = vld [vmem:[%s9778_s2 + $0x398] sm:$0xf0] }
 0x1ed   :  { %v3509_v32 = vadd.f32 %v3508_v54, %v2454_v3  ;;  %v3521_v11 = vpop.f32.mrf.mxu3  ;;  %v5684_v39 = vor.u32 %v6518_v23, %v5681_v24  ;;  %v6611_v54 = vld [vmem:[#allocation2 + $0x70] sm:$0xff] }
 0x1ef   :  { %3647 = vmatpush.bf16.msrb.mxu1 %v5904_v48  ;;  %v9719_v15 = vadd.f32 %v3521_v11, %v3509_v32  ;;  %v6619_v32 = vld [vmem:[#allocation2 + $0xb0] sm:$0xff] }
 0x1f0   :  { %3723 = vmatpush.bf16.msra.mxu3 %v5940_v41  ;;  %3688 = vmatpush.bf16.msra.mxu0 %v5492_v37  ;;  %v5652_v41 = vor.u32 %v6510_v29, %v5649_v33 }
 0x1f3   :  { %3648 = vmatpush.bf16.msrb.mxu1 %v5888_v4  ;;  %3689 = vmatmul.bf16.vlgmr.msra.gmra.mxu0 %v8754_v30  ;;  %v6522_v30 = vld [vmem:[%s9778_s2 + $0x3ac] sm:$0xf] }
 0x1f4   :  { %3724 = vmatpush.bf16.msra.mxu3 %v5924_v52  ;;  %v3510_v6 = vpop.f32.mrf.mxu2  ;;  %v5700_v18 = vor.u32 %v6522_v30, %v5697_v28  ;;  %4001 = vmatpush.bf16.msrb.mxu0 %v6604_v25  ;;  %v6612_v52 = vld [vmem:[#allocation2 + $0x78] sm:$0xff]  ;;  %v6615_v25 = vld [vmem:[#allocation2 + $0x90] sm:$0xff] }
 0x1f5   :  { %v3523_v22 = vpop.f32.mrf.mxu3  ;;  %v6620_v6 = vld [vmem:[#allocation2 + $0xb8] sm:$0xff] }
 0x1f6   :  { %4027 = vmatpush.bf16.msrb.mxu2 %v6620_v6  ;;  %v6616_v30 = vld [vmem:[#allocation2 + $0x98] sm:$0xff] }
 0x1f7   :  { %3649 = vmatpush.bf16.msrb.mxu1 %v5872_v10 }
 0x1f8   :  { %3725 = vmatpush.bf16.msra.mxu3 %v5908_v60  ;;  %4002 = vmatpush.bf16.msrb.mxu0 %v6603_v63  ;;  %v6608_v60 = vld [vmem:[#allocation2 + $0x58] sm:$0xff] }
 0x1fa   :  { %3650 = vmatmul.bf16.vlgmr.msrb.gmra.mxu1 %v9389_v20  ;;  %4028 = vmatpush.bf16.msrb.mxu2 %v6619_v32 }
 0x1fb   :  { %3694 = vmatpush.bf16.msra.mxu1 %v5732_v58 }
 0x1fc   :  { %3726 = vmatpush.bf16.msra.mxu3 %v5892_v9  ;;  %4003 = vmatpush.bf16.msrb.mxu0 %v6602_v40  ;;  %v6628_v40 = vld [vmem:[#allocation2 + $0xf8] sm:$0xff] }
 0x1ff   :  { %3695 = vmatpush.bf16.msra.mxu1 %v5716_v17 }
 0x200   :  { %3727 = vmatpush.bf16.msra.mxu3 %v5876_v35  ;;  %4004 = vmatpush.bf16.msrb.mxu0 %v6601_v44  ;;  %v6618_v35 = vld [vmem:[#allocation2 + $0xa8] sm:$0xff]  ;;  %v2455_v44 = vperm.slane %v9430_v36, 2 }
 0x201   :  { %4029 = vmatpush.bf16.msrb.mxu2 %v6618_v35  ;;  %v6632_v35 = vld [vmem:[%s9781_s5] ss:$0 sm:$0xff] }
 0x203   :  { %3728 = vmatmul.bf16.vlgmr.msra.gmra.mxu3 %v9389_v20  ;;  %3696 = vmatpush.bf16.msra.mxu1 %v5700_v18  ;;  %v5665_v20 = vld [vmem:[%s9778_s2 + $0x378] sm:$0xf0] }
 0x204   :  { %v5668_v16 = vor.u32 %v6514_v8, %v5665_v20  ;;  %4005 = vmatpush.bf16.msrb.mxu0 %v6600_v47  ;;  %v6614_v20 = vld [vmem:[#allocation2 + $0x88] sm:$0xff]  ;;  %4040 = vmatpush.bf16.msrb.mxu3 %v6628_v40 }
 0x205   :  { %4030 = vmatpush.bf16.msrb.mxu2 %v6617_v13 }
 0x207   :  { %3697 = vmatpush.bf16.msra.mxu1 %v5684_v39 }
 0x208   :  { %4006 = vmatpush.bf16.msrb.mxu0 %v6599_v51  ;;  %4041 = vmatpush.bf16.msrb.mxu3 %v6627_v42 }
 0x209   :  { %4031 = vmatpush.bf16.msrb.mxu2 %v6616_v30 }
 0x20b   :  { %3698 = vmatpush.bf16.msra.mxu1 %v5668_v16  ;;  %v6613_v16 = vld [vmem:[#allocation2 + $0x80] sm:$0xff] }
 0x20c   :  { %4007 = vmatpush.bf16.msrb.mxu0 %v6598_v27 }
 0x20d   :  { %4032 = vmatpush.bf16.msrb.mxu2 %v6615_v25 }
 0x20f   :  { %3699 = vmatpush.bf16.msra.mxu1 %v5652_v41  ;;  %v3482_v53 = vpop.f32.mrf.mxu0 }
 0x210   :  { %4008 = vmatpush.bf16.msrb.mxu0 %v6597_v21  ;;  %v3483_v4 = vadd.f32 %v3482_v53, %v9655_v31 }
 0x211   :  { %4033 = vmatpush.bf16.msrb.mxu2 %v6614_v20 }
 0x213   :  { %3700 = vmatpush.bf16.msra.mxu1 %v5636_v45  ;;  %v6626_v45 = vld [vmem:[#allocation2 + $0xe8] sm:$0xff] }
 0x214   :  { %4042 = vmatpush.bf16.msrb.mxu3 %v6626_v45 }
 0x215   :  { %4034 = vmatpush.bf16.msrb.mxu2 %v6613_v16 }
 0x216   :  { %v3560_v55 = vpop.f32.mrf.mxu2 }
 0x217   :  { %3701 = vmatpush.bf16.msra.mxu1 %v5620_v49  ;;  %v3484_v38 = vpop.f32.mrf.mxu0  ;;  %v6625_v49 = vld [vmem:[#allocation2 + $0xe0] sm:$0xff] }
 0x218   :  { %4043 = vmatpush.bf16.msrb.mxu3 %v6625_v49 }
 0x21a   :  { %3702 = vmatmul.bf16.vlgmr.msra.gmra.mxu1 %v8897_v56 }
 0x21b   :  { %4014 = vmatpush.bf16.msrb.mxu1 %v6612_v52  ;;  %v6624_v52 = vld [vmem:[#allocation2 + $0xd8] sm:$0xff] }
 0x21c   :  { %4044 = vmatpush.bf16.msrb.mxu3 %v6624_v52 }
 0x21e   :  { %v3562_v48 = vpop.f32.mrf.mxu2 }
 0x21f   :  { %4015 = vmatpush.bf16.msrb.mxu1 %v6611_v54  ;;  %v3534_v61 = vpop.f32.mrf.mxu0 }
 0x220   :  { %v3535_v11 = vadd.f32 %v3534_v61, %v9719_v15  ;;  %v6621_v61 = vld [vmem:[#allocation2 + $0xc0] sm:$0xff] }
 0x223   :  { %4016 = vmatpush.bf16.msrb.mxu1 %v6610_v57  ;;  %v6622_v57 = vld [vmem:[#allocation2 + $0xc8] sm:$0xff] }
 0x227   :  { %4017 = vmatpush.bf16.msrb.mxu1 %v6609_v59  ;;  %v3536_v56 = vpop.f32.mrf.mxu0 }
 0x22b   :  { %4018 = vmatpush.bf16.msrb.mxu1 %v6608_v60 }
 0x22c   :  { %v9760_v37 = vpop.f32.mrf.mxu2 }
 0x22f   :  { %4019 = vmatpush.bf16.msrb.mxu1 %v6607_v0 }
 0x230   :  { %v3586_v3 = vpop.f32.mrf.mxu0 }
 0x231   :  { %v3587_v26 = vadd.f32 %v3586_v3, %v2455_v44 }
 0x233   :  { %4020 = vmatpush.bf16.msrb.mxu1 %v6606_v1 }
 0x234   :  { %v3614_v2 = vpop.f32.mrf.mxu2 }
 0x237   :  { %4021 = vmatpush.bf16.msrb.mxu1 %v6605_v50  ;;  %v3495_v9 = vpop.f32.mrf.mxu1 }
 0x238   :  { %v3496_v62 = vadd.f32 %v3495_v9, %v3483_v4  ;;  %v3588_v5 = vpop.f32.mrf.mxu0 }
 0x23a   :  { %v3733_v19 = vmax.f32 %v3496_v62, 0.0 }
 0x23c   :  { %v3737_v7 = vpack.c.bf16 %v3733_v19, %v3733_v19 }
 0x23e   :  { %v3573_v12 = vpop.f32.mrf.mxu3  ;;  %4009 = vmatmul.bf16.vlgmr.msrb.gmra.mxu0 %v3737_v7 }
 0x23f   :  { %v3497_v10 = vpop.f32.mrf.mxu1 }
 0x246   :  { %v3575_v58 = vpop.f32.mrf.mxu3 }
 0x247   :  { %v3547_v14 = vpop.f32.mrf.mxu1 }
 0x248   :  { %v3548_v17 = vadd.f32 %v3547_v14, %v3535_v11 }
 0x24a   :  { %v3561_v28 = vadd.f32 %v3560_v55, %v3548_v17  ;;  %v6623_v55 = vld [vmem:[#allocation2 + $0xd0] sm:$0xff] }
 0x24b   :  { %4045 = vmatpush.bf16.msrb.mxu3 %v6623_v55 }
 0x24c   :  { %v9763_v34 = vpop.f32.mrf.mxu2  ;;  %v3574_v18 = vadd.f32 %v3573_v12, %v3561_v28 }
 0x24e   :  { %v3625_v22 = vpop.f32.mrf.mxu3  ;;  %v3734_v23 = vmax.f32 %v3574_v18, 0.0 }
 0x24f   :  { %v3549_v24 = vpop.f32.mrf.mxu1  ;;  %4046 = vmatpush.bf16.msrb.mxu3 %v6622_v57 }
 0x250   :  { %v3738_v39 = vpack.c.bf16 %v3734_v23, %v3734_v23  ;;  %v3638_v8 = vpop.f32.mrf.mxu0 }
 0x252   :  { %4022 = vmatmul.bf16.vlgmr.msrb.gmra.mxu1 %v3738_v39 }
 0x253   :  { %4047 = vmatpush.bf16.msrb.mxu3 %v6621_v61 }
 0x254   :  { %v3666_v31 = vpop.f32.mrf.mxu2 }
 0x256   :  { %v3627_v63 = vpop.f32.mrf.mxu3 }
 0x257   :  { %v3599_v15 = vpop.f32.mrf.mxu1 }
 0x258   :  { %v3640_v29 = vpop.f32.mrf.mxu0  ;;  %v3600_v51 = vadd.f32 %v3599_v15, %v3587_v26 }
 0x25a   :  { %v3613_v53 = vadd.f32 %v9760_v37, %v3600_v51  ;;  %v2456_v37 = vperm.slane %v9430_v36, 3 }
 0x25c   :  { %v3626_v54 = vadd.f32 %v3625_v22, %v3613_v53  ;;  %v3665_v2 = vadd.f32 %v9763_v34, %v2456_v37 }
 0x25e   :  { %v3639_v38 = vadd.f32 %v3638_v8, %v3626_v54 }
 0x25f   :  { %v3677_v41 = vpop.f32.mrf.mxu3  ;;  %v3601_v43 = vpop.f32.mrf.mxu1 }
 0x260   :  { %v3678_v3 = vadd.f32 %v3677_v41, %v3665_v2 }
 0x267   :  { %v3679_v47 = vpop.f32.mrf.mxu3 }
 0x26c   :  { %v3716_v33 = vpop.f32.mrf.mxu2 }
 0x270   :  { %v3690_v27 = vpop.f32.mrf.mxu0 }
 0x271   :  { %v3691_v4 = vadd.f32 %v3690_v27, %v3678_v3 }
 0x274   :  { %v3718_v46 = vpop.f32.mrf.mxu2 }
 0x277   :  { %v3651_v21 = vpop.f32.mrf.mxu1 }
 0x278   :  { %v3652_v59 = vadd.f32 %v3651_v21, %v3639_v38  ;;  %v3692_v48 = vpop.f32.mrf.mxu0 }
 0x27a   :  { %v3735_v60 = vmax.f32 %v3652_v59, 0.0 }
 0x27c   :  { %v3739_v0 = vpack.c.bf16 %v3735_v60, %v3735_v60 }
 0x27e   :  { %4035 = vmatmul.bf16.vlgmr.msrb.gmra.mxu2 %v3739_v0 }
 0x27f   :  { %v3653_v1 = vpop.f32.mrf.mxu1 }
 0x286   :  { %v3729_v56 = vpop.f32.mrf.mxu3 }
 0x28e   :  { %v3731_v50 = vpop.f32.mrf.mxu3 }
 0x297   :  { %v3703_v9 = vpop.f32.mrf.mxu1 }
 0x298   :  { %v3704_v62 = vadd.f32 %v3703_v9, %v3691_v4 }
 0x29a   :  { %v3717_v19 = vadd.f32 %v3716_v33, %v3704_v62 }
 0x29c   :  { %v3730_v5 = vadd.f32 %v3729_v56, %v3717_v19 }
 0x29e   :  { %v3736_v6 = vmax.f32 %v3730_v5, 0.0 }
 0x29f   :  { %v3705_v7 = vpop.f32.mrf.mxu1 }
 0x2a0   :  { %v3740_v12 = vpack.c.bf16 %v3736_v6, %v3736_v6 }
 0x2a2   :  { %4048 = vmatmul.bf16.vlgmr.msrb.gmra.mxu3 %v3740_v12 }
 0x2bb   :  { %v4010_v10 = vpop.f32.mrf.mxu0 }
 0x2bc   :  { %v4011_v58 = vadd.f32 %v6632_v35, %v4010_v10 }
 0x2c3   :  { %v4012_v32 = vpop.f32.mrf.mxu0 }
 0x2cf   :  { %v4023_v36 = vpop.f32.mrf.mxu1 }
 0x2d0   :  { %v4024_v11 = vadd.f32 %v4023_v36, %v4011_v58 }
 0x2d7   :  { %v4025_v34 = vpop.f32.mrf.mxu1 }
 0x301   :  { %v4036_v31 = vpop.f32.mrf.mxu2 }
 0x302   :  { %v4037_v14 = vadd.f32 %v4036_v31, %v4024_v11 }
 0x309   :  { %v4038_v13 = vpop.f32.mrf.mxu2 }
 0x325   :  { %v4049_v17 = vpop.f32.mrf.mxu3 }
 0x326   :  { %v4050_v30 = vadd.f32 %v4049_v17, %v4037_v14 }
 0x328   :  { %4053 = vmax.xlane.f32.xlu0 %v4050_v30 }
 0x32d   :  { %v4051_v28 = vpop.f32.mrf.mxu3 }
 0x39b   :  { %v4054_v18 = vpop.xlane.xlu0 %4053 }
 0x39c   :  { %v4055_v22 = vsub.f32 %v4050_v30, %v4054_v18 }
 0x39e   :  { %v4056_v23 = vmul.f32 1.442695, %v4055_v22 }
 0x3a0   :  { %6645 = vpow2.f32 %v4056_v23 }
 0x3a6   :  { %v6646_v24 = vpop.eup %6645 }
 0x3a7   :  { %4058 = vadd.xlane.f32.xlu0 %v6646_v24 }
 0x41a   :  { %v4059_v25 = vpop.xlane.xlu0 %4058 }
 0x41b   :  { %6647 = vlog2.f32 %v4059_v25 }
 0x421   :  { %v6648_v39 = vpop.eup %6647 }
 0x422   :  { %v4061_v8 = vmul.f32 0.6931472, %v6648_v39 }
 0x424   :  { %v4062_v20 = vsub.f32 %v4055_v22, %v4061_v8 }
 0x426   :  { %4063 = vst [vmem:[%s9782_s6] sm:$0xff] %v4062_v20 }
 0x427   :  { %4068 = vsyncpa [#allocation3], 1 }

</bundles_post_ra>
